<compile_context>
chip_gen: v5e
topology: v5e:2x2
jax: 0.10.0
libtpu: 0.0.40
codegen_flags: <defaults>
</compile_context>

<pallas_src>
import numpy as np
import jax
import jax.numpy as jnp
from jax.experimental import pallas as pl
from jax.experimental.pallas import tpu as pltpu


# ---------------------------------------------------------------------------
# Fused kernel (one grid step == block_batch full forwards)
# refs = [x, (band, bias)*n_conv, w1, b1, w2, b2, out, scratch*n_conv]
# ---------------------------------------------------------------------------
def _make_kernel(n_conv, block_batch):
    BT = block_batch

    def kernel(*refs):
        x_ref = refs[0]
        w1_ref, b1_ref, w2_ref, b2_ref = refs[1 + 2 * n_conv: 5 + 2 * n_conv]
        o_ref = refs[5 + 2 * n_conv]
        scr_refs = refs[6 + 2 * n_conv:]

        # Stacked per-sample slabs: row = b*S + h, lanes = (w, c).
        a = x_ref[...]
        for l in range(n_conv):
            band_ref = refs[1 + 2 * l]
            bias_ref = refs[2 + 2 * l]
            scr = scr_refs[l]
            KH = band_ref.shape[0]
            PWC = bias_ref.shape[1]
            M = a.shape[0]
            Mo = M - (KH - 1)

            # Conv (valid, stride 1) as KH banded matmuls; even/odd output
            # columns of the 2x2 W-pool are folded into ONE merged band.
            acc = jnp.dot(a[0:Mo, :], band_ref[0],
                          preferred_element_type=jnp.float32)
            for kh in range(1, KH):
                acc = acc + jnp.dot(a[kh:kh + Mo, :], band_ref[kh],
                                    preferred_element_type=jnp.float32)

            # W-pool max (VPU) + bias + ReLU;  relu(max(.)) == max(relu(.)).
            z = jnp.maximum(
                jnp.maximum(acc[:, :PWC], acc[:, PWC:]) + bias_ref[...], 0.0)

            # Park z in VMEM scratch (tail rows zeroed -> fully deterministic).
            scr[0:Mo, :] = z
            if KH > 1:
                scr[Mo:M, :] = jnp.zeros((KH - 1, PWC), jnp.float32)

            if l + 1 < n_conv:
                # H-pool + per-sample row restack in one shot: the per-sample
                # row stride halves every layer, so pooled row r is exactly
                # max(scratch[2r], scratch[2r+1]) globally (stride-2 reads).
                n_next = M // 2
                a = jnp.maximum(scr[pl.ds(0, n_next, stride=2), :],
                                scr[pl.ds(1, n_next, stride=2), :])

        # FC1: last layer's H-pool folded into strided per-pooled-row gathers;
        # each term is a (BT, PWC) x (PWC, fc_hidden) matmul (M = BT >= 32).
        scr = scr_refs[n_conv - 1]
        PWC = scr.shape[1]
        S = scr.shape[0] // BT              # per-sample row stride of last z
        PH = w1_ref.shape[0] // PWC         # pooled rows per sample
        acc = None
        for ph in range(PH):
            rows = jnp.maximum(scr[pl.ds(2 * ph, BT, stride=S), :],
                               scr[pl.ds(2 * ph + 1, BT, stride=S), :])
            part = jnp.dot(rows, w1_ref[ph * PWC:(ph + 1) * PWC, :],
                           preferred_element_type=jnp.float32)
            acc = part if acc is None else acc + part
        hid = jnp.maximum(acc + b1_ref[...], 0.0)

        # FC2 — output lanes padded to a 128-multiple (dense, unmasked stores).
        out = jnp.dot(hid, w2_ref[...],
                      preferred_element_type=jnp.float32) + b2_ref[...]
        o_ref[...] = out.astype(o_ref.dtype)

    return kernel


# ---------------------------------------------------------------------------
# One-time operand precompute (pure numpy/jnp glue outside the kernel)
# ---------------------------------------------------------------------------
def _banded_conv_weight(wk, width, pooled_w):
    """(KH,KW,Cin,Cout) -> (KH, width*Cin, 2*PW*Cout) merged banded matrices.
    Columns [0:PW*Cout) produce conv output columns ow=2*pw (even parity),
    columns [PW*Cout:2*PW*Cout) produce ow=2*pw+1 (odd parity)."""
    KH, KW, Cin, Cout = wk.shape
    wn = np.asarray(wk, np.float32)
    PWC = pooled_w * Cout
    band = np.zeros((KH, width * Cin, 2 * PWC), np.float32)
    for kh in range(KH):
        for parity in (0, 1):
            for pw in range(pooled_w):
                ow = 2 * pw + parity
                for kw in range(KW):
                    wp = ow + kw
                    band[kh, wp * Cin:(wp + 1) * Cin,
                         parity * PWC + pw * Cout:
                         parity * PWC + (pw + 1) * Cout] = wn[kh, kw]
    return jnp.asarray(band)


def _permute_fc1(w1, C, H, W):
    """Reorder w1 rows from torch's NCHW flatten order to (h, w, c) order."""
    idx = np.arange(C * H * W).reshape(C, H, W).transpose(1, 2, 0).reshape(-1)
    return jnp.asarray(w1)[jnp.asarray(idx), :]


# ---------------------------------------------------------------------------
# Forward builder (single pallas_call, grid over batch tiles)
# ---------------------------------------------------------------------------
def build_forward(convs, fc1, fc2, in_features, out_features,
                  pool_size=2, block_batch=32):
    # TODO(synk): pool_size != 2, the pad>0 ConstantPad2d branch and the
    # x-is-None generate_input() path of the original module are unimplemented.
    assert pool_size == 2, "kernel folds a fixed 2x2 max-pool into the bands"
    assert block_batch % 8 == 0, "block_batch must be sublane (8) aligned"
    Cin, H, W = in_features

    operands, layer_meta = [], []
    S, hv, wv, cin = H, H, W, Cin        # row stride, valid rows/cols, chans
    for li, (cw, cb) in enumerate(convs):
        KH, KW, _, Cout = cw.shape
        OH, OW = hv - KH + 1, wv - KW + 1
        PH, PW = OH // 2, OW // 2
        assert PH >= 1 and PW >= 1, "config pools spatial dims to zero"
        PWC = PW * Cout
        operands += [
            _banded_conv_weight(cw, wv, PW),
            jnp.tile(jnp.asarray(cb, jnp.float32), PW).reshape(1, PWC),
        ]
        layer_meta.append(dict(KH=KH, S=S, PWC=PWC))
        if li + 1 < len(convs):
            assert S % 2 == 0, "row-stride halving needs an even stride"
            S = S // 2
        hv, wv, cin = PH, PW, Cout

    w1, b1 = fc1
    w2, b2 = fc2
    assert w1.shape[0] == cin * hv * wv
    out_pad = ((out_features + 127) // 128) * 128
    w2p = jnp.zeros((w2.shape[0], out_pad), jnp.float32).at[:, :out_features].set(w2)
    b2p = jnp.zeros((1, out_pad), jnp.float32).at[0, :out_features].set(b2)
    operands += [_permute_fc1(w1, cin, hv, wv), b1.reshape(1, -1), w2p, b2p]
    operands = tuple(operands)

    kernel = _make_kernel(len(convs), block_batch)
    scratch_shapes = [pltpu.VMEM((block_batch * m["S"], m["PWC"]), jnp.float32)
                      for m in layer_meta]
    n_conv = len(convs)

    @jax.jit
    def fwd(x_nchw):
        # torch: x = x.view(-1, *in_features)   (pad is None for pad=0)
        x = x_nchw.reshape((-1, Cin, H, W))
        B = x.shape[0]
        Bp = ((B + block_batch - 1) // block_batch) * block_batch
        if Bp != B:
            x = jnp.concatenate(
                [x, jnp.zeros((Bp - B, Cin, H, W), x.dtype)], axis=0)
        # NCHW -> stacked (Bp*H, W*Cin) slab (lanes = (w, c)).  For large B
        # this slab should be produced upstream to avoid the extra HBM pass;
        # here it is one tiny XLA transpose.
        x2d = jnp.transpose(x, (0, 2, 3, 1)).reshape(Bp * H, W * Cin)

        in_specs = [pl.BlockSpec((block_batch * H, W * Cin), lambda i: (i, 0))]
        for op in operands:
            if op.ndim == 3:
                in_specs.append(pl.BlockSpec(op.shape, lambda i: (0, 0, 0)))
            else:
                in_specs.append(pl.BlockSpec(op.shape, lambda i: (0, 0)))

        out = pl.pallas_call(
            kernel,
            out_shape=jax.ShapeDtypeStruct((Bp, out_pad), jnp.float32),
            grid=(Bp // block_batch,),
            in_specs=in_specs,
            out_specs=pl.BlockSpec((block_batch, out_pad), lambda i: (i, 0)),
            scratch_shapes=scratch_shapes,
            compiler_params=pltpu.CompilerParams(
                dimension_semantics=("parallel",),       # shards grid on v7x
                vmem_limit_bytes=32 * 1024 * 1024),
        )(x2d, *operands)
        return out[:B, :out_features]

    return fwd


# ---------------------------------------------------------------------------
# Parameter init (deterministic; mirrors kaiming_uniform / normal shapes)
# ---------------------------------------------------------------------------
def kaiming_uniform(key, shape, fan_in):
    bound = float(np.sqrt(6.0 / fan_in))
    return jax.random.uniform(key, shape, jnp.float32, -bound, bound)


def init_params(key, in_features, conv_layers, conv_channels, kernel,
                pool, fc_hidden, out_features):
    cin, H, W = in_features
    keys = jax.random.split(key, 2 * conv_layers + 4)
    ki = 0
    convs = []
    for _ in range(conv_layers):
        w = kaiming_uniform(keys[ki], (kernel, kernel, cin, conv_channels),
                            cin * kernel * kernel); ki += 1
        b = jax.random.normal(keys[ki], (conv_channels,), jnp.float32); ki += 1
        convs.append((w, b))
        cin = conv_channels
        H = (H - kernel + 1) // pool
        W = (W - kernel + 1) // pool
    flat = cin * H * W
    w1 = kaiming_uniform(keys[ki], (flat, fc_hidden), flat); ki += 1
    b1 = jax.random.normal(keys[ki], (fc_hidden,), jnp.float32); ki += 1
    w2 = kaiming_uniform(keys[ki], (fc_hidden, out_features), fc_hidden); ki += 1
    b2 = jax.random.normal(keys[ki], (out_features,), jnp.float32); ki += 1
    return convs, (w1, b1), (w2, b2)


# Pure-JAX reference (matches the PyTorch module semantics), f32-exact.
def reference_forward(x_nchw, convs, fc1, fc2, in_features):
    hi = jax.lax.Precision.HIGHEST
    x = x_nchw.reshape((-1,) + tuple(in_features))
    for (w, b) in convs:
        y = jax.lax.conv_general_dilated(
            x, w, window_strides=(1, 1), padding="VALID",
            dimension_numbers=("NCHW", "HWIO", "NCHW"), precision=hi)
        y = jnp.maximum(y + b[None, :, None, None], 0.0)
        x = jax.lax.reduce_window(y, -jnp.inf, jax.lax.max,
                                  (1, 1, 2, 2), (1, 1, 2, 2), "VALID")
    x = x.reshape(x.shape[0], -1)
    w1, b1 = fc1
    x = jnp.maximum(jnp.dot(x, w1, precision=hi) + b1, 0.0)
    w2, b2 = fc2
    return jnp.dot(x, w2, precision=hi) + b2


if __name__ == "__main__":
    # conv_layers=2, in_features=(4,16,16), conv_initial_size=8,
    # fc_initial_size=32, out_features=10, kernel=3, pool=2, pad=0, stride=1.
    in_features = (4, 16, 16)
    conv_layers, conv_channels, kernel_size, pool_size = 2, 8, 3, 2
    fc_hidden, out_features = 32, 10
    batch, block_batch = 64, 32          # grid = (2,), even -> both v7x TCs

    key = jax.random.PRNGKey(0)
    k_x, k_p = jax.random.split(key)
    x = jax.random.normal(k_x, (batch,) + in_features, jnp.float32)

    convs, fc1, fc2 = init_params(k_p, in_features, conv_layers, conv_channels,
                                  kernel_size, pool_size, fc_hidden,
                                  out_features)

    fwd = build_forward(convs, fc1, fc2, in_features, out_features,
                        pool_size=pool_size, block_batch=block_batch)

    out = jax.block_until_ready(fwd(x))
    assert out.shape == (batch, out_features), out.shape

    ref = jax.block_until_ready(
        reference_forward(x, convs, fc1, fc2, in_features))
    np.testing.assert_allclose(np.asarray(out), np.asarray(ref),
                               rtol=2e-4, atol=2e-4)
    print("KERNEL_OK")
</pallas_src>

<mosaic_0001>
module attributes {stable_mosaic.version = 11 : i64} {
  func.func @kernel(%arg0: i32, %arg1: memref<512x64xf32, #tpu.memory_space<vmem>>, %arg2: memref<3x64x112xf32, #tpu.memory_space<vmem>>, %arg3: memref<1x56xf32, #tpu.memory_space<vmem>>, %arg4: memref<3x56x32xf32, #tpu.memory_space<vmem>>, %arg5: memref<1x16xf32, #tpu.memory_space<vmem>>, %arg6: memref<32x32xf32, #tpu.memory_space<vmem>>, %arg7: memref<1x32xf32, #tpu.memory_space<vmem>>, %arg8: memref<32x128xf32, #tpu.memory_space<vmem>>, %arg9: memref<1x128xf32, #tpu.memory_space<vmem>>, %arg10: memref<32x128xf32, #tpu.memory_space<vmem>>, %arg11: memref<512x56xf32, #tpu.memory_space<vmem>>, %arg12: memref<256x16xf32, #tpu.memory_space<vmem>>) attributes {dimension_semantics = [#tpu.dimension_semantics<parallel>], iteration_bounds = array<i64: 2>, scalar_prefetch = 0 : i64, scratch_operands = 2 : i64, tpu.core_type = #tpu.core_type<tc>, window_params = [{transform_indices = @transform_0, window_bounds = array<i64: 512, 64>}, {pipeline_mode = #tpu.pipeline_mode<synchronous>, transform_indices = @transform_1, window_bounds = array<i64: 3, 64, 112>}, {pipeline_mode = #tpu.pipeline_mode<synchronous>, transform_indices = @transform_2, window_bounds = array<i64: 1, 56>}, {pipeline_mode = #tpu.pipeline_mode<synchronous>, transform_indices = @transform_3, window_bounds = array<i64: 3, 56, 32>}, {pipeline_mode = #tpu.pipeline_mode<synchronous>, transform_indices = @transform_4, window_bounds = array<i64: 1, 16>}, {pipeline_mode = #tpu.pipeline_mode<synchronous>, transform_indices = @transform_5, window_bounds = array<i64: 32, 32>}, {pipeline_mode = #tpu.pipeline_mode<synchronous>, transform_indices = @transform_6, window_bounds = array<i64: 1, 32>}, {pipeline_mode = #tpu.pipeline_mode<synchronous>, transform_indices = @transform_7, window_bounds = array<i64: 32, 128>}, {pipeline_mode = #tpu.pipeline_mode<synchronous>, transform_indices = @transform_8, window_bounds = array<i64: 1, 128>}, {transform_indices = @transform_9, window_bounds = array<i64: 32, 128>}]} {
    %c0 = arith.constant 0 : index
    %c0_0 = arith.constant 0 : index
    %0 = vector.load %arg1[%c0, %c0_0] : memref<512x64xf32, #tpu.memory_space<vmem>>, vector<512x64xf32>
    %1 = vector.extract_strided_slice %0 {offsets = [0, 0], sizes = [510, 64], strides = [1, 1]} : vector<512x64xf32> to vector<510x64xf32>
    %c0_1 = arith.constant 0 : index
    %c0_2 = arith.constant 0 : index
    %c0_3 = arith.constant 0 : index
    %2 = vector.load %arg2[%c0_1, %c0_2, %c0_3] : memref<3x64x112xf32, #tpu.memory_space<vmem>>, vector<1x64x112xf32>
    %3 = vector.shape_cast %2 : vector<1x64x112xf32> to vector<64x112xf32>
    %cst = arith.constant dense<0.000000e+00> : vector<510x112xf32>
    %4 = tpu.matmul %1, %3, %cst {dimension_numbers = #tpu.dot_dimension_numbers<[1], [0], [0], [1], [0, 0, 1, 1], [], []>} : vector<510x64xf32>, vector<64x112xf32>, vector<510x112xf32> -> vector<510x112xf32>
    %5 = vector.extract_strided_slice %0 {offsets = [1, 0], sizes = [510, 64], strides = [1, 1]} : vector<512x64xf32> to vector<510x64xf32>
    %c1 = arith.constant 1 : index
    %c0_4 = arith.constant 0 : index
    %c0_5 = arith.constant 0 : index
    %6 = vector.load %arg2[%c1, %c0_4, %c0_5] : memref<3x64x112xf32, #tpu.memory_space<vmem>>, vector<1x64x112xf32>
    %7 = vector.shape_cast %6 : vector<1x64x112xf32> to vector<64x112xf32>
    %cst_6 = arith.constant dense<0.000000e+00> : vector<510x112xf32>
    %8 = tpu.matmul %5, %7, %cst_6 {dimension_numbers = #tpu.dot_dimension_numbers<[1], [0], [0], [1], [0, 0, 1, 1], [], []>} : vector<510x64xf32>, vector<64x112xf32>, vector<510x112xf32> -> vector<510x112xf32>
    %9 = arith.addf %4, %8 : vector<510x112xf32>
    %10 = vector.extract_strided_slice %0 {offsets = [2, 0], sizes = [510, 64], strides = [1, 1]} : vector<512x64xf32> to vector<510x64xf32>
    %c2 = arith.constant 2 : index
    %c0_7 = arith.constant 0 : index
    %c0_8 = arith.constant 0 : index
    %11 = vector.load %arg2[%c2, %c0_7, %c0_8] : memref<3x64x112xf32, #tpu.memory_space<vmem>>, vector<1x64x112xf32>
    %12 = vector.shape_cast %11 : vector<1x64x112xf32> to vector<64x112xf32>
    %cst_9 = arith.constant dense<0.000000e+00> : vector<510x112xf32>
    %13 = tpu.matmul %10, %12, %cst_9 {dimension_numbers = #tpu.dot_dimension_numbers<[1], [0], [0], [1], [0, 0, 1, 1], [], []>} : vector<510x64xf32>, vector<64x112xf32>, vector<510x112xf32> -> vector<510x112xf32>
    %14 = arith.addf %9, %13 : vector<510x112xf32>
    %15 = vector.extract_strided_slice %14 {offsets = [0, 0], sizes = [510, 56], strides = [1, 1]} : vector<510x112xf32> to vector<510x56xf32>
    %16 = vector.extract_strided_slice %14 {offsets = [0, 56], sizes = [510, 56], strides = [1, 1]} : vector<510x112xf32> to vector<510x56xf32>
    %17 = arith.maximumf %15, %16 : vector<510x56xf32>
    %c0_10 = arith.constant 0 : index
    %c0_11 = arith.constant 0 : index
    %18 = vector.load %arg3[%c0_10, %c0_11] : memref<1x56xf32, #tpu.memory_space<vmem>>, vector<1x56xf32>
    %19 = vector.broadcast %18 : vector<1x56xf32> to vector<510x56xf32>
    %20 = arith.addf %17, %19 : vector<510x56xf32>
    %cst_12 = arith.constant 0.000000e+00 : f32
    %21 = vector.broadcast %cst_12 : f32 to vector<510x56xf32>
    %22 = arith.maximumf %20, %21 : vector<510x56xf32>
    %c0_13 = arith.constant 0 : index
    %c0_14 = arith.constant 0 : index
    %23 = vector.load %arg11[%c0_13, %c0_14] : memref<512x56xf32, #tpu.memory_space<vmem>>, vector<510x56xf32>
    tpu.vector_store %arg11[%c0_13, %c0_14], %22 {strides = array<i32>} : memref<512x56xf32, #tpu.memory_space<vmem>>, vector<510x56xf32>,
    %cst_15 = arith.constant 0.000000e+00 : f32
    %24 = vector.broadcast %cst_15 : f32 to vector<2x56xf32>
    %c510 = arith.constant 510 : index
    %c0_16 = arith.constant 0 : index
    %25 = vector.load %arg11[%c510, %c0_16] : memref<512x56xf32, #tpu.memory_space<vmem>>, vector<2x56xf32>
    tpu.vector_store %arg11[%c510, %c0_16], %24 {strides = array<i32>} : memref<512x56xf32, #tpu.memory_space<vmem>>, vector<2x56xf32>,
    %c0_17 = arith.constant 0 : index
    %c0_18 = arith.constant 0 : index
    %26 = tpu.strided_load %arg11[%c0_17, %c0_18] {strides = array<i32: 2, 1>} : memref<512x56xf32, #tpu.memory_space<vmem>>, vector<256x56xf32>
    %c1_19 = arith.constant 1 : index
    %c0_20 = arith.constant 0 : index
    %27 = tpu.strided_load %arg11[%c1_19, %c0_20] {strides = array<i32: 2, 1>} : memref<512x56xf32, #tpu.memory_space<vmem>>, vector<256x56xf32>
    %28 = arith.maximumf %26, %27 : vector<256x56xf32>
    %29 = vector.extract_strided_slice %28 {offsets = [0, 0], sizes = [254, 56], strides = [1, 1]} : vector<256x56xf32> to vector<254x56xf32>
    %c0_21 = arith.constant 0 : index
    %c0_22 = arith.constant 0 : index
    %c0_23 = arith.constant 0 : index
    %30 = vector.load %arg4[%c0_21, %c0_22, %c0_23] : memref<3x56x32xf32, #tpu.memory_space<vmem>>, vector<1x56x32xf32>
    %31 = vector.shape_cast %30 : vector<1x56x32xf32> to vector<56x32xf32>
    %cst_24 = arith.constant dense<0.000000e+00> : vector<254x32xf32>
    %32 = tpu.matmul %29, %31, %cst_24 {dimension_numbers = #tpu.dot_dimension_numbers<[1], [0], [0], [1], [0, 0, 1, 1], [], []>} : vector<254x56xf32>, vector<56x32xf32>, vector<254x32xf32> -> vector<254x32xf32>
    %33 = vector.extract_strided_slice %28 {offsets = [1, 0], sizes = [254, 56], strides = [1, 1]} : vector<256x56xf32> to vector<254x56xf32>
    %c1_25 = arith.constant 1 : index
    %c0_26 = arith.constant 0 : index
    %c0_27 = arith.constant 0 : index
    %34 = vector.load %arg4[%c1_25, %c0_26, %c0_27] : memref<3x56x32xf32, #tpu.memory_space<vmem>>, vector<1x56x32xf32>
    %35 = vector.shape_cast %34 : vector<1x56x32xf32> to vector<56x32xf32>
    %cst_28 = arith.constant dense<0.000000e+00> : vector<254x32xf32>
    %36 = tpu.matmul %33, %35, %cst_28 {dimension_numbers = #tpu.dot_dimension_numbers<[1], [0], [0], [1], [0, 0, 1, 1], [], []>} : vector<254x56xf32>, vector<56x32xf32>, vector<254x32xf32> -> vector<254x32xf32>
    %37 = arith.addf %32, %36 : vector<254x32xf32>
    %38 = vector.extract_strided_slice %28 {offsets = [2, 0], sizes = [254, 56], strides = [1, 1]} : vector<256x56xf32> to vector<254x56xf32>
    %c2_29 = arith.constant 2 : index
    %c0_30 = arith.constant 0 : index
    %c0_31 = arith.constant 0 : index
    %39 = vector.load %arg4[%c2_29, %c0_30, %c0_31] : memref<3x56x32xf32, #tpu.memory_space<vmem>>, vector<1x56x32xf32>
    %40 = vector.shape_cast %39 : vector<1x56x32xf32> to vector<56x32xf32>
    %cst_32 = arith.constant dense<0.000000e+00> : vector<254x32xf32>
    %41 = tpu.matmul %38, %40, %cst_32 {dimension_numbers = #tpu.dot_dimension_numbers<[1], [0], [0], [1], [0, 0, 1, 1], [], []>} : vector<254x56xf32>, vector<56x32xf32>, vector<254x32xf32> -> vector<254x32xf32>
    %42 = arith.addf %37, %41 : vector<254x32xf32>
    %43 = vector.extract_strided_slice %42 {offsets = [0, 0], sizes = [254, 16], strides = [1, 1]} : vector<254x32xf32> to vector<254x16xf32>
    %44 = vector.extract_strided_slice %42 {offsets = [0, 16], sizes = [254, 16], strides = [1, 1]} : vector<254x32xf32> to vector<254x16xf32>
    %45 = arith.maximumf %43, %44 : vector<254x16xf32>
    %c0_33 = arith.constant 0 : index
    %c0_34 = arith.constant 0 : index
    %46 = vector.load %arg5[%c0_33, %c0_34] : memref<1x16xf32, #tpu.memory_space<vmem>>, vector<1x16xf32>
    %47 = vector.broadcast %46 : vector<1x16xf32> to vector<254x16xf32>
    %48 = arith.addf %45, %47 : vector<254x16xf32>
    %cst_35 = arith.constant 0.000000e+00 : f32
    %49 = vector.broadcast %cst_35 : f32 to vector<254x16xf32>
    %50 = arith.maximumf %48, %49 : vector<254x16xf32>
    %c0_36 = arith.constant 0 : index
    %c0_37 = arith.constant 0 : index
    %51 = vector.load %arg12[%c0_36, %c0_37] : memref<256x16xf32, #tpu.memory_space<vmem>>, vector<254x16xf32>
    tpu.vector_store %arg12[%c0_36, %c0_37], %50 {strides = array<i32>} : memref<256x16xf32, #tpu.memory_space<vmem>>, vector<254x16xf32>,
    %cst_38 = arith.constant 0.000000e+00 : f32
    %52 = vector.broadcast %cst_38 : f32 to vector<2x16xf32>
    %c254 = arith.constant 254 : index
    %c0_39 = arith.constant 0 : index
    %53 = vector.load %arg12[%c254, %c0_39] : memref<256x16xf32, #tpu.memory_space<vmem>>, vector<2x16xf32>
    tpu.vector_store %arg12[%c254, %c0_39], %52 {strides = array<i32>} : memref<256x16xf32, #tpu.memory_space<vmem>>, vector<2x16xf32>,
    %c0_40 = arith.constant 0 : index
    %c0_41 = arith.constant 0 : index
    %54 = tpu.strided_load %arg12[%c0_40, %c0_41] {strides = array<i32: 8, 1>} : memref<256x16xf32, #tpu.memory_space<vmem>>, vector<32x16xf32>
    %c1_42 = arith.constant 1 : index
    %c0_43 = arith.constant 0 : index
    %55 = tpu.strided_load %arg12[%c1_42, %c0_43] {strides = array<i32: 8, 1>} : memref<256x16xf32, #tpu.memory_space<vmem>>, vector<32x16xf32>
    %56 = arith.maximumf %54, %55 : vector<32x16xf32>
    %c0_44 = arith.constant 0 : index
    %c0_45 = arith.constant 0 : index
    %57 = vector.load %arg6[%c0_44, %c0_45] : memref<32x32xf32, #tpu.memory_space<vmem>>, vector<16x32xf32>
    %cst_46 = arith.constant dense<0.000000e+00> : vector<32x32xf32>
    %58 = tpu.matmul %56, %57, %cst_46 {dimension_numbers = #tpu.dot_dimension_numbers<[1], [0], [0], [1], [0, 0, 1, 1], [], []>} : vector<32x16xf32>, vector<16x32xf32>, vector<32x32xf32> -> vector<32x32xf32>
    %c2_47 = arith.constant 2 : index
    %c0_48 = arith.constant 0 : index
    %59 = tpu.strided_load %arg12[%c2_47, %c0_48] {strides = array<i32: 8, 1>} : memref<256x16xf32, #tpu.memory_space<vmem>>, vector<32x16xf32>
    %c3 = arith.constant 3 : index
    %c0_49 = arith.constant 0 : index
    %60 = tpu.strided_load %arg12[%c3, %c0_49] {strides = array<i32: 8, 1>} : memref<256x16xf32, #tpu.memory_space<vmem>>, vector<32x16xf32>
    %61 = arith.maximumf %59, %60 : vector<32x16xf32>
    %c16 = arith.constant 16 : index
    %c0_50 = arith.constant 0 : index
    %62 = vector.load %arg6[%c16, %c0_50] : memref<32x32xf32, #tpu.memory_space<vmem>>, vector<16x32xf32>
    %cst_51 = arith.constant dense<0.000000e+00> : vector<32x32xf32>
    %63 = tpu.matmul %61, %62, %cst_51 {dimension_numbers = #tpu.dot_dimension_numbers<[1], [0], [0], [1], [0, 0, 1, 1], [], []>} : vector<32x16xf32>, vector<16x32xf32>, vector<32x32xf32> -> vector<32x32xf32>
    %64 = arith.addf %58, %63 : vector<32x32xf32>
    %c0_52 = arith.constant 0 : index
    %c0_53 = arith.constant 0 : index
    %65 = vector.load %arg7[%c0_52, %c0_53] : memref<1x32xf32, #tpu.memory_space<vmem>>, vector<1x32xf32>
    %66 = vector.broadcast %65 : vector<1x32xf32> to vector<32x32xf32>
    %67 = arith.addf %64, %66 : vector<32x32xf32>
    %cst_54 = arith.constant 0.000000e+00 : f32
    %68 = vector.broadcast %cst_54 : f32 to vector<32x32xf32>
    %69 = arith.maximumf %67, %68 : vector<32x32xf32>
    %c0_55 = arith.constant 0 : index
    %c0_56 = arith.constant 0 : index
    %70 = vector.load %arg8[%c0_55, %c0_56] : memref<32x128xf32, #tpu.memory_space<vmem>>, vector<32x128xf32>
    %cst_57 = arith.constant dense<0.000000e+00> : vector<32x128xf32>
    %71 = tpu.matmul %69, %70, %cst_57 {dimension_numbers = #tpu.dot_dimension_numbers<[1], [0], [0], [1], [0, 0, 1, 1], [], []>} : vector<32x32xf32>, vector<32x128xf32>, vector<32x128xf32> -> vector<32x128xf32>
    %c0_58 = arith.constant 0 : index
    %c0_59 = arith.constant 0 : index
    %72 = vector.load %arg9[%c0_58, %c0_59] : memref<1x128xf32, #tpu.memory_space<vmem>>, vector<1x128xf32>
    %73 = vector.broadcast %72 : vector<1x128xf32> to vector<32x128xf32>
    %74 = arith.addf %71, %73 : vector<32x128xf32>
    %c0_60 = arith.constant 0 : index
    %c0_61 = arith.constant 0 : index
    %75 = vector.load %arg10[%c0_60, %c0_61] : memref<32x128xf32, #tpu.memory_space<vmem>>, vector<32x128xf32>
    tpu.vector_store %arg10[%c0_60, %c0_61], %74 {strides = array<i32>} : memref<32x128xf32, #tpu.memory_space<vmem>>, vector<32x128xf32>,
    return
  }
  func.func @transform_0(%arg0: i32) -> (i32, i32) {
    %c0_i32 = arith.constant 0 : i32
    %c0_i32_0 = arith.constant 0 : i32
    return %arg0, %c0_i32 : i32, i32
  }
  func.func @transform_1(%arg0: i32) -> (i32, i32, i32) {
    %c0_i32 = arith.constant 0 : i32
    %c0_i32_0 = arith.constant 0 : i32
    %c0_i32_1 = arith.constant 0 : i32
    %c0_i32_2 = arith.constant 0 : i32
    return %c0_i32, %c0_i32_0, %c0_i32_1 : i32, i32, i32
  }
  func.func @transform_2(%arg0: i32) -> (i32, i32) {
    %c0_i32 = arith.constant 0 : i32
    %c0_i32_0 = arith.constant 0 : i32
    %c0_i32_1 = arith.constant 0 : i32
    return %c0_i32, %c0_i32_0 : i32, i32
  }
  func.func @transform_3(%arg0: i32) -> (i32, i32, i32) {
    %c0_i32 = arith.constant 0 : i32
    %c0_i32_0 = arith.constant 0 : i32
    %c0_i32_1 = arith.constant 0 : i32
    %c0_i32_2 = arith.constant 0 : i32
    return %c0_i32, %c0_i32_0, %c0_i32_1 : i32, i32, i32
  }
  func.func @transform_4(%arg0: i32) -> (i32, i32) {
    %c0_i32 = arith.constant 0 : i32
    %c0_i32_0 = arith.constant 0 : i32
    %c0_i32_1 = arith.constant 0 : i32
    return %c0_i32, %c0_i32_0 : i32, i32
  }
  func.func @transform_5(%arg0: i32) -> (i32, i32) {
    %c0_i32 = arith.constant 0 : i32
    %c0_i32_0 = arith.constant 0 : i32
    %c0_i32_1 = arith.constant 0 : i32
    return %c0_i32, %c0_i32_0 : i32, i32
  }
  func.func @transform_6(%arg0: i32) -> (i32, i32) {
    %c0_i32 = arith.constant 0 : i32
    %c0_i32_0 = arith.constant 0 : i32
    %c0_i32_1 = arith.constant 0 : i32
    return %c0_i32, %c0_i32_0 : i32, i32
  }
  func.func @transform_7(%arg0: i32) -> (i32, i32) {
    %c0_i32 = arith.constant 0 : i32
    %c0_i32_0 = arith.constant 0 : i32
    %c0_i32_1 = arith.constant 0 : i32
    return %c0_i32, %c0_i32_0 : i32, i32
  }
  func.func @transform_8(%arg0: i32) -> (i32, i32) {
    %c0_i32 = arith.constant 0 : i32
    %c0_i32_0 = arith.constant 0 : i32
    %c0_i32_1 = arith.constant 0 : i32
    return %c0_i32, %c0_i32_0 : i32, i32
  }
  func.func @transform_9(%arg0: i32) -> (i32, i32) {
    %c0_i32 = arith.constant 0 : i32
    %c0_i32_0 = arith.constant 0 : i32
    return %arg0, %c0_i32 : i32, i32
  }
}

</mosaic_0001>

<bundles_post_ra>
// kernel: fwd.1
= control target key start
LH: loop header
LB: loop body
LE: loop exit
PB: predicated region body
PF: predicated region fallthrough
CT: control target
= control target key end

     0   :  { %s4242_s30 = smov 0   ;;  %s6345_s0 = inlined_call_operand.vmem [shape: f32[1024,64], index: 0, kind: input, shape index: {}]   ;;  %s6346_s1 = inlined_call_operand.vmem [shape: f32[3,64,112], index: 1, kind: input, shape index: {}]   ;;  %s6347_s2 = inlined_call_operand.vmem [shape: f32[1,56], index: 2, kind: input, shape index: {}]   ;;  %s6348_s3 = inlined_call_operand.vmem [shape: f32[3,56,32], index: 3, kind: input, shape index: {}]   ;;  %s6349_s4 = inlined_call_operand.vmem [shape: f32[1,16], index: 4, kind: input, shape index: {}]   ;;  %s6350_s5 = inlined_call_operand.vmem [shape: f32[32,32], index: 5, kind: input, shape index: {}]   ;;  %s6351_s6 = inlined_call_operand.vmem [shape: f32[1,32], index: 6, kind: input, shape index: {}]   ;;  %s6352_s7 = inlined_call_operand.vmem [shape: f32[32,128], index: 7, kind: input, shape index: {}]   ;;  %s6353_s8 = inlined_call_operand.vmem [shape: f32[1,128], index: 8, kind: input, shape index: {}]   ;;  %s6354_s9 = inlined_call_operand.vmem [shape: f32[64,128], index: 9, kind: output, shape index: {}]  }
   0x1 LB: > { %s3788_s10 = sadd.s32 4294967295, %s4187_s30   ;;  %p3792_p0 = scmp.ge.s32.totalorder %s4187_s30, 1  ;;  %s4187_s30 = sphi %s4242_s30, %s19_s30  }
   0x2   : > { %p288_p1 = scmp.lt.s32.totalorder %s4187_s30, 3 }
   0x4   : > { %p289_p2 = pnand %p3792_p0, %p288_p1 }
   0x6   : > { %292 = sbr.rel (%p289_p2) target bundleno = 1892 (0x764), region = 56 }
   0xb   : > { %v3804_v0 = vld [vmem:[%s6346_s1 + $0x78] sm:$0xff]  ;;  %v3803_v1 = vld [vmem:[%s6346_s1 + $0x70] sm:$0xff]  ;;  %s3793_s15 = sshll.u32 %s3788_s10, 6  ;;  %v3802_v2 = vld [vmem:[%s6346_s1 + $0x68] sm:$0xff]  ;;  %vm481_vm0 = vcmask 1046528   ;;  %vm609_vm1 = vcmask 523264  }
   0xc   : > { %4129 = vmatpush.msra.mxu1 %v3804_v0  ;;  %4130 = vmatpush.msra.mxu2 %v3804_v0  ;;  %p325_p3 = scmp.lt.s32.totalorder %s3793_s15, 127  ;;  %v3801_v3 = vld [vmem:[%s6346_s1 + $0x60] sm:$0xff]  ;;  %v3800_v4 = vld [vmem:[%s6346_s1 + $0x58] sm:$0xff]  ;;  %v3799_v8 = vld [vmem:[%s6346_s1 + $0x50] sm:$0xff]  ;;  %vm1293_vm2 = vcmask 1045504   ;;  %s4189_s28 = smov 72  }
   0xd   : > { %746 = vmatpush.msra.mxu0 %v3804_v0  ;;  %v3798_v14 = vld [vmem:[%s6346_s1 + $0x48] sm:$0xff]  ;;  %v3797_v15 = vld [vmem:[%s6346_s1 + $0x40] sm:$0xff]  ;;  %v407_v17 = vld [vmem:[%s6346_s1 + $0x38] sm:$0xff]  ;;  %vm2274_vm3 = vcmask 457728   ;;  %vm2340_vm4 = vcmask 451584   ;;  %vm2338_vm5 = vcmask 455680  }
   0xe   : > { %4131 = vmatpush.msra.mxu1 %v3803_v1  ;;  %4132 = vmatpush.msra.mxu2 %v3803_v1  ;;  %s6467_s15 = smov (!%p325_p3, %s3793_s15), 127  ;;  %v3940_v19 = vld [vmem:[%s6346_s1 + $0xb8] sm:$0xff]  ;;  %v406_v22 = vld [vmem:[%s6346_s1 + $0x30] sm:$0xff]  ;;  %v405_v26 = vld [vmem:[%s6346_s1 + $0x28] sm:$0xff]  ;;  %s4191_s21 = smov 112   ;;  %vm3473_vm6 = vcmask 130048  }
   0xf   : > { %747 = vmatpush.msra.mxu0 %v3803_v1  ;;  %s3794_s20 = sshll.u32 %s6467_s15, 3  ;;  %v3939_v23 = vld [vmem:[%s6346_s1 + $0xb0] sm:$0xff]  ;;  %v3938_v27 = vld [vmem:[%s6346_s1 + $0xa8] sm:$0xff]  ;;  %v404_v28 = vld [vmem:[%s6346_s1 + $0x20] sm:$0xff]  ;;  %vm3686_vm7 = vcmask 261120   ;;  %vm3505_vm8 = vcmask 128000  }
  0x10   : > { %4133 = vmatpush.msra.mxu1 %v3802_v2  ;;  %4134 = vmatpush.msra.mxu2 %v3802_v2  ;;  %s4270_s25 = scalar_lea.vmem %s6345_s0, %s3794_s20  ;;  %v3937_v29 = vld [vmem:[%s6346_s1 + $0xa0] sm:$0xff]  ;;  %v403_v34 = vld [vmem:[%s6346_s1 + $0x18] sm:$0xff]  ;;  %v3935_v36 = vld [vmem:[%s6346_s1 + $0x90] sm:$0xff]  ;;  %s3795_s20 = sshll.u32 %s3788_s10, 2 }
  0x11   : > { %748 = vmatpush.msra.mxu0 %v3802_v2  ;;  %v4273_v5 = vld [vmem:[%s4270_s25 + $0x198] sm:$0xff]  ;;  %v388_v6 = vld [vmem:[%s4270_s25 + $0x1a0] sm:$0xff]  ;;  %v4277_v7 = vld [vmem:[%s4270_s25 + $0x1d0] sm:$0xff]  ;;  %p331_p4 = scmp.lt.s32.totalorder %s3795_s20, 7 }
  0x12   : > { %4135 = vmatpush.msra.mxu1 %v3801_v3  ;;  %4136 = vmatpush.msra.mxu2 %v3801_v3  ;;  %v395_v9 = vld [vmem:[%s4270_s25 + $0x1d8] sm:$0xff]  ;;  %v6355_v10 = vrot.slane %v4273_v5, 1  ;;  %v585_v11 = vrot.slane %v388_v6, 1  ;;  %v597_v12 = vrot.slane %v4277_v7, 1  ;;  %v389_v20 = vld [vmem:[%s4270_s25 + $0x1a8] sm:$0xff]  ;;  %v396_v21 = vld [vmem:[%s4270_s25 + $0x1e0] sm:$0xff] }
  0x13   : > { %749 = vmatpush.msra.mxu0 %v3801_v3  ;;  %v599_v13 = vrot.slane %v395_v9, 1  ;;  %v587_v24 = vrot.slane %v389_v20, 1  ;;  %v601_v25 = vrot.slane %v396_v21, 1  ;;  %v390_v32 = vld [vmem:[%s4270_s25 + $0x1b0] sm:$0xff]  ;;  %v397_v33 = vld [vmem:[%s4270_s25 + $0x1e8] sm:$0xff]  ;;  %v3936_v35 = vld [vmem:[%s6346_s1 + $0x98] sm:$0xff] }
  0x14   : > { %4137 = vmatpush.msra.mxu1 %v3800_v4  ;;  %4138 = vmatpush.msra.mxu2 %v3800_v4  ;;  %v586_v16 = vsel %vm481_vm0, %v6355_v10, %v585_v11  ;;  %v402_v37 = vld [vmem:[%s6346_s1 + $0x10] sm:$0xff]  ;;  %v589_v38 = vrot.slane %v390_v32, 1  ;;  %v603_v39 = vrot.slane %v397_v33, 1  ;;  %v3934_v40 = vld [vmem:[%s6346_s1 + $0x88] sm:$0xff]  ;;  %v3933_v42 = vld [vmem:[%s6346_s1 + $0x80] sm:$0xff]  ;;  %s6469_s20 = smov (!%p331_p4, %s3795_s20), 7 }
  0x15   : > { %750 = vmatpush.msra.mxu0 %v3800_v4  ;;  %v600_v18 = vsel %vm481_vm0, %v597_v12, %v599_v13  ;;  %v588_v30 = vsel %vm481_vm0, %v585_v11, %v587_v24  ;;  %v602_v31 = vsel %vm481_vm0, %v599_v13, %v601_v25  ;;  %v401_v41 = vld [vmem:[%s6346_s1 + $0x8] sm:$0xff]  ;;  %v391_v45 = vld [vmem:[%s4270_s25 + $0x1b8] sm:$0xff]  ;;  %v398_v46 = vld [vmem:[%s4270_s25 + $0x1f0] sm:$0xff] }
  0x16   : > { %4139 = vmatpush.msra.mxu1 %v3799_v8  ;;  %4140 = vmatpush.msra.mxu2 %v3799_v8  ;;  %v590_v43 = vsel %vm481_vm0, %v587_v24, %v589_v38  ;;  %v604_v44 = vsel %vm481_vm0, %v601_v25, %v603_v39  ;;  %v400_v47 = vld [vmem:[%s6346_s1] sm:$0xff]  ;;  %v337_v49 = vld [vmem:[%s4270_s25 + $0x8] sm:$0xff]  ;;  %v591_v50 = vrot.slane %v391_v45, 1  ;;  %v605_v51 = vrot.slane %v398_v46, 1  ;;  %v399_v58 = vld [vmem:[%s4270_s25 + $0x1f8] sm:$0xff] }
  0x17   : > { %751 = vmatpush.msra.mxu0 %v3799_v8  ;;  %v336_v48 = vld [vmem:[%s4270_s25] sm:$0xff]  ;;  %v483_v53 = vrot.slane %v337_v49, 1  ;;  %v338_v59 = vld [vmem:[%s4270_s25 + $0x10] sm:$0xff]  ;;  %v607_v61 = vrot.slane %v399_v58, 1  ;;  %v393_v2 = vld [vmem:[%s4270_s25 + $0x1c8] sm:$0xff] }
  0x18   : > { %4141 = vmatpush.msra.mxu1 %v3798_v14  ;;  %4142 = vmatpush.msra.mxu2 %v3798_v14  ;;  %v482_v52 = vrot.slane %v336_v48, 1  ;;  %v592_v55 = vsel %vm481_vm0, %v589_v38, %v591_v50  ;;  %v606_v56 = vsel %vm481_vm0, %v603_v39, %v605_v51  ;;  %v392_v57 = vld [vmem:[%s4270_s25 + $0x1c0] sm:$0xff]  ;;  %v485_v62 = vrot.slane %v338_v59, 1  ;;  %v339_v3 = vld [vmem:[%s4270_s25 + $0x18] sm:$0xff]  ;;  %v342_v7 = vld [vmem:[%s4270_s25 + $0x30] sm:$0xff] }
  0x19   : > { %752 = vmatpush.msra.mxu0 %v3798_v14  ;;  %v593_v60 = vrot.slane %v392_v57, 1  ;;  %v608_v1 = vsel %vm481_vm0, %v605_v51, %v607_v61  ;;  %v595_v4 = vrot.slane %v393_v2, 1  ;;  %v487_v6 = vrot.slane %v339_v3, 1  ;;  %v340_v11 = vld [vmem:[%s4270_s25 + $0x20] sm:$0xff]  ;;  %v349_v58 = vld [vmem:[%s4270_s25 + $0x68] sm:$0xff] }
  0x1a   : > { %4143 = vmatpush.msra.mxu1 %v3797_v15  ;;  %4144 = vmatpush.msra.mxu2 %v3797_v15  ;;  %v484_v54 = vsel %vm481_vm0, %v482_v52, %v483_v53  ;;  %v486_v63 = vsel %vm481_vm0, %v483_v53, %v485_v62  ;;  %v1294_v13 = vrot.slane %v336_v48, 2  ;;  %v1295_v14 = vrot.slane %v337_v49, 2  ;;  %v344_v32 = vld [vmem:[%s4270_s25 + $0x40] sm:$0xff] }
  0x1b   : > { %3856 = vmatmul.msk.f32.vlgmr.msra.gmra.mxu1 %vm609_vm1, %v586_v16  ;;  %3863 = vmatmul.msk.f32.vlgmr.msra.gmra.mxu2 %vm609_vm1, %v600_v18  ;;  %v594_v0 = vsel %vm481_vm0, %v591_v50, %v593_v60  ;;  %v488_v8 = vsel %vm481_vm0, %v485_v62, %v487_v6  ;;  %v596_v9 = vsel %vm481_vm0, %v593_v60, %v595_v4  ;;  %v1297_v20 = vrot.slane %v338_v59, 2  ;;  %v348_v53 = vld [vmem:[%s4270_s25 + $0x60] sm:$0xff] }
  0x1c   : > { %1083 = vmatpush.msrb.mxu1 %v407_v17  ;;  %1557 = vmatpush.msrb.mxu2 %v3940_v19  ;;  %v598_v17 = vsel %vm481_vm0, %v595_v4, %v597_v12  ;;  %v1296_v18 = vsel %vm1293_vm2, %v1294_v13, %v1295_v14  ;;  %v341_v19 = vld [vmem:[%s4270_s25 + $0x28] sm:$0xff]  ;;  %v1299_v12 = vrot.slane %v339_v3, 2  ;;  %v493_v24 = vrot.slane %v342_v7, 1 }
  0x1d   : > { %753 = vmatpush.msra.mxu0 %v3797_v15  ;;  %v489_v15 = vrot.slane %v340_v11, 1  ;;  %v491_v21 = vrot.slane %v341_v19, 1  ;;  %v1303_v33 = vrot.slane %v341_v19, 2  ;;  %v1305_v38 = vrot.slane %v342_v7, 2 }
  0x1e   : > { %1084 = vmatpush.msrb.mxu1 %v406_v22  ;;  %1558 = vmatpush.msrb.mxu2 %v3939_v23  ;;  %v1298_v23 = vsel %vm1293_vm2, %v1295_v14, %v1297_v20  ;;  %v507_v60 = vrot.slane %v349_v58, 1  ;;  %v1317_v4 = vrot.slane %v348_v53, 2 }
  0x1f   : > { %3805 = vmatmul.msk.f32.vlgmr.msra.gmra.mxu0 %vm609_vm1, %v484_v54  ;;  %v490_v16 = vsel %vm481_vm0, %v487_v6, %v489_v15  ;;  %v492_v22 = vsel %vm481_vm0, %v489_v15, %v491_v21  ;;  %v494_v25 = vsel %vm481_vm0, %v491_v21, %v493_v24  ;;  %v1319_v15 = vrot.slane %v349_v58, 2 }
  0x20   : > { %1085 = vmatpush.msrb.mxu1 %v405_v26  ;;  %1559 = vmatpush.msrb.mxu2 %v3938_v27  ;;  %v1300_v26 = vsel %vm1293_vm2, %v1297_v20, %v1299_v12  ;;  %v343_v27 = vld [vmem:[%s4270_s25 + $0x38] sm:$0xff] }
  0x22   : > { %1086 = vmatpush.msrb.mxu1 %v404_v28  ;;  %1560 = vmatpush.msrb.mxu2 %v3937_v29  ;;  %v1301_v28 = vrot.slane %v340_v11, 2  ;;  %v495_v29 = vrot.slane %v343_v27, 1 }
  0x23   : > { %3857 = vmatmul.msk.f32.gmra.mxu1 %vm609_vm1, %v588_v30  ;;  %3864 = vmatmul.msk.f32.gmra.mxu2 %vm609_vm1, %v602_v31 }
  0x24   : > { %1087 = vmatpush.msrb.mxu1 %v403_v34  ;;  %1561 = vmatpush.msrb.mxu2 %v3936_v35  ;;  %v496_v30 = vsel %vm481_vm0, %v493_v24, %v495_v29  ;;  %v1302_v31 = vsel %vm1293_vm2, %v1299_v12, %v1301_v28  ;;  %v497_v34 = vrot.slane %v344_v32, 1  ;;  %v4479_v12 = vld [vmem:[%s4270_s25 + $0x88] sm:$0xff] }
  0x26   : > { %1562 = vmatpush.msrb.mxu2 %v3935_v36  ;;  %1088 = vmatpush.msrb.mxu1 %v402_v37  ;;  %v498_v35 = vsel %vm481_vm0, %v495_v29, %v497_v34  ;;  %v1304_v36 = vsel %vm1293_vm2, %v1301_v28, %v1303_v33  ;;  %v345_v37 = vld [vmem:[%s4270_s25 + $0x48] sm:$0xff] }
  0x27   : > { %3806 = vmatmul.msk.f32.gmra.mxu0 %vm609_vm1, %v486_v63  ;;  %v499_v39 = vrot.slane %v345_v37, 1  ;;  %v1311_v52 = vrot.slane %v345_v37, 2  ;;  %v350_v63 = vld [vmem:[%s4270_s25 + $0x70] sm:$0xff] }
  0x28   : > { %1563 = vmatpush.msrb.mxu2 %v3934_v40  ;;  %1089 = vmatpush.msrb.mxu1 %v401_v41  ;;  %v1306_v41 = vsel %vm1293_vm2, %v1303_v33, %v1305_v38  ;;  %v509_v2 = vrot.slane %v350_v63, 1 }
  0x29   : > { %v500_v40 = vsel %vm481_vm0, %v497_v34, %v499_v39 }
  0x2a   : > { %1564 = vmatpush.msrb.mxu2 %v3933_v42  ;;  %1090 = vmatpush.msrb.mxu1 %v400_v47  ;;  %v1307_v42 = vrot.slane %v343_v27, 2  ;;  %v1309_v47 = vrot.slane %v344_v32, 2 }
  0x2b   : > { %3858 = vmatmul.msk.f32.gmra.mxu1 %vm609_vm1, %v590_v43  ;;  %3865 = vmatmul.msk.f32.gmra.mxu2 %vm609_vm1, %v604_v44  ;;  %v346_v43 = vld [vmem:[%s4270_s25 + $0x50] sm:$0xff] }
  0x2c   : > { %v1308_v44 = vsel %vm1293_vm2, %v1305_v38, %v1307_v42  ;;  %v501_v45 = vrot.slane %v346_v43, 1  ;;  %v1312_v54 = vsel %vm1293_vm2, %v1309_v47, %v1311_v52  ;;  %v1313_v57 = vrot.slane %v346_v43, 2 }
  0x2e   : > { %v502_v46 = vsel %vm481_vm0, %v499_v39, %v501_v45  ;;  %v4505_v39 = vld [vmem:[%s4270_s25 + $0x98] sm:$0xff] }
  0x2f   : > { %3807 = vmatmul.msk.f32.gmra.mxu0 %vm609_vm1, %v488_v8  ;;  %v351_v8 = vld [vmem:[%s4270_s25 + $0x78] sm:$0xff] }
  0x30   : > { %v511_v13 = vrot.slane %v351_v8, 1  ;;  %v1323_v28 = vrot.slane %v351_v8, 2 }
  0x32   : > { %v512_v14 = vsel %vm481_vm0, %v509_v2, %v511_v13 }
  0x33   : > { %3859 = vmatmul.msk.f32.gmra.mxu1 %vm609_vm1, %v592_v55  ;;  %3866 = vmatmul.msk.f32.gmra.mxu2 %vm609_vm1, %v606_v56  ;;  %v505_v55 = vrot.slane %v348_v53, 1 }
  0x37   : > { %3808 = vmatmul.msk.f32.gmra.mxu0 %vm609_vm1, %v490_v16 }
  0x3b   : > { %3860 = vmatmul.msk.f32.gmra.mxu1 %vm609_vm1, %v594_v0  ;;  %3867 = vmatmul.msk.f32.gmra.mxu2 %vm609_vm1, %v608_v1 }
  0x3f   : > { %3809 = vmatmul.msk.f32.gmra.mxu0 %vm609_vm1, %v492_v22  ;;  %v1321_v22 = vrot.slane %v350_v63, 2 }
  0x41   : > { %v1324_v33 = vsel %vm1293_vm2, %v1321_v22, %v1323_v28 }
  0x43   : > { %3861 = vmatmul.msk.f32.gmra.mxu1 %vm609_vm1, %v596_v9  ;;  %3868 = vmatmul.msk.f32.gmra.mxu2 %vm609_vm1, %v607_v61  ;;  %v508_v61 = vsel %vm481_vm0, %v505_v55, %v507_v60 }
  0x47   : > { %3810 = vmatmul.msk.f32.gmra.mxu0 %vm609_vm1, %v494_v25  ;;  %v1322_v25 = vsel %vm1293_vm2, %v1319_v15, %v1321_v22 }
  0x4b   : > { %3862 = vmatmul.msk.f32.gmra.mxu1 %vm609_vm1, %v598_v17  ;;  %3941 = vmatmul.msk.f32.vlgmr.msrb.gmra.mxu2 %vm609_vm1, %v1296_v18  ;;  %v352_v17 = vld [vmem:[%s4270_s25 + $0x80] sm:$0xff] }
  0x4c   : > { %v513_v20 = vrot.slane %v352_v17, 1 }
  0x4e   : > { %v514_v21 = vsel %vm481_vm0, %v511_v13, %v513_v20 }
  0x4f   : > { %3811 = vmatmul.msk.f32.gmra.mxu0 %vm609_vm1, %v496_v30 }
  0x53   : > { %3869 = vmatmul.msk.f32.vlgmr.msrb.gmra.mxu1 %vm609_vm1, %v336_v48  ;;  %3942 = vmatmul.msk.f32.gmra.mxu2 %vm609_vm1, %v1298_v23  ;;  %v347_v48 = vld [vmem:[%s4270_s25 + $0x58] sm:$0xff] }
  0x54   : > { %v503_v50 = vrot.slane %v347_v48, 1  ;;  %v1315_v62 = vrot.slane %v347_v48, 2 }
  0x56   : > { %v504_v51 = vsel %vm481_vm0, %v501_v45, %v503_v50  ;;  %v506_v56 = vsel %vm481_vm0, %v503_v50, %v505_v55  ;;  %v1316_v1 = vsel %vm1293_vm2, %v1313_v57, %v1315_v62  ;;  %v4531_v55 = vld [vmem:[%s4270_s25 + $0xa8] sm:$0xff] }
  0x57   : > { %3812 = vmatmul.msk.f32.gmra.mxu0 %vm609_vm1, %v498_v35 }
  0x5b   : > { %3870 = vmatmul.msk.f32.gmra.mxu1 %vm609_vm1, %v337_v49  ;;  %3943 = vmatmul.msk.f32.gmra.mxu2 %vm609_vm1, %v1300_v26  ;;  %v1310_v49 = vsel %vm1293_vm2, %v1307_v42, %v1309_v47  ;;  %v515_v26 = vrot.slane %v4479_v12, 1  ;;  %v519_v42 = vrot.slane %v4505_v39, 1  ;;  %v4519_v47 = vld [vmem:[%s4270_s25 + $0xa0] sm:$0xff] }
  0x5c   : > { %v521_v50 = vrot.slane %v4519_v47, 1 }
  0x5f   : > { %3813 = vmatmul.msk.f32.gmra.mxu0 %vm609_vm1, %v500_v40 }
  0x63   : > { %3871 = vmatmul.msk.f32.gmra.mxu1 %vm609_vm1, %v338_v59  ;;  %3944 = vmatmul.msk.f32.gmra.mxu2 %vm609_vm1, %v1302_v31  ;;  %v1314_v59 = vsel %vm1293_vm2, %v1311_v52, %v1313_v57  ;;  %v4492_v31 = vld [vmem:[%s4270_s25 + $0x90] sm:$0xff] }
  0x64   : > { %v517_v34 = vrot.slane %v4492_v31, 1  ;;  %v1329_v52 = vrot.slane %v4492_v31, 2 }
  0x66   : > { %v518_v35 = vsel %vm481_vm0, %v515_v26, %v517_v34 }
  0x67   : > { %3814 = vmatmul.msk.f32.gmra.mxu0 %vm609_vm1, %v502_v46 }
  0x6b   : > { %3872 = vmatmul.msk.f32.gmra.mxu1 %vm609_vm1, %v339_v3  ;;  %3945 = vmatmul.msk.f32.gmra.mxu2 %vm609_vm1, %v1304_v36  ;;  %v510_v3 = vsel %vm481_vm0, %v507_v60, %v509_v2  ;;  %v1325_v36 = vrot.slane %v352_v17, 2  ;;  %v4543_v2 = vld [vmem:[%s4270_s25 + $0xb0] sm:$0xff] }
  0x6f   : > { %3815 = vmatmul.msk.f32.gmra.mxu0 %vm609_vm1, %v504_v51  ;;  %v522_v51 = vsel %vm481_vm0, %v519_v42, %v521_v50 }
  0x73   : > { %3873 = vmatmul.msk.f32.gmra.mxu1 %vm609_vm1, %v340_v11  ;;  %3946 = vmatmul.msk.f32.gmra.mxu2 %vm609_vm1, %v1306_v41  ;;  %v1318_v11 = vsel %vm1293_vm2, %v1315_v62, %v1317_v4  ;;  %v1326_v41 = vsel %vm1293_vm2, %v1323_v28, %v1325_v36  ;;  %v1331_v62 = vrot.slane %v4505_v39, 2 }
  0x77   : > { %3816 = vmatmul.msk.f32.gmra.mxu0 %vm609_vm1, %v506_v56 }
  0x7b   : > { %3874 = vmatmul.msk.f32.gmra.mxu1 %vm609_vm1, %v341_v19  ;;  %3947 = vmatmul.msk.f32.gmra.mxu2 %vm609_vm1, %v1308_v44  ;;  %v1320_v19 = vsel %vm1293_vm2, %v1317_v4, %v1319_v15  ;;  %v1327_v44 = vrot.slane %v4479_v12, 2  ;;  %v1332_v4 = vsel %vm1293_vm2, %v1329_v52, %v1331_v62  ;;  %v1333_v15 = vrot.slane %v4519_v47, 2 }
  0x7d   : > { %v1330_v57 = vsel %vm1293_vm2, %v1327_v44, %v1329_v52  ;;  %v1334_v22 = vsel %vm1293_vm2, %v1331_v62, %v1333_v15 }
  0x7f   : > { %3817 = vmatmul.msk.f32.gmra.mxu0 %vm609_vm1, %v508_v61 }
  0x83   : > { %3875 = vmatmul.msk.f32.gmra.mxu1 %vm609_vm1, %v342_v7  ;;  %3948 = vmatmul.msk.f32.gmra.mxu2 %vm609_vm1, %v1310_v49  ;;  %v1328_v49 = vsel %vm1293_vm2, %v1325_v36, %v1327_v44  ;;  %v4582_v44 = vld [vmem:[%s4270_s25 + $0xc8] sm:$0xff] }
  0x87   : > { %3818 = vmatmul.msk.f32.gmra.mxu0 %vm609_vm1, %v510_v3 }
  0x8b   : > { %3876 = vmatmul.msk.f32.gmra.mxu1 %vm609_vm1, %v343_v27  ;;  %3949 = vmatmul.msk.f32.gmra.mxu2 %vm609_vm1, %v1312_v54  ;;  %v516_v27 = vsel %vm481_vm0, %v513_v20, %v515_v26  ;;  %v4556_v20 = vld [vmem:[%s4270_s25 + $0xb8] sm:$0xff] }
  0x8f   : > { %3819 = vmatmul.msk.f32.gmra.mxu0 %vm609_vm1, %v512_v14 }
  0x93   : > { %3877 = vmatmul.msk.f32.gmra.mxu1 %vm609_vm1, %v344_v32  ;;  %3950 = vmatmul.msk.f32.gmra.mxu2 %vm609_vm1, %v1314_v59 }
  0x97   : > { %3820 = vmatmul.msk.f32.gmra.mxu0 %vm609_vm1, %v514_v21 }
  0x98   : > { %v4449_v0 = vpop.f32.mrf.mxu1 }
  0x9b   : > { %3878 = vmatmul.msk.f32.gmra.mxu1 %vm609_vm1, %v345_v37  ;;  %3951 = vmatmul.msk.f32.gmra.mxu2 %vm609_vm1, %v1316_v1 }
  0x9c   : > { %v755_v23 = vpop.f32.mrf.mxu0 }
  0x9e   : > { %v4456_v6 = vpop.f32.mrf.mxu2 }
  0x9f   : > { %3821 = vmatmul.msk.f32.gmra.mxu0 %vm609_vm1, %v516_v27  ;;  %v1335_v27 = vrot.slane %v4531_v55, 2 }
  0xa0   : > { %v4459_v9 = vpop.f32.mrf.mxu1 }
  0xa3   : > { %3879 = vmatmul.msk.f32.gmra.mxu1 %vm609_vm1, %v346_v43  ;;  %3952 = vmatmul.msk.f32.gmra.mxu2 %vm609_vm1, %v1318_v11  ;;  %v520_v43 = vsel %vm481_vm0, %v517_v34, %v519_v42  ;;  %v1337_v42 = vrot.slane %v4543_v2, 2 }
  0xa4   : > { %v758_v29 = vpop.f32.mrf.mxu0 }
  0xa6   : > { %v4466_v16 = vpop.f32.mrf.mxu2 }
  0xa7   : > { %3822 = vmatmul.msk.f32.gmra.mxu0 %vm609_vm1, %v518_v35  ;;  %v1336_v35 = vsel %vm1293_vm2, %v1333_v15, %v1335_v27 }
  0xa8   : > { %v4469_v18 = vpop.f32.mrf.mxu1 }
  0xab   : > { %3880 = vmatmul.msk.f32.gmra.mxu1 %vm609_vm1, %v347_v48  ;;  %3953 = vmatmul.msk.f32.gmra.mxu2 %vm609_vm1, %v1320_v19 }
  0xac   : > { %v761_v37 = vpop.f32.mrf.mxu0 }
  0xae   : > { %v4476_v7 = vpop.f32.mrf.mxu2 }
  0xaf   : > { %3823 = vmatmul.msk.f32.gmra.mxu0 %vm609_vm1, %v520_v43 }
  0xb0   : > { %v4481_v24 = vpop.f32.mrf.mxu1 }
  0xb3   : > { %3881 = vmatmul.msk.f32.gmra.mxu1 %vm609_vm1, %v348_v53  ;;  %3954 = vmatmul.msk.f32.gmra.mxu2 %vm609_vm1, %v1322_v25 }
  0xb4   : > { %v764_v45 = vpop.f32.mrf.mxu0 }
  0xb6   : > { %v4489_v30 = vpop.f32.mrf.mxu2 }
  0xb7   : > { %3824 = vmatmul.msk.f32.gmra.mxu0 %vm609_vm1, %v522_v51  ;;  %v531_v51 = vrot.slane %v4582_v44, 1 }
  0xb8   : > { %v4494_v32 = vpop.f32.mrf.mxu1 }
  0xbb   : > { %3882 = vmatmul.msk.f32.gmra.mxu1 %vm609_vm1, %v349_v58  ;;  %3955 = vmatmul.msk.f32.gmra.mxu2 %vm609_vm1, %v1324_v33  ;;  %v523_v58 = vrot.slane %v4531_v55, 1  ;;  %v4569_v33 = vld [vmem:[%s4270_s25 + $0xc0] sm:$0xff] }
  0xbc   : > { %v767_v53 = vpop.f32.mrf.mxu0  ;;  %v529_v36 = vrot.slane %v4569_v33, 1 }
  0xbd   : > { %v524_v60 = vsel %vm481_vm0, %v521_v50, %v523_v58 }
  0xbe   : > { %v4502_v38 = vpop.f32.mrf.mxu2 }
  0xbf   : > { %3825 = vmatmul.msk.f32.gmra.mxu0 %vm609_vm1, %v524_v60 }
  0xc0   : > { %v4507_v40 = vpop.f32.mrf.mxu1 }
  0xc3   : > { %3883 = vmatmul.msk.f32.gmra.mxu1 %vm609_vm1, %v350_v63  ;;  %3956 = vmatmul.msk.f32.gmra.mxu2 %vm609_vm1, %v1326_v41 }
  0xc4   : > { %v770_v63 = vpop.f32.mrf.mxu0 }
  0xc6   : > { %v4516_v46 = vpop.f32.mrf.mxu2 }
  0xc8   : > { %v4521_v48 = vpop.f32.mrf.mxu1 }
  0xcb   : > { %3884 = vmatmul.msk.f32.gmra.mxu1 %vm609_vm1, %v351_v8  ;;  %3957 = vmatmul.msk.f32.gmra.mxu2 %vm609_vm1, %v1328_v49  ;;  %v525_v8 = vrot.slane %v4543_v2, 1 }
  0xcd   : > { %v526_v13 = vsel %vm481_vm0, %v523_v58, %v525_v8  ;;  %v4595_v58 = vld [vmem:[%s4270_s25 + $0xd0] sm:$0xff] }
  0xce   : > { %v1566_v54 = vpop.f32.mrf.mxu2  ;;  %3826 = vmatmul.msk.f32.gmra.mxu0 %vm609_vm1, %v526_v13  ;;  %v533_v60 = vrot.slane %v4595_v58, 1 }
  0xd0   : > { %v1092_v56 = vpop.f32.mrf.mxu1 }
  0xd1   : > { %v1093_v59 = vadd.f32 %v1092_v56, %v755_v23  ;;  %v527_v23 = vrot.slane %v4556_v20, 1  ;;  %v1339_v56 = vrot.slane %v4556_v20, 2 }
  0xd3   : > { %v4536_v61 = vadd.f32 %v1566_v54, %v1093_v59  ;;  %3885 = vmatmul.msk.f32.gmra.mxu1 %vm609_vm1, %v352_v17  ;;  %3958 = vmatmul.msk.f32.gmra.mxu2 %vm609_vm1, %v1330_v57  ;;  %v773_v17 = vpop.f32.mrf.mxu0  ;;  %v528_v26 = vsel %vm481_vm0, %v525_v8, %v527_v23  ;;  %v530_v41 = vsel %vm481_vm0, %v527_v23, %v529_v36  ;;  %v1343_v23 = vrot.slane %v4582_v44, 2 }
  0xd4   : > { %v532_v54 = vsel %vm481_vm0, %v529_v36, %v531_v51 }
  0xd6   : > { %v1569_v1 = vpop.f32.mrf.mxu2  ;;  %3827 = vmatmul.msk.f32.gmra.mxu0 %vm609_vm1, %v528_v26  ;;  %v4621_v26 = vld [vmem:[%s4270_s25 + $0xe0] sm:$0xff] }
  0xd8   : > { %v1095_v3 = vpop.f32.mrf.mxu1 }
  0xd9   : > { %v1096_v11 = vadd.f32 %v1095_v3, %v758_v29  ;;  %v534_v3 = vsel %vm481_vm0, %v531_v51, %v533_v60 }
  0xdb   : > { %v4548_v14 = vadd.f32 %v1569_v1, %v1096_v11  ;;  %3886 = vmatmul.msk.f32.gmra.mxu1 %vm609_vm1, %v4479_v12  ;;  %3959 = vmatmul.msk.f32.gmra.mxu2 %vm609_vm1, %v1332_v4  ;;  %v776_v28 = vpop.f32.mrf.mxu0  ;;  %v1341_v4 = vrot.slane %v4569_v33, 2  ;;  %v4608_v11 = vld [vmem:[%s4270_s25 + $0xd8] sm:$0xff] }
  0xdc   : > { %v535_v15 = vrot.slane %v4608_v11, 1 }
  0xde   : > { %v1572_v19 = vpop.f32.mrf.mxu2  ;;  %3828 = vmatmul.msk.f32.gmra.mxu0 %vm609_vm1, %v530_v41 }
  0xe0   : > { %v1098_v21 = vpop.f32.mrf.mxu1 }
  0xe1   : > { %v1099_v25 = vadd.f32 %v1098_v21, %v761_v37 }
  0xe3   : > { %v4561_v12 = vadd.f32 %v1572_v19, %v1099_v25  ;;  %3887 = vmatmul.msk.f32.gmra.mxu1 %vm609_vm1, %v4492_v31  ;;  %3960 = vmatmul.msk.f32.gmra.mxu2 %vm609_vm1, %v1334_v22  ;;  %v779_v49 = vpop.f32.mrf.mxu0  ;;  %v536_v22 = vsel %vm481_vm0, %v533_v60, %v535_v15 }
  0xe6   : > { %v1575_v29 = vpop.f32.mrf.mxu2  ;;  %3829 = vmatmul.msk.f32.gmra.mxu0 %vm609_vm1, %v532_v54  ;;  %v1347_v54 = vrot.slane %v4608_v11, 2 }
  0xe8   : > { %v1101_v34 = vpop.f32.mrf.mxu1 }
  0xe9   : > { %v1102_v37 = vadd.f32 %v1101_v34, %v764_v45  ;;  %v1338_v45 = vsel %vm1293_vm2, %v1335_v27, %v1337_v42 }
  0xeb   : > { %v4574_v31 = vadd.f32 %v1575_v29, %v1102_v37  ;;  %3888 = vmatmul.msk.f32.gmra.mxu1 %vm609_vm1, %v4505_v39  ;;  %3961 = vmatmul.msk.f32.gmra.mxu2 %vm609_vm1, %v1336_v35  ;;  %v782_v1 = vpop.f32.mrf.mxu0  ;;  %v537_v29 = vrot.slane %v4621_v26, 1  ;;  %v1345_v37 = vrot.slane %v4595_v58, 2 }
  0xed   : > { %v538_v36 = vsel %vm481_vm0, %v535_v15, %v537_v29 }
  0xee   : > { %v1578_v43 = vpop.f32.mrf.mxu2  ;;  %3830 = vmatmul.msk.f32.gmra.mxu0 %vm609_vm1, %v534_v3 }
  0xf0   : > { %v1104_v50 = vpop.f32.mrf.mxu1 }
  0xf1   : > { %v1105_v52 = vadd.f32 %v1104_v50, %v767_v53  ;;  %v1340_v53 = vsel %vm1293_vm2, %v1337_v42, %v1339_v56  ;;  %v4634_v42 = vld [vmem:[%s4270_s25 + $0xe8] sm:$0xff] }
  0xf2   : > { %v539_v50 = vrot.slane %v4634_v42, 1 }
  0xf3   : > { %v4587_v39 = vadd.f32 %v1578_v43, %v1105_v52  ;;  %3889 = vmatmul.msk.f32.gmra.mxu1 %vm609_vm1, %v4519_v47  ;;  %3962 = vmatmul.msk.f32.gmra.mxu2 %vm609_vm1, %v1338_v45  ;;  %v785_v21 = vpop.f32.mrf.mxu0 }
  0xf4   : > { %v540_v52 = vsel %vm481_vm0, %v537_v29, %v539_v50 }
  0xf6   : > { %v1581_v57 = vpop.f32.mrf.mxu2  ;;  %3831 = vmatmul.msk.f32.gmra.mxu0 %vm609_vm1, %v536_v22 }
  0xf8   : > { %v1107_v59 = vpop.f32.mrf.mxu1 }
  0xf9   : > { %v1108_v62 = vadd.f32 %v1107_v59, %v770_v63  ;;  %v1342_v63 = vsel %vm1293_vm2, %v1339_v56, %v1341_v4 }
  0xfb   : > { %v4600_v47 = vadd.f32 %v1581_v57, %v1108_v62  ;;  %3890 = vmatmul.msk.f32.gmra.mxu1 %vm609_vm1, %v4531_v55  ;;  %3963 = vmatmul.msk.f32.gmra.mxu2 %vm609_vm1, %v1340_v53  ;;  %v788_v35 = vpop.f32.mrf.mxu0  ;;  %v4647_v57 = vld [vmem:[%s4270_s25 + $0xf0] sm:$0xff] }
  0xfc   : > { %v541_v53 = vrot.slane %v4647_v57, 1 }
  0xfe   : > { %v1584_v8 = vpop.f32.mrf.mxu2  ;;  %3832 = vmatmul.msk.f32.gmra.mxu0 %vm609_vm1, %v538_v36  ;;  %v542_v3 = vsel %vm481_vm0, %v539_v50, %v541_v53  ;;  %v4686_v50 = vld [vmem:[%s4270_s25 + $0x108] sm:$0xff] }
 0x100   : > { %v1110_v13 = vpop.f32.mrf.mxu1 }
 0x101   : > { %v1111_v19 = vadd.f32 %v1110_v13, %v773_v17  ;;  %v1344_v17 = vsel %vm1293_vm2, %v1341_v4, %v1343_v23  ;;  %v1349_v4 = vrot.slane %v4621_v26, 2  ;;  %v4660_v13 = vld [vmem:[%s4270_s25 + $0xf8] sm:$0xff] }
 0x102   : > { %v543_v15 = vrot.slane %v4660_v13, 1 }
 0x103   : > { %v4613_v55 = vadd.f32 %v1584_v8, %v1111_v19  ;;  %3891 = vmatmul.msk.f32.gmra.mxu1 %vm609_vm1, %v4543_v2  ;;  %3964 = vmatmul.msk.f32.gmra.mxu2 %vm609_vm1, %v1342_v63  ;;  %v791_v51 = vpop.f32.mrf.mxu0 }
 0x106   : > { %v1587_v25 = vpop.f32.mrf.mxu2  ;;  %3833 = vmatmul.msk.f32.gmra.mxu0 %vm609_vm1, %v540_v52  ;;  %v547_v52 = vrot.slane %v4686_v50, 1 }
 0x108   : > { %v1113_v27 = vpop.f32.mrf.mxu1 }
 0x109   : > { %v1114_v34 = vadd.f32 %v1113_v27, %v776_v28  ;;  %v1346_v28 = vsel %vm1293_vm2, %v1343_v23, %v1345_v37  ;;  %v544_v23 = vsel %vm481_vm0, %v541_v53, %v543_v15 }
 0x10b   : > { %v4626_v2 = vadd.f32 %v1587_v25, %v1114_v34  ;;  %3892 = vmatmul.msk.f32.gmra.mxu1 %vm609_vm1, %v4556_v20  ;;  %3965 = vmatmul.msk.f32.gmra.mxu2 %vm609_vm1, %v1344_v17  ;;  %v794_v62 = vpop.f32.mrf.mxu0  ;;  %v1351_v25 = vrot.slane %v4634_v42, 2  ;;  %v4673_v17 = vld [vmem:[%s4270_s25 + $0x100] sm:$0xff] }
 0x10c   : > { %v545_v34 = vrot.slane %v4673_v17, 1 }
 0x10e   : > { %v1590_v41 = vpop.f32.mrf.mxu2  ;;  %3834 = vmatmul.msk.f32.gmra.mxu0 %vm609_vm1, %v542_v3 }
 0x110   : > { %v1116_v43 = vpop.f32.mrf.mxu1 }
 0x111   : > { %v1117_v45 = vadd.f32 %v1116_v43, %v779_v49  ;;  %v1348_v49 = vsel %vm1293_vm2, %v1345_v37, %v1347_v54  ;;  %v1353_v43 = vrot.slane %v4647_v57, 2 }
 0x113   : > { %v4639_v20 = vadd.f32 %v1590_v41, %v1117_v45  ;;  %3893 = vmatmul.msk.f32.gmra.mxu1 %vm609_vm1, %v4569_v33  ;;  %3966 = vmatmul.msk.f32.gmra.mxu2 %vm609_vm1, %v1346_v28  ;;  %v797_v22 = vpop.f32.mrf.mxu0  ;;  %v546_v41 = vsel %vm481_vm0, %v543_v15, %v545_v34  ;;  %v1357_v15 = vrot.slane %v4673_v17, 2 }
 0x116   : > { %v1593_v56 = vpop.f32.mrf.mxu2  ;;  %3835 = vmatmul.msk.f32.gmra.mxu0 %vm609_vm1, %v544_v23  ;;  %v4712_v23 = vld [vmem:[%s4270_s25 + $0x118] sm:$0xff] }
 0x118   : > { %v1119_v59 = vpop.f32.mrf.mxu1 }
 0x119   : > { %v1120_v60 = vadd.f32 %v1119_v59, %v782_v1  ;;  %v1350_v1 = vsel %vm1293_vm2, %v1347_v54, %v1349_v4  ;;  %v548_v59 = vsel %vm481_vm0, %v545_v34, %v547_v52 }
 0x11b   : > { %v4652_v33 = vadd.f32 %v1593_v56, %v1120_v60  ;;  %3894 = vmatmul.msk.f32.gmra.mxu1 %vm609_vm1, %v4582_v44  ;;  %3967 = vmatmul.msk.f32.gmra.mxu2 %vm609_vm1, %v1348_v49  ;;  %v800_v37 = vpop.f32.mrf.mxu0  ;;  %v1355_v49 = vrot.slane %v4660_v13, 2  ;;  %v4699_v60 = vld [vmem:[%s4270_s25 + $0x110] sm:$0xff] }
 0x11e   : > { %v1596_v8 = vpop.f32.mrf.mxu2  ;;  %3836 = vmatmul.msk.f32.gmra.mxu0 %vm609_vm1, %v546_v41 }
 0x120   : > { %v1122_v63 = vpop.f32.mrf.mxu1 }
 0x121   : > { %v1123_v19 = vadd.f32 %v1122_v63, %v785_v21  ;;  %v1352_v21 = vsel %vm1293_vm2, %v1349_v4, %v1351_v25  ;;  %v549_v4 = vrot.slane %v4699_v60, 1 }
 0x123   : > { %v4665_v44 = vadd.f32 %v1596_v8, %v1123_v19  ;;  %3895 = vmatmul.msk.f32.gmra.mxu1 %vm609_vm1, %v4595_v58  ;;  %3968 = vmatmul.msk.f32.gmra.mxu2 %vm609_vm1, %v1350_v1  ;;  %v803_v56 = vpop.f32.mrf.mxu0  ;;  %v550_v1 = vsel %vm481_vm0, %v547_v52, %v549_v4 }
 0x126   : > { %v1599_v27 = vpop.f32.mrf.mxu2  ;;  %3837 = vmatmul.msk.f32.gmra.mxu0 %vm609_vm1, %v548_v59  ;;  %v1361_v59 = vrot.slane %v4699_v60, 2 }
 0x128   : > { %v1125_v29 = vpop.f32.mrf.mxu1 }
 0x129   : > { %v1126_v36 = vadd.f32 %v1125_v29, %v788_v35  ;;  %v1354_v35 = vsel %vm1293_vm2, %v1351_v25, %v1353_v43 }
 0x12b   : > { %v4678_v58 = vadd.f32 %v1599_v27, %v1126_v36  ;;  %3896 = vmatmul.msk.f32.gmra.mxu1 %vm609_vm1, %v4608_v11  ;;  %3969 = vmatmul.msk.f32.gmra.mxu2 %vm609_vm1, %v1352_v21  ;;  %v806_v63 = vpop.f32.mrf.mxu0  ;;  %v551_v27 = vrot.slane %v4712_v23, 1  ;;  %v1359_v36 = vrot.slane %v4686_v50, 2 }
 0x12d   : > { %v552_v34 = vsel %vm481_vm0, %v549_v4, %v551_v27 }
 0x12e   : > { %v1602_v28 = vpop.f32.mrf.mxu2  ;;  %3838 = vmatmul.msk.f32.gmra.mxu0 %vm609_vm1, %v550_v1 }
 0x130   : > { %v1128_v45 = vpop.f32.mrf.mxu1 }
 0x131   : > { %v1129_v54 = vadd.f32 %v1128_v45, %v791_v51  ;;  %v1356_v51 = vsel %vm1293_vm2, %v1353_v43, %v1355_v49  ;;  %v4725_v43 = vld [vmem:[%s4270_s25 + $0x120] sm:$0xff] }
 0x132   : > { %v553_v45 = vrot.slane %v4725_v43, 1 }
 0x133   : > { %v4691_v11 = vadd.f32 %v1602_v28, %v1129_v54  ;;  %3897 = vmatmul.msk.f32.gmra.mxu1 %vm609_vm1, %v4621_v26  ;;  %3970 = vmatmul.msk.f32.gmra.mxu2 %vm609_vm1, %v1354_v35  ;;  %v809_v21 = vpop.f32.mrf.mxu0 }
 0x134   : > { %v554_v54 = vsel %vm481_vm0, %v551_v27, %v553_v45 }
 0x136   : > { %v1605_v53 = vpop.f32.mrf.mxu2  ;;  %3839 = vmatmul.msk.f32.gmra.mxu0 %vm609_vm1, %v552_v34 }
 0x138   : > { %v1131_v3 = vpop.f32.mrf.mxu1 }
 0x139   : > { %v1132_v8 = vadd.f32 %v1131_v3, %v794_v62  ;;  %v1358_v62 = vsel %vm1293_vm2, %v1355_v49, %v1357_v15 }
 0x13b   : > { %v4704_v26 = vadd.f32 %v1605_v53, %v1132_v8  ;;  %3898 = vmatmul.msk.f32.gmra.mxu1 %vm609_vm1, %v4634_v42  ;;  %3971 = vmatmul.msk.f32.gmra.mxu2 %vm609_vm1, %v1356_v51  ;;  %v812_v52 = vpop.f32.mrf.mxu0  ;;  %v4738_v53 = vld [vmem:[%s4270_s25 + $0x128] sm:$0xff] }
 0x13c   : > { %v555_v51 = vrot.slane %v4738_v53, 1 }
 0x13e   : > { %v1608_v19 = vpop.f32.mrf.mxu2  ;;  %3840 = vmatmul.msk.f32.gmra.mxu0 %vm609_vm1, %v554_v54  ;;  %v556_v1 = vsel %vm481_vm0, %v553_v45, %v555_v51 }
 0x140   : > { %v1134_v25 = vpop.f32.mrf.mxu1 }
 0x141   : > { %v1135_v29 = vadd.f32 %v1134_v25, %v797_v22  ;;  %v1360_v22 = vsel %vm1293_vm2, %v1357_v15, %v1359_v36  ;;  %v1363_v15 = vrot.slane %v4712_v23, 2  ;;  %v4751_v25 = vld [vmem:[%s4270_s25 + $0x130] sm:$0xff] }
 0x142   : > { %v557_v27 = vrot.slane %v4751_v25, 1 }
 0x143   : > { %v4717_v42 = vadd.f32 %v1608_v19, %v1135_v29  ;;  %3899 = vmatmul.msk.f32.gmra.mxu1 %vm609_vm1, %v4647_v57  ;;  %3972 = vmatmul.msk.f32.gmra.mxu2 %vm609_vm1, %v1358_v62  ;;  %v815_v8 = vpop.f32.mrf.mxu0 }
 0x146   : > { %v1611_v41 = vpop.f32.mrf.mxu2  ;;  %3841 = vmatmul.msk.f32.gmra.mxu0 %vm609_vm1, %v556_v1 }
 0x148   : > { %v1137_v28 = vpop.f32.mrf.mxu1 }
 0x149   : > { %v1138_v35 = vadd.f32 %v1137_v28, %v800_v37  ;;  %v1362_v37 = vsel %vm1293_vm2, %v1359_v36, %v1361_v59  ;;  %v558_v36 = vsel %vm481_vm0, %v555_v51, %v557_v27  ;;  %v4777_v51 = vld [vmem:[%s4270_s25 + $0x140] sm:$0xff] }
 0x14a   : > { %v561_v1 = vrot.slane %v4777_v51, 1 }
 0x14b   : > { %v4730_v57 = vadd.f32 %v1611_v41, %v1138_v35  ;;  %3900 = vmatmul.msk.f32.gmra.mxu1 %vm609_vm1, %v4660_v13  ;;  %3973 = vmatmul.msk.f32.gmra.mxu2 %vm609_vm1, %v1360_v22  ;;  %v818_v34 = vpop.f32.mrf.mxu0  ;;  %v1365_v41 = vrot.slane %v4725_v43, 2  ;;  %v4764_v22 = vld [vmem:[%s4270_s25 + $0x138] sm:$0xff] }
 0x14c   : > { %v559_v35 = vrot.slane %v4764_v22, 1 }
 0x14e   : > { %v1614_v49 = vpop.f32.mrf.mxu2  ;;  %3842 = vmatmul.msk.f32.gmra.mxu0 %vm609_vm1, %v558_v36 }
 0x150   : > { %v1140_v3 = vpop.f32.mrf.mxu1 }
 0x151   : > { %v1141_v4 = vadd.f32 %v1140_v3, %v803_v56  ;;  %v1364_v56 = vsel %vm1293_vm2, %v1361_v59, %v1363_v15  ;;  %v1367_v3 = vrot.slane %v4738_v53, 2 }
 0x153   : > { %v4743_v13 = vadd.f32 %v1614_v49, %v1141_v4  ;;  %3901 = vmatmul.msk.f32.gmra.mxu1 %vm609_vm1, %v4673_v17  ;;  %3974 = vmatmul.msk.f32.gmra.mxu2 %vm609_vm1, %v1362_v37  ;;  %v821_v59 = vpop.f32.mrf.mxu0  ;;  %v560_v49 = vsel %vm481_vm0, %v557_v27, %v559_v35 }
 0x156   : > { %v1617_v19 = vpop.f32.mrf.mxu2  ;;  %3843 = vmatmul.msk.f32.gmra.mxu0 %vm609_vm1, %v560_v49  ;;  %v4803_v49 = vld [vmem:[%s4270_s25 + $0x150] sm:$0xff] }
 0x158   : > { %v1143_v62 = vpop.f32.mrf.mxu1 }
 0x159   : > { %v1144_v29 = vadd.f32 %v1143_v62, %v806_v63  ;;  %v1366_v63 = vsel %vm1293_vm2, %v1363_v15, %v1365_v41  ;;  %v562_v62 = vsel %vm481_vm0, %v559_v35, %v561_v1  ;;  %v1371_v35 = vrot.slane %v4764_v22, 2 }
 0x15b   : > { %v4756_v17 = vadd.f32 %v1617_v19, %v1144_v29  ;;  %3902 = vmatmul.msk.f32.gmra.mxu1 %vm609_vm1, %v4686_v50  ;;  %3975 = vmatmul.msk.f32.gmra.mxu2 %vm609_vm1, %v1364_v56  ;;  %v824_v19 = vpop.f32.mrf.mxu0  ;;  %v1369_v56 = vrot.slane %v4751_v25, 2  ;;  %v4790_v29 = vld [vmem:[%s4270_s25 + $0x148] sm:$0xff] }
 0x15e   : > { %v1620_v28 = vpop.f32.mrf.mxu2  ;;  %3844 = vmatmul.msk.f32.gmra.mxu0 %vm609_vm1, %v562_v62 }
 0x160   : > { %v1146_v45 = vpop.f32.mrf.mxu1 }
 0x161   : > { %v1147_v54 = vadd.f32 %v1146_v45, %v809_v21  ;;  %v1368_v21 = vsel %vm1293_vm2, %v1365_v41, %v1367_v3  ;;  %v563_v41 = vrot.slane %v4790_v29, 1 }
 0x163   : > { %v4769_v50 = vadd.f32 %v1620_v28, %v1147_v54  ;;  %3903 = vmatmul.msk.f32.gmra.mxu1 %vm609_vm1, %v4699_v60  ;;  %3976 = vmatmul.msk.f32.gmra.mxu2 %vm609_vm1, %v1366_v63  ;;  %v827_v45 = vpop.f32.mrf.mxu0  ;;  %v564_v63 = vsel %vm481_vm0, %v561_v1, %v563_v41 }
 0x166   : > { %v1623_v37 = vpop.f32.mrf.mxu2  ;;  %3845 = vmatmul.msk.f32.gmra.mxu0 %vm609_vm1, %v564_v63  ;;  %v1375_v63 = vrot.slane %v4790_v29, 2 }
 0x168   : > { %v1149_v4 = vpop.f32.mrf.mxu1 }
 0x169   : > { %v1150_v15 = vadd.f32 %v1149_v4, %v812_v52  ;;  %v1370_v52 = vsel %vm1293_vm2, %v1367_v3, %v1369_v56 }
 0x16b   : > { %v4782_v60 = vadd.f32 %v1623_v37, %v1150_v15  ;;  %3904 = vmatmul.msk.f32.gmra.mxu1 %vm609_vm1, %v4712_v23  ;;  %3977 = vmatmul.msk.f32.gmra.mxu2 %vm609_vm1, %v1368_v21  ;;  %v565_v37 = vrot.slane %v4803_v49, 1  ;;  %v830_v21 = vpop.f32.mrf.mxu0  ;;  %v1373_v15 = vrot.slane %v4777_v51, 2 }
 0x16d   : > { %v566_v1 = vsel %vm481_vm0, %v563_v41, %v565_v37 }
 0x16e   : > { %v1626_v27 = vpop.f32.mrf.mxu2  ;;  %3846 = vmatmul.msk.f32.gmra.mxu0 %vm609_vm1, %v566_v1 }
 0x170   : > { %v1152_v36 = vpop.f32.mrf.mxu1 }
 0x171   : > { %v1153_v28 = vadd.f32 %v1152_v36, %v815_v8  ;;  %v1372_v8 = vsel %vm1293_vm2, %v1369_v56, %v1371_v35  ;;  %v4816_v56 = vld [vmem:[%s4270_s25 + $0x158] sm:$0xff] }
 0x172   : > { %v567_v36 = vrot.slane %v4816_v56, 1 }
 0x173   : > { %v4795_v23 = vadd.f32 %v1626_v27, %v1153_v28  ;;  %3905 = vmatmul.msk.f32.gmra.mxu1 %vm609_vm1, %v4725_v43  ;;  %3978 = vmatmul.msk.f32.gmra.mxu2 %vm609_vm1, %v1370_v52  ;;  %v833_v41 = vpop.f32.mrf.mxu0 }
 0x174   : > { %v568_v28 = vsel %vm481_vm0, %v565_v37, %v567_v36 }
 0x176   : > { %v1629_v54 = vpop.f32.mrf.mxu2  ;;  %3847 = vmatmul.msk.f32.gmra.mxu0 %vm609_vm1, %v568_v28 }
 0x178   : > { %v1155_v3 = vpop.f32.mrf.mxu1 }
 0x179   : > { %v1156_v4 = vadd.f32 %v1155_v3, %v818_v34  ;;  %v1374_v34 = vsel %vm1293_vm2, %v1371_v35, %v1373_v15  ;;  %v4829_v35 = vld [vmem:[%s4270_s25 + $0x160] sm:$0xff] }
 0x17b   : > { %v4808_v43 = vadd.f32 %v1629_v54, %v1156_v4  ;;  %3906 = vmatmul.msk.f32.gmra.mxu1 %vm609_vm1, %v4738_v53  ;;  %3979 = vmatmul.msk.f32.gmra.mxu2 %vm609_vm1, %v1372_v8  ;;  %v569_v8 = vrot.slane %v4829_v35, 1  ;;  %v4833_v4 = vpop.f32.mrf.mxu0 }
 0x17e   : > { %v1632_v62 = vpop.f32.mrf.mxu2 }
 0x180   : > { %v1158_v27 = vpop.f32.mrf.mxu1 }
 0x181   : > { %v1159_v52 = vadd.f32 %v1158_v27, %v821_v59  ;;  %v1376_v59 = vsel %vm1293_vm2, %v1373_v15, %v1375_v63  ;;  %v4844_v27 = vld [vmem:[%s4270_s25 + $0x168] sm:$0xff] }
 0x183   : > { %v4821_v53 = vadd.f32 %v1632_v62, %v1159_v52  ;;  %3907 = vmatmul.msk.f32.gmra.mxu1 %vm609_vm1, %v4751_v25  ;;  %3980 = vmatmul.msk.f32.gmra.mxu2 %vm609_vm1, %v1374_v34  ;;  %v570_v25 = vsel %vm481_vm0, %v567_v36, %v569_v8  ;;  %v1377_v62 = vrot.slane %v4803_v49, 2  ;;  %v571_v36 = vrot.slane %v4844_v27, 1  ;;  %v4848_v28 = vpop.f32.mrf.mxu0 }
 0x184   : > { %3848 = vmatmul.msk.f32.gmra.mxu0 %vm609_vm1, %v570_v25  ;;  %6366 = vst [vmem:[#allocation5_spill] sm:$0xff] %v4848_v28 }
 0x185   : > { %v1378_v34 = vsel %vm1293_vm2, %v1375_v63, %v1377_v62 }
 0x186   : > { %v1635_v54 = vpop.f32.mrf.mxu2 }
 0x188   : > { %v1161_v3 = vpop.f32.mrf.mxu1 }
 0x189   : > { %v1162_v37 = vadd.f32 %v1161_v3, %v824_v19  ;;  %v1379_v3 = vrot.slane %v4816_v56, 2 }
 0x18b   : > { %v4836_v1 = vadd.f32 %v1635_v54, %v1162_v37  ;;  %3908 = vmatmul.msk.f32.gmra.mxu1 %vm609_vm1, %v4764_v22  ;;  %3981 = vmatmul.msk.f32.gmra.mxu2 %vm609_vm1, %v1376_v59  ;;  %v572_v22 = vsel %vm481_vm0, %v569_v8, %v571_v36  ;;  %v4859_v59 = vld [vmem:[%s4270_s25 + $0x170] sm:$0xff]  ;;  %v1380_v37 = vsel %vm1293_vm2, %v1377_v62, %v1379_v3 }
 0x18c   : > { %3849 = vmatmul.msk.f32.gmra.mxu0 %vm609_vm1, %v572_v22  ;;  %v573_v8 = vrot.slane %v4859_v59, 1 }
 0x18d   : > { %6365 = vst [vmem:[#allocation4_spill] sm:$0xff] %v4836_v1 }
 0x18e   : > { %v1638_v15 = vpop.f32.mrf.mxu2 }
 0x190   : > { %v1164_v19 = vpop.f32.mrf.mxu1 }
 0x191   : > { %v1165_v52 = vadd.f32 %v1164_v19, %v827_v45 }
 0x193   : > { %v4851_v54 = vadd.f32 %v1638_v15, %v1165_v52  ;;  %3909 = vmatmul.msk.f32.gmra.mxu1 %vm609_vm1, %v4777_v51  ;;  %3982 = vmatmul.msk.f32.gmra.mxu2 %vm609_vm1, %v1378_v34  ;;  %v4863_v15 = vpop.f32.mrf.mxu0  ;;  %v574_v51 = vsel %vm481_vm0, %v571_v36, %v573_v8  ;;  %v1381_v34 = vrot.slane %v4829_v35, 2  ;;  %v383_v52 = vld [vmem:[%s4270_s25 + $0x178] sm:$0xff] }
 0x194   : > { %6367 = vst [vmem:[#allocation6_spill] sm:$0xff] %v4863_v15  ;;  %3850 = vmatmul.msk.f32.gmra.mxu0 %vm609_vm1, %v574_v51 }
 0x196   : > { %v1641_v63 = vpop.f32.mrf.mxu2 }
 0x198   : > { %v1167_v45 = vpop.f32.mrf.mxu1 }
 0x199   : > { %v1168_v25 = vadd.f32 %v1167_v45, %v830_v21  ;;  %v1382_v21 = vsel %vm1293_vm2, %v1379_v3, %v1381_v34  ;;  %v575_v45 = vrot.slane %v383_v52, 1  ;;  %v384_v3 = vld [vmem:[%s4270_s25 + $0x180] sm:$0xff] }
 0x19b   : > { %v4866_v19 = vadd.f32 %v1641_v63, %v1168_v25  ;;  %3910 = vmatmul.msk.f32.gmra.mxu1 %vm609_vm1, %v4790_v29  ;;  %3983 = vmatmul.msk.f32.gmra.mxu2 %vm609_vm1, %v1380_v37  ;;  %v4875_v36 = vpop.f32.mrf.mxu0  ;;  %v576_v63 = vsel %vm481_vm0, %v573_v8, %v575_v45  ;;  %v1383_v29 = vrot.slane %v4844_v27, 2  ;;  %v577_v8 = vrot.slane %v384_v3, 1 }
 0x19c   : > { %6369 = vst [vmem:[#allocation8_spill] sm:$0xff] %v4875_v36  ;;  %3851 = vmatmul.msk.f32.gmra.mxu0 %vm609_vm1, %v576_v63 }
 0x19d   : > { %6368 = vst [vmem:[#allocation7_spill] sm:$0xff] %v4866_v19  ;;  %v1384_v51 = vsel %vm1293_vm2, %v1381_v34, %v1383_v29 }
 0x19e   : > { %v1644_v62 = vpop.f32.mrf.mxu2 }
 0x1a0   : > { %v1170_v22 = vpop.f32.mrf.mxu1 }
 0x1a1   : > { %v1171_v10 = vadd.f32 %v1170_v22, %v833_v41 }
 0x1a3   : > { %v4878_v25 = vadd.f32 %v1644_v62, %v1171_v10  ;;  %3911 = vmatmul.msk.f32.gmra.mxu1 %vm609_vm1, %v4803_v49  ;;  %3984 = vmatmul.msk.f32.gmra.mxu2 %vm609_vm1, %v1382_v21  ;;  %v4891_v10 = vpop.f32.mrf.mxu0  ;;  %v578_v62 = vsel %vm481_vm0, %v575_v45, %v577_v8  ;;  %v1385_v49 = vrot.slane %v4859_v59, 2  ;;  %v385_v21 = vld [vmem:[%s4270_s25 + $0x188] sm:$0xff] }
 0x1a4   : > { %6371 = vst [vmem:[#allocation10_spill] sm:$0xff] %v4891_v10  ;;  %3852 = vmatmul.msk.f32.gmra.mxu0 %vm609_vm1, %v578_v62  ;;  %v579_v10 = vrot.slane %v385_v21, 1  ;;  %v386_v62 = vld [vmem:[%s4270_s25 + $0x190] sm:$0xff] }
 0x1a5   : > { %6370 = vst [vmem:[#allocation9_spill] sm:$0xff] %v4878_v25  ;;  %v1386_v34 = vsel %vm1293_vm2, %v1383_v29, %v1385_v49 }
 0x1a6   : > { %v4885_v37 = vpop.f32.mrf.mxu2  ;;  %v580_v45 = vsel %vm481_vm0, %v577_v8, %v579_v10 }
 0x1a8   : > { %v4888_v41 = vpop.f32.mrf.mxu1 }
 0x1ab   : > { %3912 = vmatmul.msk.f32.gmra.mxu1 %vm609_vm1, %v4816_v56  ;;  %3985 = vmatmul.msk.f32.gmra.mxu2 %vm609_vm1, %v1384_v51  ;;  %v4905_v15 = vpop.f32.mrf.mxu0  ;;  %v1387_v56 = vrot.slane %v383_v52, 2 }
 0x1ac   : > { %6374 = vst [vmem:[#allocation13_spill] sm:$0xff] %v4905_v15  ;;  %3853 = vmatmul.msk.f32.gmra.mxu0 %vm609_vm1, %v580_v45 }
 0x1ad   : > { %v1388_v29 = vsel %vm1293_vm2, %v1385_v49, %v1387_v56 }
 0x1ae   : > { %v4899_v22 = vpop.f32.mrf.mxu2 }
 0x1af   : > { %6372 = vst [vmem:[#allocation11_spill] sm:$0xff] %v4899_v22  ;;  %v581_v22 = vrot.slane %v386_v62, 1 }
 0x1b0   : > { %v4902_v63 = vpop.f32.mrf.mxu1 }
 0x1b1   : > { %6373 = vst [vmem:[#allocation12_spill] sm:$0xff] %v4902_v63  ;;  %v582_v8 = vsel %vm481_vm0, %v579_v10, %v581_v22 }
 0x1b3   : > { %3913 = vmatmul.msk.f32.gmra.mxu1 %vm609_vm1, %v4829_v35  ;;  %3986 = vmatmul.msk.f32.gmra.mxu2 %vm609_vm1, %v1386_v34  ;;  %v4918_v63 = vpop.f32.mrf.mxu0  ;;  %v1389_v35 = vrot.slane %v384_v3, 2 }
 0x1b4   : > { %6377 = vst [vmem:[#allocation16_spill] sm:$0xff] %v4918_v63  ;;  %3854 = vmatmul.msk.f32.gmra.mxu0 %vm609_vm1, %v582_v8 }
 0x1b5   : > { %v1390_v15 = vsel %vm1293_vm2, %v1387_v56, %v1389_v35 }
 0x1b6   : > { %v4912_v51 = vpop.f32.mrf.mxu2 }
 0x1b7   : > { %6375 = vst [vmem:[#allocation14_spill] sm:$0xff] %v4912_v51  ;;  %v6381_v51 = vrot.slane %v4273_v5, 1  ;;  %v1393_v5 = vrot.slane %v386_v62, 2 }
 0x1b8   : > { %v4915_v25 = vpop.f32.mrf.mxu1 }
 0x1b9   : > { %6376 = vst [vmem:[#allocation15_spill] sm:$0xff] %v4915_v25  ;;  %v584_v10 = vsel %vm481_vm0, %v581_v22, %v6381_v51 }
 0x1bb   : > { %3914 = vmatmul.msk.f32.gmra.mxu1 %vm609_vm1, %v4844_v27  ;;  %3987 = vmatmul.msk.f32.gmra.mxu2 %vm609_vm1, %v1388_v29  ;;  %v4930_v49 = vpop.f32.mrf.mxu0  ;;  %v1391_v27 = vrot.slane %v385_v21, 2 }
 0x1bc   : > { %6380 = vst [vmem:[#allocation19_spill] sm:$0xff] %v4930_v49  ;;  %3855 = vmatmul.msk.f32.gmra.mxu0 %vm609_vm1, %v584_v10 }
 0x1bd   : > { %v1392_v56 = vsel %vm1293_vm2, %v1389_v35, %v1391_v27  ;;  %v1394_v22 = vsel %vm1293_vm2, %v1391_v27, %v1393_v5  ;;  %v4167_v35 = vld [vmem:[%s4270_s25 + $0x198] sm:$0xff]  ;;  %v4168_v27 = vld [vmem:[%s4270_s25 + $0x1a0] sm:$0xff] }
 0x1be   : > { %v4925_v34 = vpop.f32.mrf.mxu2  ;;  %v1395_v10 = vrot.slane %v4167_v35, 2 }
 0x1bf   : > { %6378 = vst [vmem:[#allocation17_spill] sm:$0xff] %v4925_v34 }
 0x1c0   : > { %v4927_v45 = vpop.f32.mrf.mxu1 }
 0x1c1   : > { %6379 = vst [vmem:[#allocation18_spill] sm:$0xff] %v4927_v45 }
 0x1c3   : > { %3915 = vmatmul.msk.f32.gmra.mxu1 %vm609_vm1, %v4859_v59  ;;  %3988 = vmatmul.msk.f32.gmra.mxu2 %vm609_vm1, %v1390_v15  ;;  %v4944_v49 = vpop.f32.mrf.mxu0 }
 0x1c4   : > { %6384 = vst [vmem:[#allocation22_spill] sm:$0xff] %v4944_v49 }
 0x1c6   : > { %v4939_v29 = vpop.f32.mrf.mxu2 }
 0x1c7   : > { %6382 = vst [vmem:[#allocation20_spill] sm:$0xff] %v4939_v29 }
 0x1c8   : > { %v4941_v8 = vpop.f32.mrf.mxu1 }
 0x1c9   : > { %6383 = vst [vmem:[#allocation21_spill] sm:$0xff] %v4941_v8 }
 0x1cb   : > { %3916 = vmatmul.msk.f32.gmra.mxu1 %vm609_vm1, %v383_v52  ;;  %3989 = vmatmul.msk.f32.gmra.mxu2 %vm609_vm1, %v1392_v56  ;;  %v4953_v51 = vpop.f32.mrf.mxu0  ;;  %v1396_v56 = vsel %vm1293_vm2, %v1393_v5, %v1395_v10  ;;  %v4169_v5 = vld [vmem:[%s4270_s25 + $0x1a8] sm:$0xff] }
 0x1cc   : > { %6387 = vst [vmem:[#allocation25_spill] sm:$0xff] %v4953_v51 }
 0x1ce   : > { %v4948_v59 = vpop.f32.mrf.mxu2 }
 0x1cf   : > { %6385 = vst [vmem:[#allocation23_spill] sm:$0xff] %v4948_v59  ;;  %v1397_v59 = vrot.slane %v4168_v27, 2 }
 0x1d0   : > { %v4950_v15 = vpop.f32.mrf.mxu1 }
 0x1d1   : > { %6386 = vst [vmem:[#allocation24_spill] sm:$0xff] %v4950_v15  ;;  %v1398_v15 = vsel %vm1293_vm2, %v1395_v10, %v1397_v59  ;;  %v4170_v10 = vld [vmem:[%s4270_s25 + $0x1b0] sm:$0xff] }
 0x1d3   : > { %3917 = vmatmul.msk.f32.gmra.mxu1 %vm609_vm1, %v384_v3  ;;  %3990 = vmatmul.msk.f32.gmra.mxu2 %vm609_vm1, %v1394_v22  ;;  %v4966_v51 = vpop.f32.mrf.mxu0 }
 0x1d4   : > { %6390 = vst [vmem:[#allocation28_spill] sm:$0xff] %v4966_v51 }
 0x1d6   : > { %v4958_v52 = vpop.f32.mrf.mxu2 }
 0x1d7   : > { %6388 = vst [vmem:[#allocation26_spill] sm:$0xff] %v4958_v52 }
 0x1d8   : > { %v4960_v49 = vpop.f32.mrf.mxu1 }
 0x1d9   : > { %6389 = vst [vmem:[#allocation27_spill] sm:$0xff] %v4960_v49 }
 0x1db   : > { %3918 = vmatmul.msk.f32.gmra.mxu1 %vm609_vm1, %v385_v21  ;;  %3991 = vmatmul.msk.f32.gmra.mxu2 %vm609_vm1, %v1396_v56  ;;  %v1399_v21 = vrot.slane %v4169_v5, 2  ;;  %v4978_v56 = vpop.f32.mrf.mxu0 }
 0x1dc   : > { %6394 = vst [vmem:[#allocation32_spill] sm:$0xff] %v4978_v56 }
 0x1dd   : > { %v1400_v51 = vsel %vm1293_vm2, %v1397_v59, %v1399_v21  ;;  %v4171_v59 = vld [vmem:[%s4270_s25 + $0x1b8] sm:$0xff] }
 0x1de   : > { %v4968_v3 = vpop.f32.mrf.mxu2 }
 0x1df   : > { %6391 = vst [vmem:[#allocation29_spill] sm:$0xff] %v4968_v3 }
 0x1e0   : > { %v4970_v22 = vpop.f32.mrf.mxu1 }
 0x1e1   : > { %6392 = vst [vmem:[#allocation30_spill] sm:$0xff] %v4970_v22 }
 0x1e3   : > { %3919 = vmatmul.msk.f32.gmra.mxu1 %vm609_vm1, %v386_v62  ;;  %3992 = vmatmul.msk.f32.gmra.mxu2 %vm609_vm1, %v1398_v15  ;;  %v1401_v62 = vrot.slane %v4170_v10, 2 }
 0x1e5   : > { %v1402_v22 = vsel %vm1293_vm2, %v1399_v21, %v1401_v62  ;;  %v4172_v21 = vld [vmem:[%s4270_s25 + $0x1c0] sm:$0xff] }
 0x1e6   : > { %v4976_v29 = vpop.f32.mrf.mxu2 }
 0x1e7   : > { %6393 = vst [vmem:[#allocation31_spill] sm:$0xff] %v4976_v29  ;;  %v4991_v29 = vpop.f32.mrf.mxu0 }
 0x1e8   : > { %v4980_v52 = vpop.f32.mrf.mxu1  ;;  %6398 = vst [vmem:[#allocation36_spill] sm:$0xff] %v4991_v29  ;;  %v1405_v29 = vrot.slane %v4172_v21, 2 }
 0x1e9   : > { %6395 = vst [vmem:[#allocation33_spill] sm:$0xff] %v4980_v52 }
 0x1eb   : > { %3920 = vmatmul.msk.f32.gmra.mxu1 %vm609_vm1, %v4167_v35  ;;  %3993 = vmatmul.msk.f32.gmra.mxu2 %vm609_vm1, %v1400_v51  ;;  %v1403_v35 = vrot.slane %v4171_v59, 2 }
 0x1ed   : > { %v1404_v52 = vsel %vm1293_vm2, %v1401_v62, %v1403_v35 }
 0x1ee   : > { %v4986_v3 = vpop.f32.mrf.mxu2 }
 0x1ef   : > { %6396 = vst [vmem:[#allocation34_spill] sm:$0xff] %v4986_v3  ;;  %v875_v3 = vpop.f32.mrf.mxu0 }
 0x1f0   : > { %v4988_v15 = vpop.f32.mrf.mxu1 }
 0x1f1   : > { %6397 = vst [vmem:[#allocation35_spill] sm:$0xff] %v4988_v15  ;;  %v1406_v15 = vsel %vm1293_vm2, %v1403_v35, %v1405_v29 }
 0x1f3   : > { %3921 = vmatmul.msk.f32.gmra.mxu1 %vm609_vm1, %v4168_v27  ;;  %3994 = vmatmul.msk.f32.gmra.mxu2 %vm609_vm1, %v1402_v22 }
 0x1f6   : > { %v4996_v56 = vpop.f32.mrf.mxu2 }
 0x1f7   : > { %6399 = vst [vmem:[#allocation37_spill] sm:$0xff] %v4996_v56  ;;  %v4173_v56 = vld [vmem:[%s4270_s25 + $0x1c8] sm:$0xff] }
 0x1f8   : > { %v4998_v51 = vpop.f32.mrf.mxu1  ;;  %v1407_v62 = vrot.slane %v4173_v56, 2 }
 0x1f9   : > { %6400 = vst [vmem:[#allocation38_spill] sm:$0xff] %v4998_v51  ;;  %v878_v51 = vpop.f32.mrf.mxu0 }
 0x1fa   : > { %v1408_v8 = vsel %vm1293_vm2, %v1405_v29, %v1407_v62  ;;  %v4175_v29 = vld [vmem:[%s4270_s25 + $0x1d8] sm:$0xff] }
 0x1fb   : > { %3922 = vmatmul.msk.f32.gmra.mxu1 %vm609_vm1, %v4169_v5  ;;  %3995 = vmatmul.msk.f32.gmra.mxu2 %vm609_vm1, %v1404_v52 }
 0x1fe   : > { %v5004_v27 = vpop.f32.mrf.mxu2 }
 0x1ff   : > { %6401 = vst [vmem:[#allocation39_spill] sm:$0xff] %v5004_v27  ;;  %v4174_v27 = vld [vmem:[%s4270_s25 + $0x1d0] sm:$0xff] }
 0x200   : > { %v5006_v22 = vpop.f32.mrf.mxu1  ;;  %v1409_v35 = vrot.slane %v4174_v27, 2 }
 0x201   : > { %6402 = vst [vmem:[#allocation40_spill] sm:$0xff] %v5006_v22 }
 0x203   : > { %3923 = vmatmul.msk.f32.gmra.mxu1 %vm609_vm1, %v4170_v10  ;;  %3996 = vmatmul.msk.f32.gmra.mxu2 %vm609_vm1, %v1406_v15  ;;  %v881_v10 = vpop.f32.mrf.mxu0  ;;  %v1410_v15 = vsel %vm1293_vm2, %v1407_v62, %v1409_v35 }
 0x206   : > { %v5012_v5 = vpop.f32.mrf.mxu2 }
 0x207   : > { %6403 = vst [vmem:[#allocation41_spill] sm:$0xff] %v5012_v5 }
 0x208   : > { %v5014_v52 = vpop.f32.mrf.mxu1 }
 0x209   : > { %6404 = vst [vmem:[#allocation42_spill] sm:$0xff] %v5014_v52  ;;  %v1411_v52 = vrot.slane %v4175_v29, 2 }
 0x20b   : > { %3924 = vmatmul.msk.f32.gmra.mxu1 %vm609_vm1, %v4171_v59  ;;  %3997 = vmatmul.msk.f32.gmra.mxu2 %vm609_vm1, %v1408_v8  ;;  %v1412_v25 = vsel %vm1293_vm2, %v1409_v35, %v1411_v52  ;;  %v884_v34 = vpop.f32.mrf.mxu0 }
 0x20e   : > { %v1686_v22 = vpop.f32.mrf.mxu2 }
 0x210   : > { %v1212_v49 = vpop.f32.mrf.mxu1 }
 0x211   : > { %v1213_v63 = vadd.f32 %v1212_v49, %v875_v3 }
 0x213   : > { %3925 = vmatmul.msk.f32.gmra.mxu1 %vm609_vm1, %v4172_v21  ;;  %v5022_v5 = vadd.f32 %v1686_v22, %v1213_v63  ;;  %3998 = vmatmul.msk.f32.gmra.mxu2 %vm609_vm1, %v1410_v15  ;;  %v4176_v63 = vld [vmem:[%s4270_s25 + $0x1e0] sm:$0xff]  ;;  %v887_v28 = vpop.f32.mrf.mxu0 }
 0x214   : > { %v1413_v21 = vrot.slane %v4176_v63, 2 }
 0x215   : > { %1966 = vrot.lane.b32.xlu0 %v5022_v5, %s4189_s28 }
 0x216   : > { %v1689_v8 = vpop.f32.mrf.mxu2  ;;  %v1414_v15 = vsel %vm1293_vm2, %v1411_v52, %v1413_v21 }
 0x218   : > { %v1215_v59 = vpop.f32.mrf.mxu1 }
 0x219   : > { %v1216_v49 = vadd.f32 %v1215_v59, %v878_v51 }
 0x21b   : > { %v5029_v3 = vadd.f32 %v1689_v8, %v1216_v49  ;;  %3926 = vmatmul.msk.f32.gmra.mxu1 %vm609_vm1, %v4173_v56  ;;  %3999 = vmatmul.msk.f32.gmra.mxu2 %vm609_vm1, %v1412_v25  ;;  %v4177_v56 = vld [vmem:[%s4270_s25 + $0x1e8] sm:$0xff] }
 0x21c   : > { %v1415_v25 = vrot.slane %v4177_v56, 2 }
 0x21d   : > { %1968 = vrot.lane.b32.xlu0 %v5029_v3, %s4189_s28 }
 0x21e   : > { %v1692_v22 = vpop.f32.mrf.mxu2  ;;  %v1416_v49 = vsel %vm1293_vm2, %v1413_v21, %v1415_v25 }
 0x220   : > { %v1218_v62 = vpop.f32.mrf.mxu1 }
 0x221   : > { %v1219_v35 = vadd.f32 %v1218_v62, %v881_v10 }
 0x223   : > { %3927 = vmatmul.msk.f32.gmra.mxu1 %vm609_vm1, %v4174_v27  ;;  %v5038_v51 = vadd.f32 %v1692_v22, %v1219_v35  ;;  %4000 = vmatmul.msk.f32.gmra.mxu2 %vm609_vm1, %v1414_v15  ;;  %v4178_v27 = vld [vmem:[%s4270_s25 + $0x1f0] sm:$0xff]  ;;  %v890_v22 = vpop.f32.mrf.mxu0 }
 0x224   : > { %v1417_v10 = vrot.slane %v4178_v27, 2 }
 0x225   : > { %1970 = vrot.lane.b32.xlu1 %v5038_v51, %s4189_s28 }
 0x226   : > { %v1695_v8 = vpop.f32.mrf.mxu2  ;;  %v1418_v35 = vsel %vm1293_vm2, %v1415_v25, %v1417_v10 }
 0x228   : > { %v1221_v59 = vpop.f32.mrf.mxu1 }
 0x229   : > { %v1222_v52 = vadd.f32 %v1221_v59, %v884_v34  ;;  %v4179_v34 = vld [vmem:[%s4270_s25 + $0x1f8] sm:$0xff] }
 0x22b   : > { %v5045_v45 = vadd.f32 %v1695_v8, %v1222_v52  ;;  %3928 = vmatmul.msk.f32.gmra.mxu1 %vm609_vm1, %v4175_v29  ;;  %4001 = vmatmul.msk.f32.gmra.mxu2 %vm609_vm1, %v1416_v49  ;;  %v1419_v29 = vrot.slane %v4179_v34, 2  ;;  %v893_v59 = vpop.f32.mrf.mxu0 }
 0x22d   : > { %1972 = vrot.lane.b32.xlu1 %v5045_v45, %s4189_s28  ;;  %v1420_v52 = vsel %vm1293_vm2, %v1417_v10, %v1419_v29 }
 0x22e   : > { %v1698_v62 = vpop.f32.mrf.mxu2 }
 0x230   : > { %v1224_v15 = vpop.f32.mrf.mxu1 }
 0x231   : > { %v1225_v36 = vadd.f32 %v1224_v15, %v887_v28 }
 0x233   : > { %v5053_v21 = vadd.f32 %v1698_v62, %v1225_v36  ;;  %3929 = vmatmul.msk.f32.gmra.mxu1 %vm609_vm1, %v4176_v63  ;;  %4002 = vmatmul.msk.f32.gmra.mxu2 %vm609_vm1, %v1418_v35  ;;  %v896_v63 = vpop.f32.mrf.mxu0 }
 0x235   : > { %1974 = vrot.lane.b32.xlu2 %v5053_v21, %s4189_s28 }
 0x236   : > { %v1701_v8 = vpop.f32.mrf.mxu2 }
 0x238   : > { %v1227_v49 = vpop.f32.mrf.mxu1 }
 0x239   : > { %v1228_v19 = vadd.f32 %v1227_v49, %v890_v22 }
 0x23b   : > { %v5061_v1 = vadd.f32 %v1701_v8, %v1228_v19  ;;  %3930 = vmatmul.msk.f32.gmra.mxu1 %vm609_vm1, %v4177_v56  ;;  %4003 = vmatmul.msk.f32.gmra.mxu2 %vm609_vm1, %v1420_v52  ;;  %v899_v22 = vpop.f32.mrf.mxu0 }
 0x23d   : > { %1976 = vrot.lane.b32.xlu2 %v5061_v1, %s4189_s28 }
 0x23e   : > { %v1704_v28 = vpop.f32.mrf.mxu2 }
 0x240   : > { %v1230_v36 = vpop.f32.mrf.mxu1 }
 0x241   : > { %v1231_v25 = vadd.f32 %v1230_v36, %v893_v59 }
 0x243   : > { %v5067_v62 = vadd.f32 %v1704_v28, %v1231_v25  ;;  %3931 = vmatmul.msk.f32.gmra.mxu1 %vm609_vm1, %v4178_v27  ;;  %4004 = vmatmul.msk.f32.gmra.mxu2 %vm609_vm1, %v1419_v29  ;;  %v902_v29 = vpop.f32.mrf.mxu0 }
 0x245   : > { %1978 = vrot.lane.b32.xlu0 %v5067_v62, %s4189_s28 }
 0x246   : > { %v1707_v19 = vpop.f32.mrf.mxu2 }
 0x248   : > { %v1233_v56 = vpop.f32.mrf.mxu1 }
 0x249   : > { %v1234_v10 = vadd.f32 %v1233_v56, %v896_v63 }
 0x24b   : > { %v5073_v15 = vadd.f32 %v1707_v19, %v1234_v10  ;;  %3932 = vmatmul.msk.f32.gmra.mxu1 %vm609_vm1, %v4179_v34  ;;  %v905_v34 = vpop.f32.mrf.mxu0 }
 0x24d   : > { %1980 = vrot.lane.b32.xlu1 %v5073_v15, %s4189_s28 }
 0x24e   : > { %v1710_v35 = vpop.f32.mrf.mxu2 }
 0x250   : > { %v1236_v8 = vpop.f32.mrf.mxu1 }
 0x251   : > { %v1237_v59 = vadd.f32 %v1236_v8, %v899_v22 }
 0x253   : > { %v5078_v27 = vadd.f32 %v1710_v35, %v1237_v59 }
 0x255   : > { %1982 = vrot.lane.b32.xlu2 %v5078_v27, %s4189_s28 }
 0x256   : > { %v1713_v49 = vpop.f32.mrf.mxu2 }
 0x258   : > { %v1239_v52 = vpop.f32.mrf.mxu1 }
 0x259   : > { %v1240_v28 = vadd.f32 %v1239_v52, %v902_v29 }
 0x25b   : > { %v5082_v36 = vadd.f32 %v1713_v49, %v1240_v28 }
 0x25d   : > { %1984 = vrot.lane.b32.xlu0 %v5082_v36, %s4189_s28 }
 0x25e   : > { %v1716_v63 = vpop.f32.mrf.mxu2 }
 0x260   : > { %v1242_v25 = vpop.f32.mrf.mxu1 }
 0x261   : > { %v1243_v19 = vadd.f32 %v1242_v25, %v905_v34 }
 0x263   : > { %v5086_v56 = vadd.f32 %v1716_v63, %v1243_v19 }
 0x265   : > { %1986 = vrot.lane.b32.xlu1 %v5086_v56, %s4189_s28 }
 0x266   : > { %v1719_v10 = vpop.f32.mrf.mxu2 }
 0x268   : > { %v1245_v22 = vpop.f32.mrf.mxu1 }
 0x269   : > { %v1246_v35 = vadd.f32 %v1245_v22, %v4449_v0 }
 0x26b   : > { %v5091_v8 = vadd.f32 %v1719_v10, %v1246_v35  ;;  %v4011_v35 = vld [vmem:[%s6348_s3 + $0x68] sm:$0xff] }
 0x26c   : > { %4145 = vmatpush.msra.mxu3 %v4011_v35  ;;  %2684 = vmatpush.msrb.mxu0 %v4011_v35 }
 0x26d   : > { %1988 = vrot.lane.b32.xlu2 %v5091_v8, %s4189_s28 }
 0x26e   : > { %v1722_v59 = vpop.f32.mrf.mxu2 }
 0x270   : > { %v1248_v29 = vpop.f32.mrf.mxu1 }
 0x271   : > { %v1249_v49 = vadd.f32 %v1248_v29, %v4459_v9  ;;  %v5113_v9 = vld [vmem:[%s6347_s2] ss:$0 sm:$0xff] }
 0x273   : > { %v5096_v52 = vadd.f32 %v1722_v59, %v1249_v49  ;;  %v4010_v49 = vld [vmem:[%s6348_s3 + $0x60] sm:$0xff] }
 0x274   : > { %4146 = vmatpush.msra.mxu3 %v4010_v49  ;;  %2685 = vmatpush.msrb.mxu0 %v4010_v49  ;;  %v4006_v49 = vld [vmem:[%s6348_s3 + $0x40] sm:$0xff] }
 0x275   : > { %1990 = vrot.lane.b32.xlu0 %v5096_v52, %s4189_s28 }
 0x276   : > { %v1725_v28 = vpop.f32.mrf.mxu2 }
 0x278   : > { %v1251_v34 = vpop.f32.mrf.mxu1 }
 0x279   : > { %v1252_v63 = vadd.f32 %v1251_v34, %v4469_v18 }
 0x27b   : > { %v5101_v25 = vadd.f32 %v1725_v28, %v1252_v63  ;;  %v4009_v63 = vld [vmem:[%s6348_s3 + $0x58] sm:$0xff] }
 0x27c   : > { %4147 = vmatpush.msra.mxu3 %v4009_v63  ;;  %2686 = vmatpush.msrb.mxu0 %v4009_v63 }
 0x27d   : > { %1992 = vrot.lane.b32.xlu1 %v5101_v25, %s4189_s28 }
 0x27e   : > { %v1728_v0 = vpop.f32.mrf.mxu2 }
 0x280   : > { %v1254_v19 = vpop.f32.mrf.mxu1 }
 0x281   : > { %v1255_v10 = vadd.f32 %v1254_v19, %v4481_v24 }
 0x283   : > { %v5106_v22 = vadd.f32 %v1728_v0, %v1255_v10 }
 0x285   : > { %1994 = vrot.lane.b32.xlu2 %v5106_v22, %s4189_s28 }
 0x286   : > { %v1731_v18 = vpop.f32.mrf.mxu2 }
 0x287   : > { %v1967_v59 = vpop.permute.xlu0 %1966 }
 0x288   : > { %v2118_v24 = vmax.f32 %v5022_v5, %v1967_v59  ;;  %v1257_v29 = vpop.f32.mrf.mxu1  ;;  %v4008_v5 = vld [vmem:[%s6348_s3 + $0x50] sm:$0xff] }
 0x289   : > { %v1258_v28 = vadd.f32 %v1257_v29, %v4494_v32  ;;  %4148 = vmatpush.msra.mxu3 %v4008_v5  ;;  %v4007_v32 = vld [vmem:[%s6348_s3 + $0x48] sm:$0xff]  ;;  %2687 = vmatpush.msrb.mxu0 %v4008_v5  ;;  %v4005_v5 = vld [vmem:[%s6348_s3 + $0x38] sm:$0xff] }
 0x28a   : > { %v2186_v34 = vadd.f32 %v5113_v9, %v2118_v24 }
 0x28b   : > { %v5127_v0 = vadd.f32 %v1731_v18, %v1258_v28  ;;  %4149 = vmatpush.msra.mxu3 %v4007_v32  ;;  %2688 = vmatpush.msrb.mxu0 %v4007_v32 }
 0x28c   : > { %v2250_v19 = vmax.f32 %v2186_v34, 0.0 }
 0x28d   : > { %1996 = vrot.lane.b32.xlu0 %v5127_v0, %s4189_s28  ;;  %4150 = vmatpush.msra.mxu3 %v4006_v49 }
 0x28e   : > { %2315 = vst.msk [vmem:[#allocation2 + $0x140] sm:$0xff] %vm2274_vm3, %v2250_v19  ;;  %v1734_v10 = vpop.f32.mrf.mxu2  ;;  %2689 = vmatpush.msrb.mxu0 %v4006_v49 }
 0x28f   : > { %v1969_v18 = vpop.permute.xlu0 %1968  ;;  %v1975_v35 = vpop.permute.xlu2 %1974  ;;  %4151 = vmatpush.msra.mxu3 %v4005_v5 }
 0x290   : > { %v2119_v59 = vmax.f32 %v5029_v3, %v1969_v18  ;;  %v2122_v24 = vmax.f32 %v5053_v21, %v1975_v35  ;;  %v1260_v29 = vpop.f32.mrf.mxu1  ;;  %2690 = vmatpush.msrb.mxu0 %v4005_v5 }
 0x291   : > { %v1261_v28 = vadd.f32 %v1260_v29, %v4507_v40 }
 0x292   : > { %v2187_v34 = vadd.f32 %v5113_v9, %v2119_v59  ;;  %v2190_v63 = vadd.f32 %v5113_v9, %v2122_v24 }
 0x293   : > { %v5149_v3 = vadd.f32 %v1734_v10, %v1261_v28 }
 0x294   : > { %v2251_v21 = vmax.f32 %v2187_v34, 0.0  ;;  %v2254_v19 = vmax.f32 %v2190_v63, 0.0 }
 0x295   : > { %1998 = vrot.lane.b32.xlu1 %v5149_v3, %s4189_s28 }
 0x296   : > { %2316 = vst.msk [vmem:[#allocation2 + $0x148] sm:$0xff] %vm2274_vm3, %v2251_v21  ;;  %v1737_v40 = vpop.f32.mrf.mxu2 }
 0x297   : > { %2319 = vst.msk [vmem:[#allocation2 + $0x160] sm:$0xff] %vm2274_vm3, %v2254_v19  ;;  %v1971_v32 = vpop.permute.xlu1 %1970  ;;  %v1977_v18 = vpop.permute.xlu2 %1976 }
 0x298   : > { %v2120_v35 = vmax.f32 %v5038_v51, %v1971_v32  ;;  %v2123_v59 = vmax.f32 %v5061_v1, %v1977_v18  ;;  %v1263_v10 = vpop.f32.mrf.mxu1 }
 0x299   : > { %v1264_v24 = vadd.f32 %v1263_v10, %v4521_v48 }
 0x29a   : > { %v2188_v29 = vadd.f32 %v5113_v9, %v2120_v35  ;;  %v2191_v49 = vadd.f32 %v5113_v9, %v2123_v59 }
 0x29b   : > { %v5160_v28 = vadd.f32 %v1737_v40, %v1264_v24 }
 0x29c   : > { %v2252_v34 = vmax.f32 %v2188_v29, 0.0  ;;  %v2255_v63 = vmax.f32 %v2191_v49, 0.0 }
 0x29d   : > { %2000 = vrot.lane.b32.xlu2 %v5160_v28, %s4189_s28  ;;  %v2382_v10 = vld [vmem:[#allocation2 + $0x140] ss:$2 sm:$0xff]  ;;  %v2446_v24 = vld [vmem:[#allocation2 + $0x141] ss:$2 sm:$0xff] }
 0x29e   : > { %2317 = vst.msk [vmem:[#allocation2 + $0x150] sm:$0xff] %vm2274_vm3, %v2252_v34  ;;  %v1740_v5 = vpop.f32.mrf.mxu2  ;;  %v5177_v29 = vmax.f32 %v2382_v10, %v2446_v24 }
 0x29f   : > { %2320 = vst.msk [vmem:[#allocation2 + $0x168] sm:$0xff] %vm2274_vm3, %v2255_v63  ;;  %v1973_v1 = vpop.permute.xlu1 %1972 }
 0x2a0   : > { %v2121_v51 = vmax.f32 %v5045_v45, %v1973_v1  ;;  %v1266_v48 = vpop.f32.mrf.mxu1 }
 0x2a1   : > { %v1267_v21 = vadd.f32 %v1266_v48, %v4456_v6 }
 0x2a2   : > { %v2189_v19 = vadd.f32 %v5113_v9, %v2121_v51 }
 0x2a3   : > { %v5169_v40 = vadd.f32 %v1740_v5, %v1267_v21 }
 0x2a4   : > { %v2253_v32 = vmax.f32 %v2189_v19, 0.0 }
 0x2a5   : > { %2002 = vrot.lane.b32.xlu0 %v5169_v40, %s4189_s28 }
 0x2a6   : > { %2318 = vst.msk [vmem:[#allocation2 + $0x158] sm:$0xff] %vm2274_vm3, %v2253_v32  ;;  %v1743_v18 = vpop.f32.mrf.mxu2  ;;  %v2386_v19 = vld [vmem:[#allocation2 + $0x160] ss:$2 sm:$0xff]  ;;  %v2450_v32 = vld [vmem:[#allocation2 + $0x161] ss:$2 sm:$0xff] }
 0x2a7   : > { %v5194_v10 = vmax.f32 %v2386_v19, %v2450_v32 }
 0x2a8   : > { %v1269_v35 = vpop.f32.mrf.mxu1 }
 0x2a9   : > { %v1270_v59 = vadd.f32 %v1269_v35, %v4466_v16  ;;  %v6359_v16 = vrot.slane %v5177_v29, 1 }
 0x2ab   : > { %v5175_v45 = vadd.f32 %v1743_v18, %v1270_v59 }
 0x2ad   : > { %2004 = vrot.lane.b32.xlu1 %v5175_v45, %s4189_s28  ;;  %v2384_v6 = vld [vmem:[#allocation2 + $0x150] ss:$2 sm:$0xff]  ;;  %v2448_v49 = vld [vmem:[#allocation2 + $0x151] ss:$2 sm:$0xff] }
 0x2ae   : > { %v1746_v34 = vpop.f32.mrf.mxu2  ;;  %v5181_v63 = vmax.f32 %v2384_v6, %v2448_v49 }
 0x2af   : > { %v1983_v5 = vpop.permute.xlu2 %1982 }
 0x2b0   : > { %v2126_v1 = vmax.f32 %v5078_v27, %v1983_v5  ;;  %v1272_v51 = vpop.f32.mrf.mxu1  ;;  %v2589_v48 = vrot.slane %v5181_v63, 1  ;;  %v2591_v5 = vrot.slane %v5194_v10, 1 }
 0x2b1   : > { %v1273_v21 = vadd.f32 %v1272_v51, %v4476_v7 }
 0x2b2   : > { %v2194_v18 = vadd.f32 %v5113_v9, %v2126_v1  ;;  %v2590_v35 = vsel %vm481_vm0, %v6359_v16, %v2589_v48  ;;  %v2592_v51 = vsel %vm481_vm0, %v2589_v48, %v2591_v5  ;;  %v6431_v16 = vld [vmem:[#allocation34_spill] sm:$0xff] }
 0x2b3   : > { %v5191_v59 = vadd.f32 %v1746_v34, %v1273_v21  ;;  %4032 = vmatmul.msk.f32.vlgmr.msra.gmra.mxu3 %vm2274_vm3, %v2590_v35 }
 0x2b4   : > { %v2258_v27 = vmax.f32 %v2194_v18, 0.0 }
 0x2b5   : > { %2006 = vrot.lane.b32.xlu2 %v5191_v59, %s4189_s28 }
 0x2b6   : > { %2323 = vst.msk [vmem:[#allocation2 + $0x180] sm:$0xff] %vm2274_vm3, %v2258_v27  ;;  %v1749_v7 = vpop.f32.mrf.mxu2 }
 0x2b7   : > { %v1979_v24 = vpop.permute.xlu0 %1978 }
 0x2b8   : > { %v2124_v6 = vmax.f32 %v5067_v62, %v1979_v24  ;;  %v1275_v49 = vpop.f32.mrf.mxu1 }
 0x2b9   : > { %v1276_v34 = vadd.f32 %v1275_v49, %v4489_v30 }
 0x2ba   : > { %v2192_v1 = vadd.f32 %v5113_v9, %v2124_v6 }
 0x2bb   : > { %v5204_v21 = vadd.f32 %v1749_v7, %v1276_v34  ;;  %4033 = vmatmul.msk.f32.gmra.mxu3 %vm2274_vm3, %v2592_v51 }
 0x2bc   : > { %v2256_v19 = vmax.f32 %v2192_v1, 0.0 }
 0x2bd   : > { %2008 = vrot.lane.b32.xlu0 %v5204_v21, %s4189_s28 }
 0x2be   : > { %2321 = vst.msk [vmem:[#allocation2 + $0x170] sm:$0xff] %vm2274_vm3, %v2256_v19  ;;  %v1752_v62 = vpop.f32.mrf.mxu2 }
 0x2bf   : > { %v1981_v32 = vpop.permute.xlu1 %1980 }
 0x2c0   : > { %v2125_v18 = vmax.f32 %v5073_v15, %v1981_v32  ;;  %v1278_v35 = vpop.f32.mrf.mxu1 }
 0x2c1   : > { %v1279_v30 = vadd.f32 %v1278_v35, %v4502_v38 }
 0x2c2   : > { %v2193_v27 = vadd.f32 %v5113_v9, %v2125_v18 }
 0x2c3   : > { %v5213_v48 = vadd.f32 %v1752_v62, %v1279_v30 }
 0x2c4   : > { %v2257_v7 = vmax.f32 %v2193_v27, 0.0 }
 0x2c5   : > { %1886 = vrot.lane.b32.xlu0 %v4536_v61, %s4189_s28  ;;  %2010 = vrot.lane.b32.xlu1 %v5213_v48, %s4189_s28 }
 0x2c6   : > { %2322 = vst.msk [vmem:[#allocation2 + $0x178] sm:$0xff] %vm2274_vm3, %v2257_v7  ;;  %v1755_v49 = vpop.f32.mrf.mxu2 }
 0x2c7   : > { %v1989_v24 = vpop.permute.xlu2 %1988 }
 0x2c8   : > { %v2129_v6 = vmax.f32 %v5091_v8, %v1989_v24  ;;  %v1281_v15 = vpop.f32.mrf.mxu1 }
 0x2c9   : > { %v1282_v38 = vadd.f32 %v1281_v15, %v4516_v46 }
 0x2ca   : > { %v2197_v34 = vadd.f32 %v5113_v9, %v2129_v6 }
 0x2cb   : > { %v5223_v1 = vadd.f32 %v1755_v49, %v1282_v38 }
 0x2cc   : > { %v2261_v51 = vmax.f32 %v2197_v34, 0.0 }
 0x2cd   : > { %2012 = vrot.lane.b32.xlu2 %v5223_v1, %s4189_s28  ;;  %1892 = vrot.lane.b32.xlu0 %v4574_v31, %s4189_s28  ;;  %v2388_v19 = vld [vmem:[#allocation2 + $0x170] ss:$2 sm:$0xff]  ;;  %v2452_v62 = vld [vmem:[#allocation2 + $0x171] ss:$2 sm:$0xff] }
 0x2ce   : > { %2326 = vst.msk [vmem:[#allocation2 + $0x198] sm:$0xff] %vm2274_vm3, %v2261_v51  ;;  %1888 = vrot.lane.b32.xlu1 %v4548_v14, %s4189_s28  ;;  %v5232_v8 = vmax.f32 %v2388_v19, %v2452_v62 }
 0x2cf   : > { %v1985_v46 = vpop.permute.xlu0 %1984 }
 0x2d0   : > { %v2127_v32 = vmax.f32 %v5082_v36, %v1985_v46  ;;  %v2593_v18 = vrot.slane %v5232_v8, 1 }
 0x2d2   : > { %v2195_v35 = vadd.f32 %v5113_v9, %v2127_v32  ;;  %v2594_v30 = vsel %vm481_vm0, %v2591_v5, %v2593_v18 }
 0x2d3   : > { %4034 = vmatmul.msk.f32.gmra.mxu3 %vm2274_vm3, %v2594_v30 }
 0x2d4   : > { %v2259_v27 = vmax.f32 %v2195_v35, 0.0 }
 0x2d5   : > { %1890 = vrot.lane.b32.xlu2 %v4561_v12, %s4189_s28  ;;  %1898 = vrot.lane.b32.xlu0 %v4613_v55, %s4189_s28 }
 0x2d6   : > { %2324 = vst.msk [vmem:[#allocation2 + $0x188] sm:$0xff] %vm2274_vm3, %v2259_v27  ;;  %1894 = vrot.lane.b32.xlu1 %v4587_v39, %s4189_s28 }
 0x2d7   : > { %v1987_v36 = vpop.permute.xlu1 %1986 }
 0x2d8   : > { %v2128_v7 = vmax.f32 %v5086_v56, %v1987_v36  ;;  %v2507_v56 = vld [vmem:[%s6348_s3 + $0x30] sm:$0xff] }
 0x2d9   : > { %2861 = vmatpush.msrb.mxu3 %v2507_v56 }
 0x2da   : > { %v2196_v24 = vadd.f32 %v5113_v9, %v2128_v7 }
 0x2dc   : > { %v2260_v5 = vmax.f32 %v2196_v24, 0.0 }
 0x2dd   : > { %1896 = vrot.lane.b32.xlu2 %v4600_v47, %s4189_s28  ;;  %1904 = vrot.lane.b32.xlu0 %v4652_v33, %s4189_s28  ;;  %v2390_v6 = vld [vmem:[#allocation2 + $0x180] ss:$2 sm:$0xff]  ;;  %v2454_v15 = vld [vmem:[#allocation2 + $0x181] ss:$2 sm:$0xff] }
 0x2de   : > { %2325 = vst.msk [vmem:[#allocation2 + $0x190] sm:$0xff] %vm2274_vm3, %v2260_v5  ;;  %1900 = vrot.lane.b32.xlu1 %v4626_v2, %s4189_s28  ;;  %v5255_v49 = vmax.f32 %v2390_v6, %v2454_v15 }
 0x2df   : > { %v1995_v38 = vpop.permute.xlu2 %1994 }
 0x2e0   : > { %v2132_v34 = vmax.f32 %v5106_v22, %v1995_v38  ;;  %v2595_v51 = vrot.slane %v5255_v49, 1  ;;  %v2505_v38 = vld [vmem:[%s6348_s3 + $0x20] sm:$0xff] }
 0x2e2   : > { %v2200_v19 = vadd.f32 %v5113_v9, %v2132_v34  ;;  %v2596_v62 = vsel %vm481_vm0, %v2593_v18, %v2595_v51 }
 0x2e3   : > { %4035 = vmatmul.msk.f32.gmra.mxu3 %vm2274_vm3, %v2596_v62 }
 0x2e4   : > { %v2264_v46 = vmax.f32 %v2200_v19, 0.0 }
 0x2e5   : > { %1902 = vrot.lane.b32.xlu2 %v4639_v20, %s4189_s28  ;;  %1910 = vrot.lane.b32.xlu0 %v4691_v11, %s4189_s28  ;;  %v2392_v32 = vld [vmem:[#allocation2 + $0x190] ss:$2 sm:$0xff]  ;;  %v2456_v35 = vld [vmem:[#allocation2 + $0x191] ss:$2 sm:$0xff] }
 0x2e6   : > { %2329 = vst.msk [vmem:[#allocation2 + $0x1b0] sm:$0xff] %vm2274_vm3, %v2264_v46  ;;  %1906 = vrot.lane.b32.xlu1 %v4665_v44, %s4189_s28  ;;  %v5272_v22 = vmax.f32 %v2392_v32, %v2456_v35 }
 0x2e7   : > { %v1991_v30 = vpop.permute.xlu0 %1990 }
 0x2e8   : > { %v2130_v18 = vmax.f32 %v5096_v52, %v1991_v30  ;;  %v2597_v27 = vrot.slane %v5272_v22, 1  ;;  %v2506_v52 = vld [vmem:[%s6348_s3 + $0x28] sm:$0xff] }
 0x2e9   : > { %2862 = vmatpush.msrb.mxu3 %v2506_v52 }
 0x2ea   : > { %v2198_v36 = vadd.f32 %v5113_v9, %v2130_v18  ;;  %v2598_v7 = vsel %vm481_vm0, %v2595_v51, %v2597_v27 }
 0x2eb   : > { %4036 = vmatmul.msk.f32.gmra.mxu3 %vm2274_vm3, %v2598_v7 }
 0x2ec   : > { %v2262_v24 = vmax.f32 %v2198_v36, 0.0  ;;  %2863 = vmatpush.msrb.mxu3 %v2505_v38 }
 0x2ed   : > { %1908 = vrot.lane.b32.xlu2 %v4678_v58, %s4189_s28  ;;  %1916 = vrot.lane.b32.xlu0 %v4730_v57, %s4189_s28 }
 0x2ee   : > { %2327 = vst.msk [vmem:[#allocation2 + $0x1a0] sm:$0xff] %vm2274_vm3, %v2262_v24  ;;  %1912 = vrot.lane.b32.xlu1 %v4704_v26, %s4189_s28 }
 0x2ef   : > { %v1993_v5 = vpop.permute.xlu1 %1992 }
 0x2f0   : > { %v2131_v6 = vmax.f32 %v5101_v25, %v1993_v5 }
 0x2f2   : > { %v2199_v15 = vadd.f32 %v5113_v9, %v2131_v6 }
 0x2f4   : > { %v2263_v56 = vmax.f32 %v2199_v15, 0.0 }
 0x2f5   : > { %1914 = vrot.lane.b32.xlu2 %v4717_v42, %s4189_s28  ;;  %1922 = vrot.lane.b32.xlu0 %v4769_v50, %s4189_s28 }
 0x2f6   : > { %2328 = vst.msk [vmem:[#allocation2 + $0x1a8] sm:$0xff] %vm2274_vm3, %v2263_v56  ;;  %1918 = vrot.lane.b32.xlu1 %v4743_v13, %s4189_s28  ;;  %v6405_v56 = vld [vmem:[#allocation4_spill] sm:$0xff] }
 0x2f7   : > { %v2001_v34 = vpop.permute.xlu2 %2000 }
 0x2f8   : > { %v2135_v25 = vmax.f32 %v5160_v28, %v2001_v34 }
 0x2fa   : > { %v2203_v51 = vadd.f32 %v5113_v9, %v2135_v25  ;;  %v6408_v25 = vld [vmem:[#allocation18_spill] sm:$0xff] }
 0x2fc   : > { %v2267_v19 = vmax.f32 %v2203_v51, 0.0 }
 0x2fd   : > { %1920 = vrot.lane.b32.xlu2 %v4756_v17, %s4189_s28  ;;  %1928 = vrot.lane.b32.xlu0 %v4808_v43, %s4189_s28  ;;  %v2394_v62 = vld [vmem:[#allocation2 + $0x1a0] ss:$2 sm:$0xff]  ;;  %v2458_v46 = vld [vmem:[#allocation2 + $0x1a1] ss:$2 sm:$0xff] }
 0x2fe   : > { %2332 = vst.msk [vmem:[#allocation2 + $0x1c8] sm:$0xff] %vm2274_vm3, %v2267_v19  ;;  %1924 = vrot.lane.b32.xlu1 %v4782_v60, %s4189_s28  ;;  %v5310_v32 = vmax.f32 %v2394_v62, %v2458_v46  ;;  %v6409_v19 = vld [vmem:[#allocation5_spill] sm:$0xff]  ;;  %v6410_v62 = vld [vmem:[#allocation12_spill] sm:$0xff] }
 0x2ff   : > { %v1997_v35 = vpop.permute.xlu0 %1996  ;;  %v1177_v46 = vadd.f32 %v6410_v62, %v6409_v19  ;;  %v2503_v62 = vld [vmem:[%s6348_s3 + $0x10] sm:$0xff] }
 0x300   : > { %v2133_v28 = vmax.f32 %v5127_v0, %v1997_v35  ;;  %v2599_v30 = vrot.slane %v5310_v32, 1  ;;  %v2504_v0 = vld [vmem:[%s6348_s3 + $0x18] sm:$0xff] }
 0x301   : > { %2864 = vmatpush.msrb.mxu3 %v2504_v0 }
 0x302   : > { %v2201_v18 = vadd.f32 %v5113_v9, %v2133_v28  ;;  %v2600_v36 = vsel %vm481_vm0, %v2597_v27, %v2599_v30  ;;  %v1174_v27 = vadd.f32 %v4888_v41, %v4833_v4  ;;  %v6406_v4 = vld [vmem:[#allocation7_spill] sm:$0xff] }
 0x303   : > { %4037 = vmatmul.msk.f32.gmra.mxu3 %vm2274_vm3, %v2600_v36 }
 0x304   : > { %v2265_v7 = vmax.f32 %v2201_v18, 0.0  ;;  %v5332_v6 = vadd.f32 %v4885_v37, %v1174_v27  ;;  %v6412_v27 = vld [vmem:[#allocation11_spill] sm:$0xff]  ;;  %2865 = vmatpush.msrb.mxu3 %v2503_v62 }
 0x305   : > { %1926 = vrot.lane.b32.xlu2 %v4795_v23, %s4189_s28  ;;  %1934 = vrot.lane.b32.xlu0 %v4851_v54, %s4189_s28 }
 0x306   : > { %2330 = vst.msk [vmem:[#allocation2 + $0x1b8] sm:$0xff] %vm2274_vm3, %v2265_v7  ;;  %1930 = vrot.lane.b32.xlu1 %v4821_v53, %s4189_s28  ;;  %v6411_v7 = vld [vmem:[#allocation17_spill] sm:$0xff] }
 0x307   : > { %v1999_v24 = vpop.permute.xlu1 %1998 }
 0x308   : > { %v2134_v52 = vmax.f32 %v5149_v3, %v1999_v24  ;;  %v6407_v3 = vld [vmem:[#allocation8_spill] sm:$0xff]  ;;  %v5356_v24 = vadd.f32 %v6412_v27, %v1177_v46  ;;  %v6419_v46 = vld [vmem:[#allocation10_spill] sm:$0xff] }
 0x309   : > { %v1183_v37 = vadd.f32 %v6408_v25, %v6407_v3  ;;  %v6417_v25 = vld [vmem:[#allocation16_spill] sm:$0xff] }
 0x30a   : > { %v2202_v5 = vadd.f32 %v5113_v9, %v2134_v52 }
 0x30b   : > { %v5352_v0 = vadd.f32 %v6411_v7, %v1183_v37  ;;  %v6418_v37 = vld [vmem:[#allocation27_spill] sm:$0xff] }
 0x30c   : > { %v2266_v15 = vmax.f32 %v2202_v5, 0.0  ;;  %v6413_v5 = vld [vmem:[#allocation9_spill] sm:$0xff] }
 0x30d   : > { %1932 = vrot.lane.b32.xlu2 %v6405_v56, %s4189_s28  ;;  %1940 = vrot.lane.b32.xlu0 %v5332_v6, %s4189_s28  ;;  %v2396_v38 = vld [vmem:[#allocation2 + $0x1b0] ss:$2 sm:$0xff]  ;;  %v2460_v34 = vld [vmem:[#allocation2 + $0x1b1] ss:$2 sm:$0xff] }
 0x30e   : > { %2331 = vst.msk [vmem:[#allocation2 + $0x1c0] sm:$0xff] %vm2274_vm3, %v2266_v15  ;;  %1936 = vrot.lane.b32.xlu1 %v6406_v4, %s4189_s28  ;;  %v5341_v41 = vmax.f32 %v2396_v38, %v2460_v34  ;;  %v6415_v38 = vld [vmem:[#allocation6_spill] sm:$0xff]  ;;  %v6416_v34 = vld [vmem:[#allocation15_spill] sm:$0xff] }
 0x30f   : > { %v2007_v51 = vpop.permute.xlu2 %2006  ;;  %v1180_v3 = vadd.f32 %v6416_v34, %v6415_v38  ;;  %v6422_v38 = vld [vmem:[#allocation26_spill] sm:$0xff] }
 0x310   : > { %v2138_v35 = vmax.f32 %v5191_v59, %v2007_v51  ;;  %v2601_v28 = vrot.slane %v5341_v41, 1  ;;  %v1192_v51 = vadd.f32 %v6418_v37, %v6417_v25  ;;  %v6423_v25 = vld [vmem:[#allocation20_spill] sm:$0xff] }
 0x312   : > { %v2206_v18 = vadd.f32 %v5113_v9, %v2138_v35  ;;  %v2602_v36 = vsel %vm481_vm0, %v2599_v30, %v2601_v28  ;;  %v6420_v35 = vld [vmem:[#allocation21_spill] sm:$0xff]  ;;  %v5384_v34 = vadd.f32 %v6422_v38, %v1192_v51 }
 0x313   : > { %4038 = vmatmul.msk.f32.gmra.mxu3 %vm2274_vm3, %v2602_v36  ;;  %v6426_v51 = vld [vmem:[#allocation25_spill] sm:$0xff] }
 0x314   : > { %v2270_v52 = vmax.f32 %v2206_v18, 0.0  ;;  %v1186_v18 = vadd.f32 %v6420_v35, %v6419_v46 }
 0x315   : > { %1938 = vrot.lane.b32.xlu2 %v6413_v5, %s4189_s28  ;;  %1946 = vrot.lane.b32.xlu0 %v5352_v0, %s4189_s28  ;;  %v2398_v59 = vld [vmem:[#allocation2 + $0x1c0] ss:$2 sm:$0xff]  ;;  %v2462_v15 = vld [vmem:[#allocation2 + $0x1c1] ss:$2 sm:$0xff] }
 0x316   : > { %2335 = vst.msk [vmem:[#allocation2 + $0x1e0] sm:$0xff] %vm2274_vm3, %v2270_v52  ;;  %1942 = vrot.lane.b32.xlu1 %v5356_v24, %s4189_s28  ;;  %v5365_v30 = vmax.f32 %v2398_v59, %v2462_v15  ;;  %v6421_v59 = vld [vmem:[#allocation14_spill] sm:$0xff]  ;;  %v5388_v37 = vadd.f32 %v6423_v25, %v1186_v18  ;;  %v6428_v18 = vld [vmem:[#allocation19_spill] sm:$0xff] }
 0x317   : > { %v2003_v19 = vpop.permute.xlu0 %2002  ;;  %v5381_v15 = vadd.f32 %v6421_v59, %v1180_v3  ;;  %v4190_v59 = vmov 0.0   ;;  %v6430_v25 = vld [vmem:[#allocation23_spill] sm:$0xff] }
 0x318   : > { %6414 = vst [vmem:[#allocation4_spill] sm:$0xff] %v5365_v30  ;;  %v2136_v36 = vmax.f32 %v5169_v40, %v2003_v19  ;;  %v2603_v7 = vrot.slane %v5365_v30, 1  ;;  %v6424_v40 = vld [vmem:[#allocation13_spill] sm:$0xff]  ;;  %v6427_v19 = vld [vmem:[#allocation35_spill] sm:$0xff] }
 0x319   : > { %v1201_v62 = vadd.f32 %v6427_v19, %v6426_v51  ;;  %2341 = vst.msk [vmem:[#allocation2 + $0x1fe] sm:$0x3] %vm2340_vm4, %v4190_v59 }
 0x31a   : > { %v2204_v27 = vadd.f32 %v5113_v9, %v2136_v36  ;;  %v2604_v52 = vsel %vm481_vm0, %v2601_v28, %v2603_v7  ;;  %v6425_v28 = vld [vmem:[#allocation24_spill] sm:$0xff]  ;;  %v6429_v36 = vld [vmem:[#allocation30_spill] sm:$0xff] }
 0x31b   : > { %4039 = vmatmul.msk.f32.gmra.mxu3 %vm2274_vm3, %v2604_v52  ;;  %v1189_v3 = vadd.f32 %v6425_v28, %v6424_v40  ;;  %v5409_v30 = vadd.f32 %v6431_v16, %v1201_v62  ;;  %v6432_v40 = vld [vmem:[#allocation29_spill] sm:$0xff]  ;;  %v6435_v16 = vld [vmem:[#allocation36_spill] sm:$0xff]  ;;  %v6436_v62 = vld [vmem:[#allocation42_spill] sm:$0xff] }
 0x31c   : > { %v2268_v46 = vmax.f32 %v2204_v27, 0.0  ;;  %v1195_v27 = vadd.f32 %v6429_v36, %v6428_v18  ;;  %v6437_v36 = vld [vmem:[#allocation28_spill] sm:$0xff] }
 0x31d   : > { %1944 = vrot.lane.b32.xlu2 %v5381_v15, %s4189_s28  ;;  %1952 = vrot.lane.b32.xlu0 %v5384_v34, %s4189_s28 }
 0x31e   : > { %2333 = vst.msk [vmem:[#allocation2 + $0x1d0] sm:$0xff] %vm2274_vm3, %v2268_v46  ;;  %1948 = vrot.lane.b32.xlu1 %v5388_v37, %s4189_s28  ;;  %v5406_v46 = vadd.f32 %v6430_v25, %v1189_v3  ;;  %v5412_v28 = vadd.f32 %v6432_v40, %v1195_v27  ;;  %v6434_v3 = vld [vmem:[#allocation33_spill] sm:$0xff]  ;;  %v6438_v27 = vld [vmem:[#allocation38_spill] sm:$0xff]  ;;  %v6439_v40 = vld [vmem:[#allocation31_spill] sm:$0xff] }
 0x31f   : > { %v2005_v35 = vpop.permute.xlu1 %2004 }
 0x320   : > { %v2137_v52 = vmax.f32 %v5175_v45, %v2005_v35  ;;  %v6433_v45 = vld [vmem:[#allocation22_spill] sm:$0xff]  ;;  %v1210_v35 = vadd.f32 %v6436_v62, %v6435_v16  ;;  %v6441_v16 = vld [vmem:[#allocation37_spill] sm:$0xff] }
 0x321   : > { %v1198_v19 = vadd.f32 %v6434_v3, %v6433_v45  ;;  %v6440_v45 = vld [vmem:[#allocation41_spill] sm:$0xff] }
 0x322   : > { %v2205_v38 = vadd.f32 %v5113_v9, %v2137_v52  ;;  %v1204_v52 = vadd.f32 %v6438_v27, %v6437_v36  ;;  %v5436_v3 = vadd.f32 %v6440_v45, %v1210_v35  ;;  %v6443_v35 = vld [vmem:[#allocation32_spill] sm:$0xff] }
 0x323   : > { %v6444_v27 = vld [vmem:[#allocation40_spill] sm:$0xff] }
 0x324   : > { %v2269_v51 = vmax.f32 %v2205_v38, 0.0  ;;  %v2502_v38 = vld [vmem:[%s6348_s3 + $0x8] sm:$0xff]  ;;  %v5439_v62 = vadd.f32 %v6441_v16, %v1204_v52  ;;  %v2501_v16 = vld [vmem:[%s6348_s3] sm:$0xff] }
 0x325   : > { %1950 = vrot.lane.b32.xlu2 %v5406_v46, %s4189_s28  ;;  %1958 = vrot.lane.b32.xlu0 %v5409_v30, %s4189_s28 }
 0x326   : > { %2334 = vst.msk [vmem:[#allocation2 + $0x1d8] sm:$0xff] %vm2274_vm3, %v2269_v51  ;;  %1954 = vrot.lane.b32.xlu1 %v5412_v28, %s4189_s28  ;;  %2866 = vmatpush.msrb.mxu3 %v2502_v38  ;;  %v5433_v51 = vadd.f32 %v6439_v40, %v1198_v19 }
 0x327   : > { %v2013_v18 = vpop.permute.xlu2 %2012 }
 0x328   : > { %v2141_v59 = vmax.f32 %v5223_v1, %v2013_v18  ;;  %2867 = vmatpush.msrb.mxu3 %v2501_v16 }
 0x32a   : > { %v2209_v25 = vadd.f32 %v5113_v9, %v2141_v59  ;;  %v1207_v59 = vadd.f32 %v6444_v27, %v6443_v35  ;;  %v6445_v35 = vld [vmem:[#allocation39_spill] sm:$0xff] }
 0x32c   : > { %v2273_v36 = vmax.f32 %v2209_v25, 0.0  ;;  %v5461_v27 = vadd.f32 %v6445_v35, %v1207_v59 }
 0x32d   : > { %1956 = vrot.lane.b32.xlu2 %v5433_v51, %s4189_s28  ;;  %1964 = vrot.lane.b32.xlu0 %v5436_v3, %s4189_s28  ;;  %v2400_v1 = vld [vmem:[#allocation2 + $0x1d0] ss:$2 sm:$0xff]  ;;  %v2464_v18 = vld [vmem:[#allocation2 + $0x1d1] ss:$2 sm:$0xff] }
 0x32e   : > { %2339 = vst.msk [vmem:[#allocation2 + $0x1f8] sm:$0x3f] %vm2338_vm5, %v2273_v36  ;;  %1960 = vrot.lane.b32.xlu1 %v5439_v62, %s4189_s28  ;;  %v5447_v19 = vmax.f32 %v2400_v1, %v2464_v18 }
 0x32f   : > { %v1891_v52 = vpop.permute.xlu2 %1890  ;;  %v2009_v38 = vpop.permute.xlu0 %2008 }
 0x330   : > { %6442 = vst [vmem:[#allocation7_spill] sm:$0xff] %v5447_v19  ;;  %v2080_v25 = vmax.f32 %v4561_v12, %v1891_v52  ;;  %v2139_v40 = vmax.f32 %v5204_v21, %v2009_v38  ;;  %v2605_v45 = vrot.slane %v5447_v19, 1 }
 0x332   : > { %v2148_v36 = vadd.f32 %v5113_v9, %v2080_v25  ;;  %v2207_v1 = vadd.f32 %v5113_v9, %v2139_v40  ;;  %v2606_v18 = vsel %vm481_vm0, %v2603_v7, %v2605_v45 }
 0x333   : > { %4040 = vmatmul.msk.f32.gmra.mxu3 %vm2274_vm3, %v2606_v18 }
 0x334   : > { %v2212_v12 = vmax.f32 %v2148_v36, 0.0  ;;  %v2271_v21 = vmax.f32 %v2207_v1, 0.0 }
 0x335   : > { %1962 = vrot.lane.b32.xlu2 %v5461_v27, %s4189_s28  ;;  %s3796_s28 = sshll.u32 %s6469_s20, 3 }
 0x336   : > { %2277 = vst.msk [vmem:[#allocation2 + $0x10] sm:$0xff] %vm2274_vm3, %v2212_v12  ;;  %s334_s26 = scalar_lea.vmem %s6354_s9, %s3796_s28 }
 0x337   : > { %2336 = vst.msk [vmem:[#allocation2 + $0x1e8] sm:$0xff] %vm2274_vm3, %v2271_v21  ;;  %v1897_v52 = vpop.permute.xlu2 %1896  ;;  %v1887_v38 = vpop.permute.xlu0 %1886 }
 0x338   : > { %v2083_v25 = vmax.f32 %v4600_v47, %v1897_v52  ;;  %v2078_v7 = vmax.f32 %v4536_v61, %v1887_v38  ;;  %v2011_v40 = vpop.permute.xlu1 %2010 }
 0x339   : > { %v2140_v59 = vmax.f32 %v5213_v48, %v2011_v40 }
 0x33a   : > { %v2151_v16 = vadd.f32 %v5113_v9, %v2083_v25  ;;  %v2146_v36 = vadd.f32 %v5113_v9, %v2078_v7  ;;  %v4082_v7 = vld [vmem:[%s6348_s3 + $0xa0] sm:$0xff] }
 0x33b   : > { %v2208_v1 = vadd.f32 %v5113_v9, %v2140_v59  ;;  %3109 = vmatpush.msra.mxu3 %v4082_v7 }
 0x33c   : > { %v2215_v18 = vmax.f32 %v2151_v16, 0.0  ;;  %v2210_v35 = vmax.f32 %v2146_v36, 0.0 }
 0x33d   : > { %v2272_v12 = vmax.f32 %v2208_v1, 0.0 }
 0x33e   : > { %2280 = vst.msk [vmem:[#allocation2 + $0x28] sm:$0xff] %vm2274_vm3, %v2215_v18  ;;  %v2402_v21 = vld [vmem:[#allocation2 + $0x1e0] ss:$2 sm:$0xff]  ;;  %v2466_v19 = vld [vmem:[#allocation2 + $0x1e1] ss:$2 sm:$0xff] }
 0x33f   : > { %2275 = vst.msk [vmem:[#allocation2] sm:$0xff] %vm2274_vm3, %v2210_v35  ;;  %v1903_v47 = vpop.permute.xlu2 %1902  ;;  %v1893_v61 = vpop.permute.xlu0 %1892  ;;  %v5476_v52 = vmax.f32 %v2402_v21, %v2466_v19 }
 0x340   : > { %2337 = vst.msk [vmem:[#allocation2 + $0x1f0] sm:$0xff] %vm2274_vm3, %v2272_v12  ;;  %v2086_v48 = vmax.f32 %v4639_v20, %v1903_v47  ;;  %v2081_v38 = vmax.f32 %v4574_v31, %v1893_v61  ;;  %v1889_v25 = vpop.permute.xlu1 %1888 }
 0x341   : > { %v2079_v40 = vmax.f32 %v4548_v14, %v1889_v25  ;;  %v2607_v59 = vrot.slane %v5476_v52, 1 }
 0x342   : > { %v2154_v16 = vadd.f32 %v5113_v9, %v2086_v48  ;;  %v2149_v19 = vadd.f32 %v5113_v9, %v2081_v38 }
 0x343   : > { %v2147_v36 = vadd.f32 %v5113_v9, %v2079_v40  ;;  %v2608_v20 = vsel %vm481_vm0, %v2605_v45, %v2607_v59 }
 0x344   : > { %v2218_v1 = vmax.f32 %v2154_v16, 0.0  ;;  %v2213_v31 = vmax.f32 %v2149_v19, 0.0  ;;  %4041 = vmatmul.msk.f32.gmra.mxu3 %vm2274_vm3, %v2608_v20 }
 0x345   : > { %v2211_v18 = vmax.f32 %v2147_v36, 0.0 }
 0x346   : > { %2283 = vst.msk [vmem:[#allocation2 + $0x40] sm:$0xff] %vm2274_vm3, %v2218_v1 }
 0x347   : > { %2278 = vst.msk [vmem:[#allocation2 + $0x18] sm:$0xff] %vm2274_vm3, %v2213_v31  ;;  %v1909_v14 = vpop.permute.xlu2 %1908  ;;  %v1899_v35 = vpop.permute.xlu0 %1898  ;;  %v2404_v12 = vld [vmem:[#allocation2 + $0x1f0] ss:$2 sm:$0xff]  ;;  %v2468_v21 = vld [vmem:[#allocation2 + $0x1f1] ss:$2 sm:$0xff] }
 0x348   : > { %2276 = vst.msk [vmem:[#allocation2 + $0x8] sm:$0xff] %vm2274_vm3, %v2211_v18  ;;  %v2089_v47 = vmax.f32 %v4678_v58, %v1909_v14  ;;  %v2084_v61 = vmax.f32 %v4613_v55, %v1899_v35  ;;  %v1895_v45 = vpop.permute.xlu1 %1894  ;;  %v5496_v48 = vmax.f32 %v2404_v12, %v2468_v21 }
 0x349   : > { %v2082_v38 = vmax.f32 %v4587_v39, %v1895_v45 }
 0x34a   : > { %v2157_v25 = vadd.f32 %v5113_v9, %v2089_v47  ;;  %v2152_v7 = vadd.f32 %v5113_v9, %v2084_v61  ;;  %v2609_v40 = vrot.slane %v5496_v48, 1 }
 0x34b   : > { %v2150_v16 = vadd.f32 %v5113_v9, %v2082_v38 }
 0x34c   : > { %v2221_v19 = vmax.f32 %v2157_v25, 0.0  ;;  %v2216_v36 = vmax.f32 %v2152_v7, 0.0  ;;  %v2610_v20 = vsel %vm481_vm0, %v2607_v59, %v2609_v40 }
 0x34d   : > { %v2214_v58 = vmax.f32 %v2150_v16, 0.0  ;;  %4042 = vmatmul.msk.f32.gmra.mxu3 %vm2274_vm3, %v2610_v20 }
 0x34e   : > { %2286 = vst.msk [vmem:[#allocation2 + $0x58] sm:$0xff] %vm2274_vm3, %v2221_v19  ;;  %v2344_v55 = vld [vmem:[#allocation2 + $0x10] ss:$2 sm:$0xff]  ;;  %v2408_v1 = vld [vmem:[#allocation2 + $0x11] ss:$2 sm:$0xff] }
 0x34f   : > { %2281 = vst.msk [vmem:[#allocation2 + $0x30] sm:$0xff] %vm2274_vm3, %v2216_v36  ;;  %v1915_v39 = vpop.permute.xlu2 %1914  ;;  %v1905_v31 = vpop.permute.xlu0 %1904  ;;  %v2342_v18 = vld [vmem:[#allocation2] ss:$2 sm:$0xff]  ;;  %v2406_v14 = vld [vmem:[#allocation2 + $0x1] ss:$2 sm:$0xff]  ;;  %v5507_v35 = vmax.f32 %v2344_v55, %v2408_v1 }
 0x350   : > { %2279 = vst.msk [vmem:[#allocation2 + $0x20] sm:$0xff] %vm2274_vm3, %v2214_v58  ;;  %v2092_v12 = vmax.f32 %v4717_v42, %v1915_v39  ;;  %v2087_v59 = vmax.f32 %v4652_v33, %v1905_v31  ;;  %v1901_v21 = vpop.permute.xlu1 %1900  ;;  %v2469_v47 = vmax.f32 %v2342_v18, %v2406_v14 }
 0x351   : > { %v2085_v61 = vmax.f32 %v4626_v2, %v1901_v21  ;;  %v2549_v45 = vrot.slane %v5507_v35, 1  ;;  %v2974_v38 = vrot.slane %v5507_v35, 2 }
 0x352   : > { %v2160_v25 = vadd.f32 %v5113_v9, %v2092_v12  ;;  %v2155_v7 = vadd.f32 %v5113_v9, %v2087_v59  ;;  %v2548_v16 = vrot.slane %v2469_v47, 1  ;;  %v2973_v19 = vrot.slane %v2469_v47, 2 }
 0x353   : > { %v2153_v36 = vadd.f32 %v5113_v9, %v2085_v61 }
 0x354   : > { %v2224_v20 = vmax.f32 %v2160_v25, 0.0  ;;  %v2219_v42 = vmax.f32 %v2155_v7, 0.0  ;;  %v2550_v33 = vsel %vm481_vm0, %v2548_v16, %v2549_v45  ;;  %v5520_v58 = vsel %vm1293_vm2, %v2973_v19, %v2974_v38 }
 0x355   : > { %v2217_v2 = vmax.f32 %v2153_v36, 0.0  ;;  %4012 = vmatmul.msk.f32.vlgmr.msrb.gmra.mxu0 %vm2274_vm3, %v2550_v33  ;;  %4043 = vmatmul.msk.f32.gmra.mxu3 %vm2274_vm3, %v2609_v40 }
 0x356   : > { %2289 = vst.msk [vmem:[#allocation2 + $0x70] sm:$0xff] %vm2274_vm3, %v2224_v20 }
 0x357   : > { %2284 = vst.msk [vmem:[#allocation2 + $0x48] sm:$0xff] %vm2274_vm3, %v2219_v42  ;;  %v1921_v55 = vpop.permute.xlu2 %1920  ;;  %v1911_v1 = vpop.permute.xlu0 %1910  ;;  %v2346_v39 = vld [vmem:[#allocation2 + $0x20] ss:$2 sm:$0xff]  ;;  %v2410_v31 = vld [vmem:[#allocation2 + $0x21] ss:$2 sm:$0xff] }
 0x358   : > { %2282 = vst.msk [vmem:[#allocation2 + $0x38] sm:$0xff] %vm2274_vm3, %v2217_v2  ;;  %v2095_v18 = vmax.f32 %v4756_v17, %v1921_v55  ;;  %v2090_v14 = vmax.f32 %v4691_v11, %v1911_v1  ;;  %v1907_v12 = vpop.permute.xlu1 %1906  ;;  %v5529_v59 = vmax.f32 %v2346_v39, %v2410_v31 }
 0x359   : > { %v2088_v21 = vmax.f32 %v4665_v44, %v1907_v12 }
 0x35a   : > { %v2163_v40 = vadd.f32 %v5113_v9, %v2095_v18  ;;  %v2158_v61 = vadd.f32 %v5113_v9, %v2090_v14  ;;  %v2551_v25 = vrot.slane %v5529_v59, 1  ;;  %v2976_v7 = vrot.slane %v5529_v59, 2 }
 0x35b   : > { %v2156_v16 = vadd.f32 %v5113_v9, %v2088_v21 }
 0x35c   : > { %v2227_v19 = vmax.f32 %v2163_v40, 0.0  ;;  %v2222_v36 = vmax.f32 %v2158_v61, 0.0  ;;  %v2552_v17 = vsel %vm481_vm0, %v2549_v45, %v2551_v25  ;;  %v5539_v11 = vsel %vm1293_vm2, %v2974_v38, %v2976_v7 }
 0x35d   : > { %v2220_v20 = vmax.f32 %v2156_v16, 0.0  ;;  %4013 = vmatmul.msk.f32.gmra.mxu0 %vm2274_vm3, %v2552_v17  ;;  %4044 = vmatmul.msk.f32.vlgmr.msrb.gmra.mxu3 %vm2274_vm3, %v2469_v47 }
 0x35e   : > { %2292 = vst.msk [vmem:[#allocation2 + $0x88] sm:$0xff] %vm2274_vm3, %v2227_v19  ;;  %v2350_v44 = vld [vmem:[#allocation2 + $0x40] ss:$2 sm:$0xff]  ;;  %v2414_v42 = vld [vmem:[#allocation2 + $0x41] ss:$2 sm:$0xff] }
 0x35f   : > { %2287 = vst.msk [vmem:[#allocation2 + $0x60] sm:$0xff] %vm2274_vm3, %v2222_v36  ;;  %v1927_v33 = vpop.permute.xlu2 %1926  ;;  %v1917_v2 = vpop.permute.xlu0 %1916  ;;  %v2348_v55 = vld [vmem:[#allocation2 + $0x30] ss:$2 sm:$0xff]  ;;  %v2412_v1 = vld [vmem:[#allocation2 + $0x31] ss:$2 sm:$0xff]  ;;  %v5545_v39 = vmax.f32 %v2350_v44, %v2414_v42 }
 0x360   : > { %2285 = vst.msk [vmem:[#allocation2 + $0x50] sm:$0xff] %vm2274_vm3, %v2220_v20  ;;  %v2098_v45 = vmax.f32 %v4795_v23, %v1927_v33  ;;  %v2093_v38 = vmax.f32 %v4730_v57, %v1917_v2  ;;  %v1913_v31 = vpop.permute.xlu1 %1912  ;;  %v5550_v47 = vmax.f32 %v2348_v55, %v2412_v1  ;;  %v4081_v1 = vld [vmem:[%s6348_s3 + $0x98] sm:$0xff] }
 0x361   : > { %v2091_v18 = vmax.f32 %v4704_v26, %v1913_v31  ;;  %v2980_v14 = vrot.slane %v5545_v39, 2  ;;  %3110 = vmatpush.msra.mxu3 %v4081_v1 }
 0x362   : > { %v2166_v12 = vadd.f32 %v5113_v9, %v2098_v45  ;;  %v2161_v21 = vadd.f32 %v5113_v9, %v2093_v38  ;;  %v2553_v40 = vrot.slane %v5550_v47, 1  ;;  %v2978_v61 = vrot.slane %v5550_v47, 2 }
 0x363   : > { %v2159_v16 = vadd.f32 %v5113_v9, %v2091_v18 }
 0x364   : > { %v2230_v23 = vmax.f32 %v2166_v12, 0.0  ;;  %v2225_v19 = vmax.f32 %v2161_v21, 0.0  ;;  %v2554_v57 = vsel %vm481_vm0, %v2551_v25, %v2553_v40  ;;  %v5564_v26 = vsel %vm1293_vm2, %v2976_v7, %v2978_v61 }
 0x365   : > { %v2223_v36 = vmax.f32 %v2159_v16, 0.0  ;;  %4014 = vmatmul.msk.f32.gmra.mxu0 %vm2274_vm3, %v2554_v57  ;;  %4045 = vmatmul.msk.f32.gmra.mxu3 %vm2274_vm3, %v5507_v35  ;;  %v5567_v17 = vsel %vm1293_vm2, %v2978_v61, %v2980_v14  ;;  %v2555_v7 = vrot.slane %v5545_v39, 1 }
 0x366   : > { %2295 = vst.msk [vmem:[#allocation2 + $0xa0] sm:$0xff] %vm2274_vm3, %v2230_v23 }
 0x367   : > { %2290 = vst.msk [vmem:[#allocation2 + $0x78] sm:$0xff] %vm2274_vm3, %v2225_v19  ;;  %v1933_v20 = vpop.permute.xlu2 %1932  ;;  %v1923_v44 = vpop.permute.xlu0 %1922  ;;  %v2352_v42 = vld [vmem:[#allocation2 + $0x50] ss:$2 sm:$0xff]  ;;  %v2416_v25 = vld [vmem:[#allocation2 + $0x51] ss:$2 sm:$0xff]  ;;  %v2556_v21 = vsel %vm481_vm0, %v2553_v40, %v2555_v7 }
 0x368   : > { %2288 = vst.msk [vmem:[#allocation2 + $0x68] sm:$0xff] %vm2274_vm3, %v2223_v36  ;;  %v2101_v33 = vmax.f32 %v6405_v56, %v1933_v20  ;;  %v2096_v35 = vmax.f32 %v4769_v50, %v1923_v44  ;;  %v1919_v2 = vpop.permute.xlu1 %1918  ;;  %v5575_v55 = vmax.f32 %v2352_v42, %v2416_v25 }
 0x369   : > { %v2094_v45 = vmax.f32 %v4743_v13, %v1919_v2 }
 0x36a   : > { %v2169_v38 = vadd.f32 %v5113_v9, %v2101_v33  ;;  %v2164_v31 = vadd.f32 %v5113_v9, %v2096_v35  ;;  %v2982_v56 = vrot.slane %v5575_v55, 2  ;;  %v5607_v35 = vld [vmem:[%s6347_s2] ss:$0 sm:$0xff] }
 0x36b   : > { %v2162_v50 = vadd.f32 %v5113_v9, %v2094_v45 }
 0x36c   : > { %v2233_v18 = vmax.f32 %v2169_v38, 0.0  ;;  %v2228_v12 = vmax.f32 %v2164_v31, 0.0  ;;  %v5587_v61 = vsel %vm1293_vm2, %v2980_v14, %v2982_v56 }
 0x36d   : > { %v2226_v16 = vmax.f32 %v2162_v50, 0.0  ;;  %4015 = vmatmul.msk.f32.gmra.mxu0 %vm2274_vm3, %v2556_v21  ;;  %4046 = vmatmul.msk.f32.gmra.mxu3 %vm2274_vm3, %v5529_v59  ;;  %v2557_v59 = vrot.slane %v5575_v55, 1 }
 0x36e   : > { %2298 = vst.msk [vmem:[#allocation2 + $0xb8] sm:$0xff] %vm2274_vm3, %v2233_v18  ;;  %v2356_v13 = vld [vmem:[#allocation2 + $0x70] ss:$2 sm:$0xff]  ;;  %v2420_v23 = vld [vmem:[#allocation2 + $0x71] ss:$2 sm:$0xff] }
 0x36f   : > { %2293 = vst.msk [vmem:[#allocation2 + $0x90] sm:$0xff] %vm2274_vm3, %v2228_v12  ;;  %v1939_v9 = vpop.permute.xlu2 %1938  ;;  %v1929_v19 = vpop.permute.xlu0 %1928  ;;  %v2354_v57 = vld [vmem:[#allocation2 + $0x60] ss:$2 sm:$0xff]  ;;  %v2418_v36 = vld [vmem:[#allocation2 + $0x61] ss:$2 sm:$0xff]  ;;  %v5594_v40 = vmax.f32 %v2356_v13, %v2420_v23  ;;  %v2558_v31 = vsel %vm481_vm0, %v2555_v7, %v2557_v59 }
 0x370   : > { %2291 = vst.msk [vmem:[#allocation2 + $0x80] sm:$0xff] %vm2274_vm3, %v2226_v16  ;;  %v2104_v14 = vmax.f32 %v6413_v5, %v1939_v9  ;;  %v2099_v20 = vmax.f32 %v4808_v43, %v1929_v19  ;;  %v1925_v44 = vpop.permute.xlu1 %1924  ;;  %v5600_v42 = vmax.f32 %v2354_v57, %v2418_v36  ;;  %v5631_v19 = vpop.f32.mrf.mxu3 }
 0x371   : > { %v2097_v25 = vmax.f32 %v4782_v60, %v1925_v44  ;;  %v2986_v33 = vrot.slane %v5594_v40, 2 }
 0x372   : > { %v2172_v2 = vadd.f32 %v5607_v35, %v2104_v14  ;;  %v2167_v5 = vadd.f32 %v5607_v35, %v2099_v20  ;;  %v2984_v43 = vrot.slane %v5600_v42, 2 }
 0x373   : > { %v2165_v1 = vadd.f32 %v5607_v35, %v2097_v25 }
 0x374   : > { %v2236_v45 = vmax.f32 %v2172_v2, 0.0  ;;  %v2231_v38 = vmax.f32 %v2167_v5, 0.0  ;;  %v5618_v50 = vsel %vm1293_vm2, %v2982_v56, %v2984_v43  ;;  %v5621_v18 = vsel %vm1293_vm2, %v2984_v43, %v2986_v33 }
 0x375   : > { %v2229_v60 = vmax.f32 %v2165_v1, 0.0  ;;  %4016 = vmatmul.msk.f32.gmra.mxu0 %vm2274_vm3, %v2558_v31  ;;  %4047 = vmatmul.msk.f32.gmra.mxu3 %vm2274_vm3, %v5550_v47  ;;  %v2559_v56 = vrot.slane %v5600_v42, 1 }
 0x376   : > { %2301 = vst.msk [vmem:[#allocation2 + $0xd0] sm:$0xff] %vm2274_vm3, %v2236_v45 }
 0x377   : > { %2296 = vst.msk [vmem:[#allocation2 + $0xa8] sm:$0xff] %vm2274_vm3, %v2231_v38  ;;  %v1945_v12 = vpop.permute.xlu2 %1944  ;;  %v1935_v21 = vpop.permute.xlu0 %1934  ;;  %v2358_v16 = vld [vmem:[#allocation2 + $0x80] ss:$2 sm:$0xff]  ;;  %v2422_v7 = vld [vmem:[#allocation2 + $0x81] ss:$2 sm:$0xff] }
 0x378   : > { %2294 = vst.msk [vmem:[#allocation2 + $0x98] sm:$0xff] %vm2274_vm3, %v2229_v60  ;;  %v2107_v13 = vmax.f32 %v5381_v15, %v1945_v12  ;;  %v2102_v47 = vmax.f32 %v4851_v54, %v1935_v21  ;;  %v1931_v23 = vpop.permute.xlu1 %1930  ;;  %v5629_v9 = vmax.f32 %v2358_v16, %v2422_v7  ;;  %v2560_v54 = vsel %vm481_vm0, %v2557_v59, %v2559_v56 }
 0x379   : > { %v2100_v57 = vmax.f32 %v4821_v53, %v1931_v23 }
 0x37a   : > { %v2175_v36 = vadd.f32 %v5607_v35, %v2107_v13  ;;  %v2170_v14 = vadd.f32 %v5607_v35, %v2102_v47  ;;  %v2988_v20 = vrot.slane %v5629_v9, 2 }
 0x37b   : > { %v2168_v44 = vadd.f32 %v5607_v35, %v2100_v57  ;;  %v5660_v57 = vpop.f32.mrf.mxu3 }
 0x37c   : > { %v2239_v15 = vmax.f32 %v2175_v36, 0.0  ;;  %v2234_v25 = vmax.f32 %v2170_v14, 0.0  ;;  %v5640_v2 = vsel %vm1293_vm2, %v2986_v33, %v2988_v20 }
 0x37d   : > { %v2232_v5 = vmax.f32 %v2168_v44, 0.0  ;;  %4017 = vmatmul.msk.f32.gmra.mxu0 %vm2274_vm3, %v2560_v54  ;;  %4048 = vmatmul.msk.f32.gmra.mxu3 %vm2274_vm3, %v5545_v39  ;;  %v2561_v39 = vrot.slane %v5594_v40, 1 }
 0x37e   : > { %2304 = vst.msk [vmem:[#allocation2 + $0xe8] sm:$0xff] %vm2274_vm3, %v2239_v15  ;;  %v2362_v53 = vld [vmem:[#allocation2 + $0xa0] ss:$2 sm:$0xff]  ;;  %v2426_v43 = vld [vmem:[#allocation2 + $0xa1] ss:$2 sm:$0xff] }
 0x37f   : > { %2299 = vst.msk [vmem:[#allocation2 + $0xc0] sm:$0xff] %vm2274_vm3, %v2234_v25  ;;  %v1951_v1 = vpop.permute.xlu2 %1950  ;;  %v1941_v45 = vpop.permute.xlu0 %1940  ;;  %v2360_v38 = vld [vmem:[#allocation2 + $0x90] ss:$2 sm:$0xff]  ;;  %v2424_v31 = vld [vmem:[#allocation2 + $0x91] ss:$2 sm:$0xff]  ;;  %v5647_v59 = vmax.f32 %v2362_v53, %v2426_v43  ;;  %v2562_v14 = vsel %vm481_vm0, %v2559_v56, %v2561_v39 }
 0x380   : > { %2297 = vst.msk [vmem:[#allocation2 + $0xb0] sm:$0xff] %vm2274_vm3, %v2232_v5  ;;  %v2110_v33 = vmax.f32 %v5406_v46, %v1951_v1  ;;  %v2105_v60 = vmax.f32 %v5332_v6, %v1941_v45  ;;  %v1937_v12 = vpop.permute.xlu1 %1936  ;;  %v5653_v21 = vmax.f32 %v2360_v38, %v2424_v31  ;;  %v4080_v53 = vld [vmem:[%s6348_s3 + $0x90] sm:$0xff]  ;;  %v2563_v1 = vrot.slane %v5629_v9, 1 }
 0x381   : > { %v2103_v16 = vmax.f32 %v6406_v4, %v1937_v12  ;;  %v2992_v7 = vrot.slane %v5647_v59, 2  ;;  %3111 = vmatpush.msra.mxu3 %v4080_v53 }
 0x382   : > { %v2178_v13 = vadd.f32 %v5607_v35, %v2110_v33  ;;  %v2173_v47 = vadd.f32 %v5607_v35, %v2105_v60  ;;  %v2990_v23 = vrot.slane %v5653_v21, 2 }
 0x383   : > { %v2171_v46 = vadd.f32 %v5607_v35, %v2103_v16  ;;  %v5688_v12 = vpop.f32.mrf.mxu3 }
 0x384   : > { %v2242_v6 = vmax.f32 %v2178_v13, 0.0  ;;  %v2237_v36 = vmax.f32 %v2173_v47, 0.0  ;;  %v5668_v4 = vsel %vm1293_vm2, %v2988_v20, %v2990_v23  ;;  %v5671_v15 = vsel %vm1293_vm2, %v2990_v23, %v2992_v7 }
 0x385   : > { %v2235_v44 = vmax.f32 %v2171_v46, 0.0  ;;  %4018 = vmatmul.msk.f32.gmra.mxu0 %vm2274_vm3, %v2562_v14  ;;  %4049 = vmatmul.msk.f32.gmra.mxu3 %vm2274_vm3, %v5575_v55  ;;  %v2564_v13 = vsel %vm481_vm0, %v2561_v39, %v2563_v1 }
 0x386   : > { %2307 = vst.msk [vmem:[#allocation2 + $0x100] sm:$0xff] %vm2274_vm3, %v2242_v6 }
 0x387   : > { %2302 = vst.msk [vmem:[#allocation2 + $0xd8] sm:$0xff] %vm2274_vm3, %v2237_v36  ;;  %v1957_v25 = vpop.permute.xlu2 %1956  ;;  %v1947_v54 = vpop.permute.xlu0 %1946  ;;  %v2364_v5 = vld [vmem:[#allocation2 + $0xb0] ss:$2 sm:$0xff]  ;;  %v2428_v56 = vld [vmem:[#allocation2 + $0xb1] ss:$2 sm:$0xff] }
 0x388   : > { %2300 = vst.msk [vmem:[#allocation2 + $0xc8] sm:$0xff] %vm2274_vm3, %v2235_v44  ;;  %v2113_v55 = vmax.f32 %v5433_v51, %v1957_v25  ;;  %v2108_v20 = vmax.f32 %v5352_v0, %v1947_v54  ;;  %v1943_v43 = vpop.permute.xlu1 %1942  ;;  %v5682_v45 = vmax.f32 %v2364_v5, %v2428_v56 }
 0x389   : > { %v2106_v38 = vmax.f32 %v5356_v24, %v1943_v43 }
 0x38a   : > { %v2181_v31 = vadd.f32 %v5607_v35, %v2113_v55  ;;  %v2176_v33 = vadd.f32 %v5607_v35, %v2108_v20  ;;  %v2994_v60 = vrot.slane %v5682_v45, 2 }
 0x38b   : > { %v2174_v51 = vadd.f32 %v5607_v35, %v2106_v38  ;;  %v5713_v38 = vpop.f32.mrf.mxu3 }
 0x38c   : > { %v2245_v16 = vmax.f32 %v2181_v31, 0.0  ;;  %v2240_v0 = vmax.f32 %v2176_v33, 0.0  ;;  %v5693_v47 = vsel %vm1293_vm2, %v2992_v7, %v2994_v60 }
 0x38d   : > { %v2238_v23 = vmax.f32 %v2174_v51, 0.0  ;;  %4019 = vmatmul.msk.f32.gmra.mxu0 %vm2274_vm3, %v2564_v13  ;;  %4050 = vmatmul.msk.f32.gmra.mxu3 %vm2274_vm3, %v5600_v42  ;;  %v2565_v42 = vrot.slane %v5653_v21, 1 }
 0x38e   : > { %2310 = vst.msk [vmem:[#allocation2 + $0x118] sm:$0xff] %vm2274_vm3, %v2245_v16  ;;  %v2368_v24 = vld [vmem:[#allocation2 + $0xd0] ss:$2 sm:$0xff]  ;;  %v2432_v46 = vld [vmem:[#allocation2 + $0xd1] ss:$2 sm:$0xff] }
 0x38f   : > { %2305 = vst.msk [vmem:[#allocation2 + $0xf0] sm:$0xff] %vm2274_vm3, %v2240_v0  ;;  %v1963_v6 = vpop.permute.xlu2 %1962  ;;  %v1953_v36 = vpop.permute.xlu0 %1952  ;;  %v2366_v14 = vld [vmem:[#allocation2 + $0xc0] ss:$2 sm:$0xff]  ;;  %v2430_v44 = vld [vmem:[#allocation2 + $0xc1] ss:$2 sm:$0xff]  ;;  %v5700_v39 = vmax.f32 %v2368_v24, %v2432_v46  ;;  %v2566_v33 = vsel %vm481_vm0, %v2563_v1, %v2565_v42 }
 0x390   : > { %2303 = vst.msk [vmem:[#allocation2 + $0xe0] sm:$0xff] %vm2274_vm3, %v2238_v23  ;;  %v2116_v7 = vmax.f32 %v5461_v27, %v1963_v6  ;;  %v2111_v25 = vmax.f32 %v5384_v34, %v1953_v36  ;;  %v1949_v54 = vpop.permute.xlu1 %1948  ;;  %v5706_v5 = vmax.f32 %v2366_v14, %v2430_v44 }
 0x391   : > { %v2109_v56 = vmax.f32 %v5388_v37, %v1949_v54  ;;  %v2998_v53 = vrot.slane %v5700_v39, 2 }
 0x392   : > { %v2184_v55 = vadd.f32 %v5607_v35, %v2116_v7  ;;  %v2179_v20 = vadd.f32 %v5607_v35, %v2111_v25  ;;  %v2996_v43 = vrot.slane %v5706_v5, 2 }
 0x393   : > { %v2177_v27 = vadd.f32 %v5607_v35, %v2109_v56 }
 0x394   : > { %v2248_v34 = vmax.f32 %v2184_v55, 0.0  ;;  %v2243_v31 = vmax.f32 %v2179_v20, 0.0  ;;  %v5721_v37 = vsel %vm1293_vm2, %v2994_v60, %v2996_v43  ;;  %v5724_v16 = vsel %vm1293_vm2, %v2996_v43, %v2998_v53 }
 0x395   : > { %v2241_v51 = vmax.f32 %v2177_v27, 0.0  ;;  %4020 = vmatmul.msk.f32.gmra.mxu0 %vm2274_vm3, %v2566_v33  ;;  %4051 = vmatmul.msk.f32.gmra.mxu3 %vm2274_vm3, %v5594_v40  ;;  %v2567_v40 = vrot.slane %v5647_v59, 1 }
 0x396   : > { %2313 = vst.msk [vmem:[#allocation2 + $0x130] sm:$0xff] %vm2274_vm3, %v2248_v34  ;;  %v2569_v34 = vrot.slane %v5682_v45, 1 }
 0x397   : > { %2308 = vst.msk [vmem:[#allocation2 + $0x108] sm:$0xff] %vm2274_vm3, %v2243_v31  ;;  %v1959_v0 = vpop.permute.xlu0 %1958  ;;  %v2370_v13 = vld [vmem:[#allocation2 + $0xe0] ss:$2 sm:$0xff]  ;;  %v2434_v23 = vld [vmem:[#allocation2 + $0xe1] ss:$2 sm:$0xff]  ;;  %v2568_v7 = vsel %vm481_vm0, %v2565_v42, %v2567_v40 }
 0x398   : > { %2306 = vst.msk [vmem:[#allocation2 + $0xf8] sm:$0xff] %vm2274_vm3, %v2241_v51  ;;  %v2114_v1 = vmax.f32 %v5409_v30, %v1959_v0  ;;  %v1955_v24 = vpop.permute.xlu1 %1954  ;;  %v5731_v46 = vmax.f32 %v2370_v13, %v2434_v23  ;;  %v5741_v30 = vpop.f32.mrf.mxu3 }
 0x399   : > { %v2112_v60 = vmax.f32 %v5412_v28, %v1955_v24 }
 0x39a   : > { %v2182_v6 = vadd.f32 %v5607_v35, %v2114_v1  ;;  %v3000_v36 = vrot.slane %v5731_v46, 2  ;;  %v2570_v1 = vsel %vm481_vm0, %v2567_v40, %v2569_v34  ;;  %v4079_v40 = vld [vmem:[%s6348_s3 + $0x88] sm:$0xff] }
 0x39b   : > { %v2180_v14 = vadd.f32 %v5607_v35, %v2112_v60  ;;  %3112 = vmatpush.msra.mxu3 %v4079_v40 }
 0x39c   : > { %v2246_v44 = vmax.f32 %v2182_v6, 0.0  ;;  %v5739_v25 = vsel %vm1293_vm2, %v2998_v53, %v3000_v36 }
 0x39d   : > { %v2244_v54 = vmax.f32 %v2180_v14, 0.0  ;;  %4021 = vmatmul.msk.f32.gmra.mxu0 %vm2274_vm3, %v2568_v7  ;;  %4052 = vmatmul.msk.f32.gmra.mxu3 %vm2274_vm3, %v5629_v9  ;;  %v2571_v14 = vrot.slane %v5706_v5, 1 }
 0x39e   : > { %2311 = vst.msk [vmem:[#allocation2 + $0x120] sm:$0xff] %vm2274_vm3, %v2246_v44  ;;  %v2374_v28 = vld [vmem:[#allocation2 + $0x100] ss:$2 sm:$0xff]  ;;  %v2438_v56 = vld [vmem:[#allocation2 + $0x101] ss:$2 sm:$0xff] }
 0x39f   : > { %2309 = vst.msk [vmem:[#allocation2 + $0x110] sm:$0xff] %vm2274_vm3, %v2244_v54  ;;  %v1965_v55 = vpop.permute.xlu0 %1964  ;;  %v2372_v20 = vld [vmem:[#allocation2 + $0xf0] ss:$2 sm:$0xff]  ;;  %v2436_v42 = vld [vmem:[#allocation2 + $0xf1] ss:$2 sm:$0xff]  ;;  %v5748_v43 = vmax.f32 %v2374_v28, %v2438_v56  ;;  %v2572_v7 = vsel %vm481_vm0, %v2569_v34, %v2571_v14  ;;  %v2575_v34 = vrot.slane %v5731_v46, 1 }
 0x3a0   : > { %v2117_v53 = vmax.f32 %v5436_v3, %v1965_v55  ;;  %v1961_v27 = vpop.permute.xlu1 %1960  ;;  %v2484_v31 = vmax.f32 %v2372_v20, %v2436_v42  ;;  %v5760_v3 = vpop.f32.mrf.mxu3  ;;  %v2573_v20 = vrot.slane %v5700_v39, 1 }
 0x3a1   : > { %v2115_v33 = vmax.f32 %v5439_v62, %v1961_v27  ;;  %v3004_v9 = vrot.slane %v5748_v43, 2 }
 0x3a2   : > { %v2185_v51 = vadd.f32 %v5607_v35, %v2117_v53  ;;  %v3002_v0 = vrot.slane %v2484_v31, 2  ;;  %v2574_v27 = vsel %vm481_vm0, %v2571_v14, %v2573_v20 }
 0x3a3   : > { %v2183_v13 = vadd.f32 %v5607_v35, %v2115_v33  ;;  %v2576_v33 = vsel %vm481_vm0, %v2573_v20, %v2575_v34  ;;  %v6450_v20 = vrot.slane %v5177_v29, 1 }
 0x3a4   : > { %v2249_v23 = vmax.f32 %v2185_v51, 0.0  ;;  %v5758_v24 = vsel %vm1293_vm2, %v3000_v36, %v3002_v0  ;;  %v5766_v62 = vsel %vm1293_vm2, %v3002_v0, %v3004_v9  ;;  %v2577_v51 = vrot.slane %v2484_v31, 1 }
 0x3a5   : > { %v2247_v60 = vmax.f32 %v2183_v13, 0.0  ;;  %4022 = vmatmul.msk.f32.gmra.mxu0 %vm2274_vm3, %v2570_v1  ;;  %4053 = vmatmul.msk.f32.gmra.mxu3 %vm2274_vm3, %v5653_v21  ;;  %v2579_v13 = vrot.slane %v5748_v43, 1 }
 0x3a6   : > { %2314 = vst.msk [vmem:[#allocation2 + $0x138] sm:$0xff] %vm2274_vm3, %v2249_v23  ;;  %v2376_v35 = vld [vmem:[#allocation2 + $0x110] ss:$2 sm:$0xff]  ;;  %v2440_v6 = vld [vmem:[#allocation2 + $0x111] ss:$2 sm:$0xff]  ;;  %v2578_v0 = vsel %vm481_vm0, %v2575_v34, %v2577_v51 }
 0x3a7   : > { %2312 = vst.msk [vmem:[#allocation2 + $0x128] sm:$0xff] %vm2274_vm3, %v2247_v60  ;;  %v2486_v36 = vmax.f32 %v2376_v35, %v2440_v6  ;;  %v2580_v23 = vsel %vm481_vm0, %v2577_v51, %v2579_v13  ;;  %v4078_v60 = vld [vmem:[%s6348_s3 + $0x80] sm:$0xff]  ;;  %v4077_v34 = vld [vmem:[%s6348_s3 + $0x78] sm:$0xff] }
 0x3a8   : > { %v5778_v54 = vpop.f32.mrf.mxu3  ;;  %3113 = vmatpush.msra.mxu3 %v4078_v60  ;;  %v3545_v60 = vld [vmem:[%s6350_s5 + $0x8] sm:$0xff] }
 0x3a9   : > { %v3006_v44 = vrot.slane %v2486_v36, 2  ;;  %v2581_v1 = vrot.slane %v2486_v36, 1  ;;  %3651 = vmatpush.msra.mxu1 %v3545_v60 }
 0x3aa   : > { %3114 = vmatpush.msra.mxu3 %v4077_v34 }
 0x3ab   : > { %v5775_v21 = vsel %vm1293_vm2, %v3004_v9, %v3006_v44 }
 0x3ad   : > { %4023 = vmatmul.msk.f32.gmra.mxu0 %vm2274_vm3, %v2572_v7  ;;  %4054 = vmatmul.msk.f32.gmra.mxu3 %vm2274_vm3, %v5647_v59  ;;  %v2380_v40 = vld [vmem:[#allocation2 + $0x130] ss:$2 sm:$0xff] }
 0x3ae   : > { %v2378_v28 = vld [vmem:[#allocation2 + $0x120] ss:$2 sm:$0xff]  ;;  %v2442_v56 = vld [vmem:[#allocation2 + $0x121] ss:$2 sm:$0xff] }
 0x3af   : > { %v5783_v55 = vmax.f32 %v2378_v28, %v2442_v56 }
 0x3b0   : > { %v5796_v59 = vpop.f32.mrf.mxu3 }
 0x3b1   : > { %v6364_v42 = vrot.slane %v5783_v55, 2  ;;  %v2583_v6 = vrot.slane %v5783_v55, 1 }
 0x3b3   : > { %v5790_v53 = vsel %vm1293_vm2, %v3006_v44, %v6364_v42  ;;  %v2584_v14 = vsel %vm481_vm0, %v2581_v1, %v2583_v6 }
 0x3b5   : > { %4024 = vmatmul.msk.f32.gmra.mxu0 %vm2274_vm3, %v2574_v27  ;;  %4055 = vmatmul.msk.f32.gmra.mxu3 %vm2274_vm3, %v5682_v45 }
 0x3b8   : > { %v5803_v9 = vpop.f32.mrf.mxu3 }
 0x3b9   : > { %6446 = vst [vmem:[#allocation8_spill] sm:$0xff] %v5803_v9 }
 0x3bd   : > { %4025 = vmatmul.msk.f32.gmra.mxu0 %vm2274_vm3, %v2576_v33  ;;  %4056 = vmatmul.msk.f32.gmra.mxu3 %vm2274_vm3, %v5706_v5 }
 0x3c5   : > { %4026 = vmatmul.msk.f32.gmra.mxu0 %vm2274_vm3, %v2578_v0  ;;  %4057 = vmatmul.msk.f32.gmra.mxu3 %vm2274_vm3, %v5700_v39  ;;  %v2582_v39 = vsel %vm481_vm0, %v2579_v13, %v2581_v1 }
 0x3c7   : > { %v5809_v45 = vpop.f32.mrf.mxu3 }
 0x3c8   : > { %6447 = vst [vmem:[#allocation18_spill] sm:$0xff] %v5809_v45 }
 0x3cd   : > { %4027 = vmatmul.msk.f32.gmra.mxu0 %vm2274_vm3, %v2580_v23  ;;  %4058 = vmatmul.msk.f32.gmra.mxu3 %vm2274_vm3, %v5731_v46  ;;  %v2444_v46 = vld [vmem:[#allocation2 + $0x131] ss:$2 sm:$0xff] }
 0x3ce   : > { %v5828_v44 = vmax.f32 %v2380_v40, %v2444_v46  ;;  %v4076_v23 = vld [vmem:[%s6348_s3 + $0x70] sm:$0xff]  ;;  %v6451_v46 = vld [vmem:[#allocation4_spill] sm:$0xff] }
 0x3cf   : > { %3115 = vmatpush.msra.mxu3 %v4076_v23 }
 0x3d0   : > { %v5816_v5 = vpop.f32.mrf.mxu3  ;;  %v2585_v28 = vrot.slane %v5828_v44, 1 }
 0x3d1   : > { %6448 = vst [vmem:[#allocation5_spill] sm:$0xff] %v5816_v5 }
 0x3d2   : > { %v2588_v27 = vsel %vm481_vm0, %v2585_v28, %v6450_v20 }
 0x3d5   : > { %4028 = vmatmul.msk.f32.gmra.mxu0 %vm2274_vm3, %v2582_v39  ;;  %4059 = vmatmul.msk.f32.gmra.mxu3 %vm2274_vm3, %v2484_v31  ;;  %v2586_v31 = vsel %vm481_vm0, %v2583_v6, %v2585_v28  ;;  %v6452_v28 = vld [vmem:[#allocation7_spill] sm:$0xff] }
 0x3d8   : > { %v5824_v35 = vpop.f32.mrf.mxu3 }
 0x3d9   : > { %6449 = vst [vmem:[#allocation12_spill] sm:$0xff] %v5824_v35 }
 0x3dd   : > { %4029 = vmatmul.msk.f32.gmra.mxu0 %vm2274_vm3, %v2584_v14  ;;  %4060 = vmatmul.msk.f32.gmra.mxu3 %vm2274_vm3, %v5748_v43 }
 0x3e0   : > { %v5833_v7 = vpop.f32.mrf.mxu3 }
 0x3e5   : > { %4030 = vmatmul.msk.f32.gmra.mxu0 %vm2274_vm3, %v2586_v31  ;;  %4061 = vmatmul.msk.f32.gmra.mxu3 %vm2274_vm3, %v2486_v36 }
 0x3e8   : > { %v5839_v56 = vpop.f32.mrf.mxu3 }
 0x3ed   : > { %4031 = vmatmul.msk.f32.gmra.mxu0 %vm2274_vm3, %v2588_v27  ;;  %4062 = vmatmul.msk.f32.gmra.mxu3 %vm2274_vm3, %v5783_v55 }
 0x3f0   : > { %v5847_v43 = vpop.f32.mrf.mxu3 }
 0x3f5   : > { %4063 = vmatmul.msk.f32.gmra.mxu3 %vm2274_vm3, %v5828_v44 }
 0x3f8   : > { %v5854_v36 = vpop.f32.mrf.mxu3 }
 0x3fd   : > { %4064 = vmatmul.msk.f32.gmra.mxu3 %vm2274_vm3, %v5177_v29 }
 0x400   : > { %v5858_v33 = vpop.f32.mrf.mxu3 }
 0x405   : > { %4065 = vmatmul.msk.f32.gmra.mxu3 %vm2274_vm3, %v5181_v63 }
 0x408   : > { %v5862_v51 = vpop.f32.mrf.mxu3 }
 0x40d   : > { %4066 = vmatmul.msk.f32.gmra.mxu3 %vm2274_vm3, %v5194_v10 }
 0x410   : > { %v5866_v0 = vpop.f32.mrf.mxu3 }
 0x415   : > { %4067 = vmatmul.msk.f32.gmra.mxu3 %vm2274_vm3, %v5232_v8 }
 0x418   : > { %v5870_v13 = vpop.f32.mrf.mxu3 }
 0x41d   : > { %4068 = vmatmul.msk.f32.gmra.mxu3 %vm2274_vm3, %v5255_v49 }
 0x420   : > { %v5877_v1 = vpop.f32.mrf.mxu3 }
 0x425   : > { %4069 = vmatmul.msk.f32.gmra.mxu3 %vm2274_vm3, %v5272_v22 }
 0x428   : > { %v5884_v39 = vpop.f32.mrf.mxu3 }
 0x42d   : > { %4070 = vmatmul.msk.f32.gmra.mxu3 %vm2274_vm3, %v5310_v32 }
 0x430   : > { %v5888_v6 = vpop.f32.mrf.mxu3 }
 0x435   : > { %4071 = vmatmul.msk.f32.gmra.mxu3 %vm2274_vm3, %v5341_v41 }
 0x438   : > { %v5892_v40 = vpop.f32.mrf.mxu3 }
 0x43d   : > { %4072 = vmatmul.msk.f32.gmra.mxu3 %vm2274_vm3, %v6451_v46 }
 0x440   : > { %v5896_v14 = vpop.f32.mrf.mxu3 }
 0x445   : > { %4073 = vmatmul.msk.f32.gmra.mxu3 %vm2274_vm3, %v6452_v28 }
 0x448   : > { %v5900_v31 = vpop.f32.mrf.mxu3 }
 0x44d   : > { %4074 = vmatmul.msk.f32.gmra.mxu3 %vm2274_vm3, %v5476_v52 }
 0x450   : > { %v5904_v20 = vpop.f32.mrf.mxu3 }
 0x455   : > { %4075 = vmatmul.msk.f32.gmra.mxu3 %vm2274_vm3, %v5496_v48 }
 0x458   : > { %v5908_v27 = vpop.f32.mrf.mxu3 }
 0x45d   : > { %4083 = vmatmul.msk.f32.vlgmr.msra.gmra.mxu3 %vm2274_vm3, %v5520_v58 }
 0x460   : > { %v5912_v34 = vpop.f32.mrf.mxu3 }
 0x465   : > { %4084 = vmatmul.msk.f32.gmra.mxu3 %vm2274_vm3, %v5539_v11 }
 0x468   : > { %v5916_v23 = vpop.f32.mrf.mxu3 }
 0x46d   : > { %4085 = vmatmul.msk.f32.gmra.mxu3 %vm2274_vm3, %v5564_v26 }
 0x470   : > { %v5920_v60 = vpop.f32.mrf.mxu3 }
 0x475   : > { %4086 = vmatmul.msk.f32.gmra.mxu3 %vm2274_vm3, %v5567_v17 }
 0x478   : > { %v5924_v42 = vpop.f32.mrf.mxu3 }
 0x47d   : > { %4087 = vmatmul.msk.f32.gmra.mxu3 %vm2274_vm3, %v5587_v61 }
 0x480   : > { %v5928_v58 = vpop.f32.mrf.mxu3 }
 0x485   : > { %4088 = vmatmul.msk.f32.gmra.mxu3 %vm2274_vm3, %v5618_v50  ;;  %v3681_v50 = vld [vmem:[%s6352_s7 + $0x18] sm:$0xff] }
 0x486   : > { %3711 = vmatpush.msra.mxu2 %v3681_v50 }
 0x488   : > { %v5932_v11 = vpop.f32.mrf.mxu3 }
 0x48d   : > { %4089 = vmatmul.msk.f32.gmra.mxu3 %vm2274_vm3, %v5621_v18 }
 0x490   : > { %v5936_v26 = vpop.f32.mrf.mxu3 }
 0x495   : > { %4090 = vmatmul.msk.f32.gmra.mxu3 %vm2274_vm3, %v5640_v2 }
 0x498   : > { %v5940_v17 = vpop.f32.mrf.mxu3 }
 0x49d   : > { %4091 = vmatmul.msk.f32.gmra.mxu3 %vm2274_vm3, %v5668_v4  ;;  %v2692_v4 = vpop.f32.mrf.mxu0 }
 0x4a0   : > { %v5944_v61 = vpop.f32.mrf.mxu3 }
 0x4a5   : > { %4092 = vmatmul.msk.f32.gmra.mxu3 %vm2274_vm3, %v5671_v15  ;;  %v2695_v5 = vpop.f32.mrf.mxu0 }
 0x4a8   : > { %v5951_v18 = vpop.f32.mrf.mxu3 }
 0x4ad   : > { %4093 = vmatmul.msk.f32.gmra.mxu3 %vm2274_vm3, %v5693_v47  ;;  %v2698_v47 = vpop.f32.mrf.mxu0 }
 0x4b0   : > { %v5955_v2 = vpop.f32.mrf.mxu3 }
 0x4b5   : > { %4094 = vmatmul.msk.f32.gmra.mxu3 %vm2274_vm3, %v5721_v37  ;;  %v2701_v37 = vpop.f32.mrf.mxu0 }
 0x4b8   : > { %v5959_v35 = vpop.f32.mrf.mxu3 }
 0x4bd   : > { %4095 = vmatmul.msk.f32.gmra.mxu3 %vm2274_vm3, %v5724_v16  ;;  %v2870_v16 = vadd.f32 %v5833_v7, %v2692_v4  ;;  %v6457_v7 = vrot.slane %v5783_v55, 2  ;;  %v2879_v55 = vadd.f32 %v5854_v36, %v2701_v37  ;;  %v3016_v36 = vrot.slane %v5194_v10, 2 }
 0x4c0   : > { %v5963_v50 = vpop.f32.mrf.mxu3 }
 0x4c1   : > { %6453 = vst [vmem:[#allocation17_spill] sm:$0xff] %v5963_v50 }
 0x4c5   : > { %4096 = vmatmul.msk.f32.gmra.mxu3 %vm2274_vm3, %v5739_v25  ;;  %v2704_v25 = vpop.f32.mrf.mxu0 }
 0x4c8   : > { %v5967_v15 = vpop.f32.mrf.mxu3 }
 0x4c9   : > { %6454 = vst [vmem:[#allocation11_spill] sm:$0xff] %v5967_v15 }
 0x4cd   : > { %4097 = vmatmul.msk.f32.gmra.mxu3 %vm2274_vm3, %v5758_v24  ;;  %v2873_v24 = vadd.f32 %v5839_v56, %v2695_v5  ;;  %v3012_v5 = vrot.slane %v5177_v29, 2 }
 0x4d0   : > { %v5971_v45 = vpop.f32.mrf.mxu3 }
 0x4d1   : > { %6455 = vst [vmem:[#allocation9_spill] sm:$0xff] %v5971_v45 }
 0x4d5   : > { %4098 = vmatmul.msk.f32.gmra.mxu3 %vm2274_vm3, %v5766_v62 }
 0x4d8   : > { %v5975_v9 = vpop.f32.mrf.mxu3 }
 0x4d9   : > { %6456 = vst [vmem:[#allocation6_spill] sm:$0xff] %v5975_v9  ;;  %v3010_v9 = vrot.slane %v5828_v44, 2 }
 0x4db   : > { %v3011_v4 = vsel %vm1293_vm2, %v6457_v7, %v3010_v9  ;;  %v3013_v56 = vsel %vm1293_vm2, %v3010_v9, %v3012_v5 }
 0x4dd   : > { %4099 = vmatmul.msk.f32.gmra.mxu3 %vm2274_vm3, %v5775_v21  ;;  %v2707_v21 = vpop.f32.mrf.mxu0 }
 0x4de   : > { %v2885_v37 = vadd.f32 %v5862_v51, %v2707_v21 }
 0x4e0   : > { %v3117_v50 = vpop.f32.mrf.mxu3 }
 0x4e1   : > { %v5980_v15 = vadd.f32 %v3117_v50, %v2870_v16  ;;  %v2876_v50 = vadd.f32 %v5847_v43, %v2698_v47  ;;  %v2882_v47 = vadd.f32 %v5858_v33, %v2704_v25 }
 0x4e3   : > { %3277 = vrot.lane.b32.xlu1 %v5980_v15, %s4191_s21 }
 0x4e5   : > { %4100 = vmatmul.msk.f32.gmra.mxu3 %vm2274_vm3, %v5790_v53  ;;  %v2710_v44 = vpop.f32.mrf.mxu0 }
 0x4e6   : > { %v2888_v33 = vadd.f32 %v5866_v0, %v2710_v44 }
 0x4e8   : > { %v3120_v62 = vpop.f32.mrf.mxu3 }
 0x4e9   : > { %v5988_v45 = vadd.f32 %v3120_v62, %v2873_v24  ;;  %v3014_v62 = vrot.slane %v5181_v63, 2 }
 0x4eb   : > { %3279 = vrot.lane.b32.xlu2 %v5988_v45, %s4191_s21  ;;  %v3015_v29 = vsel %vm1293_vm2, %v3012_v5, %v3014_v62  ;;  %v3017_v63 = vsel %vm1293_vm2, %v3014_v62, %v3016_v36  ;;  %v3018_v5 = vrot.slane %v5232_v8, 2 }
 0x4ed   : > { %4101 = vmatmul.msk.f32.gmra.mxu3 %vm2274_vm3, %v3011_v4  ;;  %v2713_v43 = vpop.f32.mrf.mxu0  ;;  %v3019_v10 = vsel %vm1293_vm2, %v3016_v36, %v3018_v5  ;;  %v3024_v36 = vrot.slane %v5310_v32, 2 }
 0x4ee   : > { %v2891_v21 = vadd.f32 %v5870_v13, %v2713_v43  ;;  %v3680_v13 = vld [vmem:[%s6352_s7 + $0x10] sm:$0xff] }
 0x4ef   : > { %3712 = vmatpush.msra.mxu2 %v3680_v13 }
 0x4f0   : > { %v3123_v53 = vpop.f32.mrf.mxu3 }
 0x4f1   : > { %v5997_v16 = vadd.f32 %v3123_v53, %v2876_v50 }
 0x4f3   : > { %3281 = vrot.lane.b32.xlu0 %v5997_v16, %s4191_s21 }
 0x4f5   : > { %4102 = vmatmul.msk.f32.gmra.mxu3 %vm2274_vm3, %v3013_v56  ;;  %v2716_v50 = vpop.f32.mrf.mxu0 }
 0x4f6   : > { %v2894_v44 = vadd.f32 %v5877_v1, %v2716_v50  ;;  %v3026_v50 = vrot.slane %v5341_v41, 2 }
 0x4f8   : > { %v3126_v24 = vpop.f32.mrf.mxu3 }
 0x4f9   : > { %v6006_v7 = vadd.f32 %v3126_v24, %v2879_v55  ;;  %v3020_v55 = vrot.slane %v5255_v49, 2 }
 0x4fb   : > { %3283 = vrot.lane.b32.xlu1 %v6006_v7, %s4191_s21  ;;  %v3021_v8 = vsel %vm1293_vm2, %v3018_v5, %v3020_v55  ;;  %v3027_v5 = vsel %vm1293_vm2, %v3024_v36, %v3026_v50 }
 0x4fd   : > { %4103 = vmatmul.msk.f32.gmra.mxu3 %vm2274_vm3, %v3015_v29  ;;  %v2719_v51 = vpop.f32.mrf.mxu0  ;;  %v3022_v29 = vrot.slane %v5272_v22, 2  ;;  %v3544_v22 = vld [vmem:[%s6350_s5] sm:$0xff] }
 0x4fe   : > { %3652 = vmatpush.msra.mxu1 %v3544_v22  ;;  %v2897_v1 = vadd.f32 %v5884_v39, %v2719_v51 }
 0x4ff   : > { %v3023_v0 = vsel %vm1293_vm2, %v3020_v55, %v3022_v29  ;;  %v3025_v43 = vsel %vm1293_vm2, %v3022_v29, %v3024_v36  ;;  %v3028_v55 = vrot.slane %v6451_v46, 2 }
 0x500   : > { %v3129_v9 = vpop.f32.mrf.mxu3 }
 0x501   : > { %v6013_v4 = vadd.f32 %v3129_v9, %v2882_v47  ;;  %v3029_v41 = vsel %vm1293_vm2, %v3026_v50, %v3028_v55 }
 0x503   : > { %3285 = vrot.lane.b32.xlu2 %v6013_v4, %s4191_s21 }
 0x505   : > { %4104 = vmatmul.msk.f32.gmra.mxu3 %vm2274_vm3, %v3017_v63  ;;  %v2722_v49 = vpop.f32.mrf.mxu0 }
 0x508   : > { %v3132_v53 = vpop.f32.mrf.mxu3 }
 0x509   : > { %v6022_v56 = vadd.f32 %v3132_v53, %v2885_v37 }
 0x50b   : > { %3287 = vrot.lane.b32.xlu0 %v6022_v56, %s4191_s21 }
 0x50d   : > { %4105 = vmatmul.msk.f32.gmra.mxu3 %vm2274_vm3, %v3019_v10  ;;  %v2725_v32 = vpop.f32.mrf.mxu0  ;;  %v2900_v10 = vadd.f32 %v5888_v6, %v2722_v49 }
 0x50e   : > { %v2903_v39 = vadd.f32 %v5892_v40, %v2725_v32 }
 0x510   : > { %v3135_v25 = vpop.f32.mrf.mxu3 }
 0x511   : > { %v6030_v24 = vadd.f32 %v3135_v25, %v2888_v33 }
 0x513   : > { %3289 = vrot.lane.b32.xlu1 %v6030_v24, %s4191_s21 }
 0x515   : > { %4106 = vmatmul.msk.f32.gmra.mxu3 %vm2274_vm3, %v3021_v8  ;;  %v2728_v33 = vpop.f32.mrf.mxu0 }
 0x516   : > { %v2906_v29 = vadd.f32 %v5896_v14, %v2728_v33 }
 0x518   : > { %v3138_v62 = vpop.f32.mrf.mxu3 }
 0x519   : > { %v6038_v47 = vadd.f32 %v3138_v62, %v2891_v21  ;;  %v3030_v21 = vrot.slane %v6452_v28, 2  ;;  %v6091_v28 = vld [vmem:[%s6349_s4] ss:$0 sm:$0xff] }
 0x51b   : > { %3291 = vrot.lane.b32.xlu2 %v6038_v47, %s4191_s21  ;;  %v3031_v46 = vsel %vm1293_vm2, %v3028_v55, %v3030_v21 }
 0x51d   : > { %4107 = vmatmul.msk.f32.gmra.mxu3 %vm2274_vm3, %v3023_v0  ;;  %v2731_v6 = vpop.f32.mrf.mxu0  ;;  %v3032_v0 = vrot.slane %v5476_v52, 2 }
 0x51e   : > { %v2909_v52 = vadd.f32 %v5900_v31, %v2731_v6 }
 0x520   : > { %v3141_v9 = vpop.f32.mrf.mxu3 }
 0x521   : > { %v6046_v63 = vadd.f32 %v3141_v9, %v2894_v44  ;;  %v3033_v9 = vsel %vm1293_vm2, %v3030_v21, %v3032_v0 }
 0x523   : > { %3293 = vrot.lane.b32.xlu0 %v6046_v63, %s4191_s21 }
 0x525   : > { %4108 = vmatmul.msk.f32.gmra.mxu3 %vm2274_vm3, %v3025_v43  ;;  %v2734_v40 = vpop.f32.mrf.mxu0  ;;  %v3034_v43 = vrot.slane %v5496_v48, 2 }
 0x526   : > { %v2912_v31 = vadd.f32 %v5904_v20, %v2734_v40 }
 0x528   : > { %v3144_v37 = vpop.f32.mrf.mxu3 }
 0x529   : > { %v6060_v53 = vadd.f32 %v3144_v37, %v2897_v1  ;;  %v3035_v37 = vsel %vm1293_vm2, %v3032_v0, %v3034_v43 }
 0x52b   : > { %3295 = vrot.lane.b32.xlu1 %v6060_v53, %s4191_s21 }
 0x52d   : > { %4109 = vmatmul.msk.f32.gmra.mxu3 %vm2274_vm3, %v3027_v5 }
 0x530   : > { %v3147_v25 = vpop.f32.mrf.mxu3 }
 0x531   : > { %v6068_v8 = vadd.f32 %v3147_v25, %v2900_v10 }
 0x533   : > { %3297 = vrot.lane.b32.xlu2 %v6068_v8, %s4191_s21 }
 0x535   : > { %4110 = vmatmul.msk.f32.gmra.mxu3 %vm2274_vm3, %v3029_v41 }
 0x538   : > { %v3150_v51 = vpop.f32.mrf.mxu3 }
 0x539   : > { %v6076_v62 = vadd.f32 %v3150_v51, %v2903_v39 }
 0x53b   : > { %3299 = vrot.lane.b32.xlu0 %v6076_v62, %s4191_s21 }
 0x53d   : > { %4111 = vmatmul.msk.f32.gmra.mxu3 %vm2274_vm3, %v3031_v46 }
 0x540   : > { %v3153_v49 = vpop.f32.mrf.mxu3 }
 0x541   : > { %v6084_v44 = vadd.f32 %v3153_v49, %v2906_v29 }
 0x543   : > { %3301 = vrot.lane.b32.xlu1 %v6084_v44, %s4191_s21 }
 0x545   : > { %v3280_v36 = vpop.permute.xlu2 %3279  ;;  %4112 = vmatmul.msk.f32.gmra.mxu3 %vm2274_vm3, %v3033_v9 }
 0x546   : > { %v3374_v14 = vmax.f32 %v5988_v45, %v3280_v36  ;;  %v2737_v45 = vpop.f32.mrf.mxu0 }
 0x547   : > { %v2915_v33 = vadd.f32 %v5908_v27, %v2737_v45  ;;  %v3583_v45 = vld [vmem:[%s6350_s5 + $0x18] sm:$0xff] }
 0x548   : > { %v3410_v22 = vadd.f32 %v6091_v28, %v3374_v14  ;;  %v3156_v13 = vpop.f32.mrf.mxu3  ;;  %3610 = vmatpush.msra.mxu0 %v3583_v45 }
 0x549   : > { %v6099_v32 = vadd.f32 %v3156_v13, %v2909_v52 }
 0x54a   : > { %v3442_v1 = vmax.f32 %v3410_v22, 0.0 }
 0x54b   : > { %3303 = vrot.lane.b32.xlu2 %v6099_v32, %s4191_s21 }
 0x54c   : > { %3475 = vst.msk [vmem:[#allocation3 + $0x8] sm:$0xff] %vm3473_vm6, %v3442_v1 }
 0x54d   : > { %4113 = vmatmul.msk.f32.gmra.mxu3 %vm2274_vm3, %v3035_v37 }
 0x54e   : > { %v2740_v25 = vpop.f32.mrf.mxu0 }
 0x54f   : > { %v2918_v6 = vadd.f32 %v5912_v34, %v2740_v25 }
 0x550   : > { %v3159_v50 = vpop.f32.mrf.mxu3 }
 0x551   : > { %v6107_v5 = vadd.f32 %v3159_v50, %v2912_v31 }
 0x553   : > { %3305 = vrot.lane.b32.xlu0 %v6107_v5, %s4191_s21 }
 0x555   : > { %v3278_v48 = vpop.permute.xlu1 %3277  ;;  %4114 = vmatmul.msk.f32.gmra.mxu3 %vm2274_vm3, %v3034_v43 }
 0x556   : > { %v3373_v10 = vmax.f32 %v5980_v15, %v3278_v48  ;;  %v2743_v29 = vpop.f32.mrf.mxu0  ;;  %v3582_v48 = vld [vmem:[%s6350_s5 + $0x10] sm:$0xff] }
 0x557   : > { %v2921_v9 = vadd.f32 %v5916_v23, %v2743_v29  ;;  %3611 = vmatpush.msra.mxu0 %v3582_v48 }
 0x558   : > { %v3409_v55 = vadd.f32 %v6091_v28, %v3373_v10  ;;  %v3162_v41 = vpop.f32.mrf.mxu3 }
 0x559   : > { %v6115_v39 = vadd.f32 %v3162_v41, %v2915_v33 }
 0x55a   : > { %v3441_v20 = vmax.f32 %v3409_v55, 0.0 }
 0x55b   : > { %3307 = vrot.lane.b32.xlu1 %v6115_v39, %s4191_s21 }
 0x55c   : > { %3474 = vst.msk [vmem:[#allocation3] sm:$0xff] %vm3473_vm6, %v3441_v20 }
 0x55d   : > { %v3286_v51 = vpop.permute.xlu2 %3285 }
 0x55e   : > { %v3377_v21 = vmax.f32 %v6013_v4, %v3286_v51  ;;  %v2746_v52 = vpop.f32.mrf.mxu0 }
 0x55f   : > { %v2924_v43 = vadd.f32 %v5920_v60, %v2746_v52 }
 0x560   : > { %v3413_v15 = vadd.f32 %v6091_v28, %v3377_v21  ;;  %v3165_v27 = vpop.f32.mrf.mxu3 }
 0x561   : > { %v6123_v46 = vadd.f32 %v3165_v27, %v2918_v6 }
 0x562   : > { %v3445_v49 = vmax.f32 %v3413_v15, 0.0 }
 0x563   : > { %3309 = vrot.lane.b32.xlu2 %v6123_v46, %s4191_s21 }
 0x564   : > { %3478 = vst.msk [vmem:[#allocation3 + $0x20] sm:$0xff] %vm3473_vm6, %v3445_v49 }
 0x565   : > { %v3282_v0 = vpop.permute.xlu0 %3281 }
 0x566   : > { %v3375_v40 = vmax.f32 %v5997_v16, %v3282_v0 }
 0x568   : > { %v3411_v4 = vadd.f32 %v6091_v28, %v3375_v40  ;;  %v3168_v34 = vpop.f32.mrf.mxu3 }
 0x569   : > { %v6131_v36 = vadd.f32 %v3168_v34, %v2921_v9 }
 0x56a   : > { %v3443_v14 = vmax.f32 %v3411_v4, 0.0 }
 0x56b   : > { %3311 = vrot.lane.b32.xlu0 %v6131_v36, %s4191_s21 }
 0x56c   : > { %3476 = vst.msk [vmem:[#allocation3 + $0x10] sm:$0xff] %vm3473_vm6, %v3443_v14 }
 0x56d   : > { %v3284_v22 = vpop.permute.xlu1 %3283 }
 0x56e   : > { %v3376_v13 = vmax.f32 %v6006_v7, %v3284_v22  ;;  %v2749_v7 = vpop.f32.mrf.mxu0 }
 0x56f   : > { %v2927_v50 = vadd.f32 %v5924_v42, %v2749_v7  ;;  %v2930_v42 = vadd.f32 %v5928_v58, %v5631_v19 }
 0x570   : > { %v3412_v16 = vadd.f32 %v6091_v28, %v3376_v13  ;;  %v3171_v23 = vpop.f32.mrf.mxu3 }
 0x571   : > { %v6139_v1 = vadd.f32 %v3171_v23, %v2924_v43 }
 0x572   : > { %v3444_v37 = vmax.f32 %v3412_v16, 0.0 }
 0x573   : > { %3313 = vrot.lane.b32.xlu1 %v6139_v1, %s4191_s21 }
 0x574   : > { %3477 = vst.msk [vmem:[#allocation3 + $0x18] sm:$0xff] %vm3473_vm6, %v3444_v37 }
 0x575   : > { %v3292_v31 = vpop.permute.xlu2 %3291 }
 0x576   : > { %v3380_v60 = vmax.f32 %v6038_v47, %v3292_v31 }
 0x578   : > { %v3416_v10 = vadd.f32 %v6091_v28, %v3380_v60  ;;  %v3174_v33 = vpop.f32.mrf.mxu3  ;;  %v2939_v60 = vadd.f32 %v5940_v17, %v5713_v38  ;;  %v2942_v38 = vadd.f32 %v5944_v61, %v5741_v30  ;;  %v2945_v30 = vadd.f32 %v5951_v18, %v5760_v3 }
 0x579   : > { %v6153_v25 = vadd.f32 %v3174_v33, %v2927_v50 }
 0x57a   : > { %v3448_v55 = vmax.f32 %v3416_v10, 0.0 }
 0x57b   : > { %3315 = vrot.lane.b32.xlu2 %v6153_v25, %s4191_s21  ;;  %v3547_v4 = vld [vmem:[#allocation3 + $0x2] ss:$8 sm:$0xf]  ;;  %v3563_v34 = vld [vmem:[#allocation3 + $0x3] ss:$8 sm:$0xf] }
 0x57c   : > { %3481 = vst.msk [vmem:[#allocation3 + $0x38] sm:$0xff] %vm3473_vm6, %v3448_v55  ;;  %v3509_v52 = vld [vmem:[#allocation3] ss:$8 sm:$0xf] }
 0x57d   : > { %v3288_v41 = vpop.permute.xlu0 %3287  ;;  %v3525_v23 = vld [vmem:[#allocation3 + $0x1] ss:$8 sm:$0xf] }
 0x57e   : > { %v3378_v47 = vmax.f32 %v6022_v56, %v3288_v41  ;;  %v2933_v56 = vadd.f32 %v5932_v11, %v5660_v57 }
 0x580   : > { %v3414_v20 = vadd.f32 %v6091_v28, %v3378_v47  ;;  %v3177_v51 = vpop.f32.mrf.mxu3 }
 0x581   : > { %v6162_v21 = vadd.f32 %v3177_v51, %v2930_v42  ;;  %v3679_v51 = vld [vmem:[%s6352_s7 + $0x8] sm:$0xff] }
 0x582   : > { %v3446_v6 = vmax.f32 %v3414_v20, 0.0  ;;  %3713 = vmatpush.msra.mxu2 %v3679_v51 }
 0x583   : > { %3317 = vrot.lane.b32.xlu0 %v6162_v21, %s4191_s21 }
 0x584   : > { %3479 = vst.msk [vmem:[#allocation3 + $0x28] sm:$0xff] %vm3473_vm6, %v3446_v6 }
 0x585   : > { %v3290_v15 = vpop.permute.xlu1 %3289 }
 0x586   : > { %v3379_v27 = vmax.f32 %v6030_v24, %v3290_v15  ;;  %v2936_v24 = vadd.f32 %v5936_v26, %v5688_v12 }
 0x588   : > { %v3415_v29 = vadd.f32 %v6091_v28, %v3379_v27  ;;  %v3180_v19 = vpop.f32.mrf.mxu3 }
 0x589   : > { %v6171_v58 = vadd.f32 %v3180_v19, %v2933_v56 }
 0x58a   : > { %v3447_v49 = vmax.f32 %v3415_v29, 0.0 }
 0x58b   : > { %3319 = vrot.lane.b32.xlu1 %v6171_v58, %s4191_s21 }
 0x58c   : > { %3480 = vst.msk [vmem:[#allocation3 + $0x30] sm:$0xff] %vm3473_vm6, %v3447_v49 }
 0x58d   : > { %v3298_v0 = vpop.permute.xlu2 %3297 }
 0x58e   : > { %v3383_v40 = vmax.f32 %v6068_v8, %v3298_v0 }
 0x590   : > { %v3419_v9 = vadd.f32 %v6091_v28, %v3383_v40  ;;  %v3183_v57 = vpop.f32.mrf.mxu3 }
 0x591   : > { %v6180_v11 = vadd.f32 %v3183_v57, %v2936_v24 }
 0x592   : > { %v3451_v14 = vmax.f32 %v3419_v9, 0.0 }
 0x593   : > { %3321 = vrot.lane.b32.xlu2 %v6180_v11, %s4191_s21  ;;  %v3548_v22 = vld [vmem:[#allocation3 + $0x2] ss:$8 sm:$0xf0]  ;;  %v3564_v13 = vld [vmem:[#allocation3 + $0x3] ss:$8 sm:$0xf0] }
 0x594   : > { %3484 = vst.msk [vmem:[#allocation3 + $0x50] sm:$0xff] %vm3473_vm6, %v3451_v14  ;;  %v3549_v8 = vor.u32 %v3548_v22, %v3547_v4  ;;  %v3565_v43 = vor.u32 %v3564_v13, %v3563_v34  ;;  %v3510_v16 = vld [vmem:[#allocation3] ss:$8 sm:$0xf0] }
 0x595   : > { %v3294_v12 = vpop.permute.xlu0 %3293  ;;  %v3511_v26 = vor.u32 %v3510_v16, %v3509_v52  ;;  %v3526_v37 = vld [vmem:[#allocation3 + $0x1] ss:$8 sm:$0xf0] }
 0x596   : > { %v3381_v45 = vmax.f32 %v6046_v63, %v3294_v12  ;;  %v3578_v31 = vmax.f32 %v3549_v8, %v3565_v43  ;;  %v3527_v7 = vor.u32 %v3526_v37, %v3525_v23  ;;  %v6458_v14 = vld [vmem:[#allocation8_spill] sm:$0xff]  ;;  %v6459_v52 = vld [vmem:[#allocation17_spill] sm:$0xff]  ;;  %v6460_v16 = vld [vmem:[#allocation18_spill] sm:$0xff] }
 0x597   : > { %v6461_v12 = vld [vmem:[#allocation11_spill] sm:$0xff] }
 0x598   : > { %v3417_v50 = vadd.f32 %v6091_v28, %v3381_v45  ;;  %v3186_v48 = vpop.f32.mrf.mxu3  ;;  %4115 = vmatmul.msk.f32.vlgmr.msra.gmra.mxu0 %vm3473_vm6, %v3578_v31  ;;  %v3540_v10 = vmax.f32 %v3511_v26, %v3527_v7 }
 0x599   : > { %v6190_v33 = vadd.f32 %v3186_v48, %v2939_v60  ;;  %v6462_v60 = vld [vmem:[#allocation5_spill] sm:$0xff] }
 0x59a   : > { %v3449_v55 = vmax.f32 %v3417_v50, 0.0  ;;  %4119 = vmatmul.msk.f32.vlgmr.msra.gmra.mxu1 %vm3473_vm6, %v3540_v10  ;;  %v6463_v50 = vld [vmem:[#allocation9_spill] sm:$0xff] }
 0x59b   : > { %3323 = vrot.lane.b32.xlu0 %v6190_v33, %s4191_s21 }
 0x59c   : > { %3482 = vst.msk [vmem:[#allocation3 + $0x40] sm:$0xff] %vm3473_vm6, %v3449_v55 }
 0x59d   : > { %v3296_v63 = vpop.permute.xlu1 %3295 }
 0x59e   : > { %v3382_v41 = vmax.f32 %v6060_v53, %v3296_v63 }
 0x5a0   : > { %v3418_v17 = vadd.f32 %v6091_v28, %v3382_v41  ;;  %v3189_v47 = vpop.f32.mrf.mxu3 }
 0x5a1   : > { %v6200_v42 = vadd.f32 %v3189_v47, %v2942_v38  ;;  %v6465_v47 = vld [vmem:[#allocation6_spill] sm:$0xff] }
 0x5a2   : > { %v3450_v20 = vmax.f32 %v3418_v17, 0.0  ;;  %v6464_v17 = vld [vmem:[#allocation12_spill] sm:$0xff] }
 0x5a3   : > { %3325 = vrot.lane.b32.xlu1 %v6200_v42, %s4191_s21 }
 0x5a4   : > { %3483 = vst.msk [vmem:[#allocation3 + $0x48] sm:$0xff] %vm3473_vm6, %v3450_v20 }
 0x5a5   : > { %v3304_v6 = vpop.permute.xlu2 %3303 }
 0x5a6   : > { %v3386_v53 = vmax.f32 %v6099_v32, %v3304_v6  ;;  %v2948_v32 = vadd.f32 %v5955_v2, %v5778_v54 }
 0x5a8   : > { %v3422_v61 = vadd.f32 %v6091_v28, %v3386_v53  ;;  %v3192_v15 = vpop.f32.mrf.mxu3 }
 0x5a9   : > { %v6212_v27 = vadd.f32 %v3192_v15, %v2945_v30 }
 0x5aa   : > { %v3454_v56 = vmax.f32 %v3422_v61, 0.0 }
 0x5ab   : > { %3327 = vrot.lane.b32.xlu2 %v6212_v27, %s4191_s21 }
 0x5ac   : > { %3487 = vst.msk [vmem:[#allocation3 + $0x68] sm:$0xff] %vm3473_vm6, %v3454_v56 }
 0x5ad   : > { %v3300_v29 = vpop.permute.xlu0 %3299 }
 0x5ae   : > { %v3384_v19 = vmax.f32 %v6076_v62, %v3300_v29  ;;  %v2951_v62 = vadd.f32 %v5959_v35, %v5796_v59 }
 0x5b0   : > { %v3420_v49 = vadd.f32 %v6091_v28, %v3384_v19  ;;  %v3195_v3 = vpop.f32.mrf.mxu3 }
 0x5b1   : > { %v6221_v18 = vadd.f32 %v3195_v3, %v2948_v32 }
 0x5b2   : > { %v3452_v0 = vmax.f32 %v3420_v49, 0.0 }
 0x5b3   : > { %3329 = vrot.lane.b32.xlu0 %v6221_v18, %s4191_s21 }
 0x5b4   : > { %3485 = vst.msk [vmem:[#allocation3 + $0x58] sm:$0xff] %vm3473_vm6, %v3452_v0 }
 0x5b5   : > { %v3302_v40 = vpop.permute.xlu1 %3301 }
 0x5b6   : > { %v3385_v24 = vmax.f32 %v6084_v44, %v3302_v40  ;;  %v2954_v44 = vadd.f32 %v6459_v52, %v6458_v14 }
 0x5b8   : > { %v3421_v9 = vadd.f32 %v6091_v28, %v3385_v24  ;;  %v3198_v54 = vpop.f32.mrf.mxu3 }
 0x5b9   : > { %v6230_v2 = vadd.f32 %v3198_v54, %v2951_v62 }
 0x5ba   : > { %v3453_v57 = vmax.f32 %v3421_v9, 0.0 }
 0x5bb   : > { %3331 = vrot.lane.b32.xlu1 %v6230_v2, %s4191_s21  ;;  %v3551_v53 = vld [vmem:[#allocation3 + $0x42] ss:$8 sm:$0xf]  ;;  %v3567_v30 = vld [vmem:[#allocation3 + $0x43] ss:$8 sm:$0xf] }
 0x5bc   : > { %3486 = vst.msk [vmem:[#allocation3 + $0x60] sm:$0xff] %vm3473_vm6, %v3453_v57  ;;  %v3513_v15 = vld [vmem:[#allocation3 + $0x40] ss:$8 sm:$0xf] }
 0x5bd   : > { %v3310_v4 = vpop.permute.xlu2 %3309  ;;  %v3529_v0 = vld [vmem:[#allocation3 + $0x41] ss:$8 sm:$0xf] }
 0x5be   : > { %v3389_v34 = vmax.f32 %v6123_v46, %v3310_v4  ;;  %v2957_v46 = vadd.f32 %v6461_v12, %v6460_v16 }
 0x5c0   : > { %v3425_v22 = vadd.f32 %v6091_v28, %v3389_v34  ;;  %v3201_v59 = vpop.f32.mrf.mxu3 }
 0x5c1   : > { %v6239_v35 = vadd.f32 %v3201_v59, %v2954_v44 }
 0x5c2   : > { %v3457_v13 = vmax.f32 %v3425_v22, 0.0 }
 0x5c3   : > { %3333 = vrot.lane.b32.xlu2 %v6239_v35, %s4191_s21 }
 0x5c4   : > { %3490 = vst.msk [vmem:[#allocation3 + $0x80] sm:$0xff] %vm3473_vm6, %v3457_v13 }
 0x5c5   : > { %v3306_v8 = vpop.permute.xlu0 %3305 }
 0x5c6   : > { %v3387_v43 = vmax.f32 %v6107_v5, %v3306_v8  ;;  %v2960_v5 = vadd.f32 %v6463_v50, %v6462_v60 }
 0x5c8   : > { %v3423_v26 = vadd.f32 %v6091_v28, %v3387_v43  ;;  %v3204_v23 = vpop.f32.mrf.mxu3 }
 0x5c9   : > { %v6248_v37 = vadd.f32 %v3204_v23, %v2957_v46 }
 0x5ca   : > { %v3455_v45 = vmax.f32 %v3423_v26, 0.0 }
 0x5cb   : > { %3335 = vrot.lane.b32.xlu0 %v6248_v37, %s4191_s21 }
 0x5cc   : > { %3488 = vst.msk [vmem:[#allocation3 + $0x70] sm:$0xff] %vm3473_vm6, %v3455_v45 }
 0x5cd   : > { %v3308_v31 = vpop.permute.xlu1 %3307 }
 0x5ce   : > { %v3388_v7 = vmax.f32 %v6115_v39, %v3308_v31  ;;  %v2963_v39 = vadd.f32 %v6465_v47, %v6464_v17 }
 0x5d0   : > { %v3424_v48 = vadd.f32 %v6091_v28, %v3388_v7  ;;  %v3207_v10 = vpop.f32.mrf.mxu3 }
 0x5d1   : > { %v6257_v55 = vadd.f32 %v3207_v10, %v2960_v5 }
 0x5d2   : > { %v3456_v63 = vmax.f32 %v3424_v48, 0.0 }
 0x5d3   : > { %3337 = vrot.lane.b32.xlu1 %v6257_v55, %s4191_s21 }
 0x5d4   : > { %3489 = vst.msk [vmem:[#allocation3 + $0x78] sm:$0xff] %vm3473_vm6, %v3456_v63 }
 0x5d5   : > { %v3316_v41 = vpop.permute.xlu2 %3315 }
 0x5d6   : > { %v3392_v38 = vmax.f32 %v6153_v25, %v3316_v41 }
 0x5d8   : > { %v3428_v20 = vadd.f32 %v6091_v28, %v3392_v38  ;;  %v3210_v51 = vpop.f32.mrf.mxu3 }
 0x5d9   : > { %v6266_v6 = vadd.f32 %v3210_v51, %v2963_v39 }
 0x5da   : > { %v3460_v61 = vmax.f32 %v3428_v20, 0.0 }
 0x5db   : > { %3339 = vrot.lane.b32.xlu2 %v6266_v6, %s4191_s21  ;;  %v3552_v56 = vld [vmem:[#allocation3 + $0x42] ss:$8 sm:$0xf0]  ;;  %v3568_v29 = vld [vmem:[#allocation3 + $0x43] ss:$8 sm:$0xf0] }
 0x5dc   : > { %3493 = vst.msk [vmem:[#allocation3 + $0x98] sm:$0xff] %vm3473_vm6, %v3460_v61  ;;  %v3553_v25 = vor.u32 %v3552_v56, %v3551_v53  ;;  %v3569_v19 = vor.u32 %v3568_v29, %v3567_v30  ;;  %v3514_v32 = vld [vmem:[#allocation3 + $0x40] ss:$8 sm:$0xf0] }
 0x5dd   : > { %v3312_v49 = vpop.permute.xlu0 %3311  ;;  %v3515_v3 = vor.u32 %v3514_v32, %v3513_v15  ;;  %v3530_v40 = vld [vmem:[#allocation3 + $0x41] ss:$8 sm:$0xf0] }
 0x5de   : > { %v3390_v24 = vmax.f32 %v6131_v36, %v3312_v49  ;;  %v3579_v62 = vmax.f32 %v3553_v25, %v3569_v19  ;;  %v3531_v9 = vor.u32 %v3530_v40, %v3529_v0 }
 0x5e0   : > { %v3426_v54 = vadd.f32 %v6091_v28, %v3390_v24  ;;  %4116 = vmatmul.msk.f32.gmra.mxu0 %vm3473_vm6, %v3579_v62  ;;  %v3541_v57 = vmax.f32 %v3515_v3, %v3531_v9 }
 0x5e2   : > { %v3458_v4 = vmax.f32 %v3426_v54, 0.0  ;;  %4120 = vmatmul.msk.f32.gmra.mxu1 %vm3473_vm6, %v3541_v57 }
 0x5e4   : > { %3491 = vst.msk [vmem:[#allocation3 + $0x88] sm:$0xff] %vm3473_vm6, %v3458_v4 }
 0x5e5   : > { %v3314_v34 = vpop.permute.xlu1 %3313 }
 0x5e6   : > { %v3391_v14 = vmax.f32 %v6139_v1, %v3314_v34  ;;  %v3678_v1 = vld [vmem:[%s6352_s7] sm:$0xff] }
 0x5e7   : > { %3714 = vmatpush.msra.mxu2 %v3678_v1 }
 0x5e8   : > { %v3427_v52 = vadd.f32 %v6091_v28, %v3391_v14 }
 0x5ea   : > { %v3459_v44 = vmax.f32 %v3427_v52, 0.0 }
 0x5ec   : > { %3492 = vst.msk [vmem:[#allocation3 + $0x90] sm:$0xff] %vm3473_vm6, %v3459_v44 }
 0x5ed   : > { %v3322_v36 = vpop.permute.xlu2 %3321 }
 0x5ee   : > { %v3395_v22 = vmax.f32 %v6180_v11, %v3322_v36 }
 0x5f0   : > { %v3431_v59 = vadd.f32 %v6091_v28, %v3395_v22 }
 0x5f2   : > { %v3463_v13 = vmax.f32 %v3431_v59, 0.0 }
 0x5f3   : > { %v3555_v47 = vld [vmem:[#allocation3 + $0x82] ss:$8 sm:$0xf]  ;;  %v3517_v51 = vld [vmem:[#allocation3 + $0x80] ss:$8 sm:$0xf] }
 0x5f4   : > { %3496 = vst.msk [vmem:[#allocation3 + $0xb0] sm:$0xff] %vm3473_vm6, %v3463_v13  ;;  %v3533_v19 = vld [vmem:[#allocation3 + $0x81] ss:$8 sm:$0xf] }
 0x5f5   : > { %v3318_v8 = vpop.permute.xlu0 %3317 }
 0x5f6   : > { %v3393_v43 = vmax.f32 %v6162_v21, %v3318_v8 }
 0x5f8   : > { %v3429_v16 = vadd.f32 %v6091_v28, %v3393_v43 }
 0x5fa   : > { %v3461_v12 = vmax.f32 %v3429_v16, 0.0 }
 0x5fc   : > { %3494 = vst.msk [vmem:[#allocation3 + $0xa0] sm:$0xff] %vm3473_vm6, %v3461_v12 }
 0x5fd   : > { %v3320_v46 = vpop.permute.xlu1 %3319 }
 0x5fe   : > { %v3394_v11 = vmax.f32 %v6171_v58, %v3320_v46 }
 0x600   : > { %v3430_v26 = vadd.f32 %v6091_v28, %v3394_v11 }
 0x602   : > { %v3462_v23 = vmax.f32 %v3430_v26, 0.0 }
 0x604   : > { %3495 = vst.msk [vmem:[#allocation3 + $0xa8] sm:$0xff] %vm3473_vm6, %v3462_v23 }
 0x605   : > { %v3328_v45 = vpop.permute.xlu2 %3327 }
 0x606   : > { %v3398_v21 = vmax.f32 %v6212_v27, %v3328_v45  ;;  %v6301_v27 = vld [vmem:[%s6351_s6] ss:$0 sm:$0xff] }
 0x608   : > { %v3434_v31 = vadd.f32 %v6091_v28, %v3398_v21 }
 0x60a   : > { %v3466_v7 = vmax.f32 %v3434_v31, 0.0 }
 0x60c   : > { %3499 = vst.msk [vmem:[#allocation3 + $0xc8] sm:$0xff] %vm3473_vm6, %v3466_v7 }
 0x60d   : > { %v3324_v60 = vpop.permute.xlu0 %3323 }
 0x60e   : > { %v3396_v50 = vmax.f32 %v6190_v33, %v3324_v60  ;;  %v3571_v33 = vld [vmem:[#allocation3 + $0x83] ss:$8 sm:$0xf] }
 0x610   : > { %v3432_v5 = vadd.f32 %v6091_v28, %v3396_v50 }
 0x612   : > { %v3464_v48 = vmax.f32 %v3432_v5, 0.0 }
 0x614   : > { %3497 = vst.msk [vmem:[#allocation3 + $0xb8] sm:$0xff] %vm3473_vm6, %v3464_v48 }
 0x615   : > { %v3326_v58 = vpop.permute.xlu1 %3325  ;;  %v3613_v10 = vpop.f32.mrf.mxu0 }
 0x616   : > { %v3397_v63 = vmax.f32 %v6200_v42, %v3326_v58 }
 0x617   : > { %v3654_v41 = vpop.f32.mrf.mxu1 }
 0x618   : > { %v3433_v38 = vadd.f32 %v6091_v28, %v3397_v63  ;;  %v3655_v17 = vadd.f32 %v3654_v41, %v3613_v10 }
 0x61a   : > { %v3465_v39 = vmax.f32 %v3433_v38, 0.0  ;;  %v3670_v20 = vadd.f32 %v6301_v27, %v3655_v17  ;;  %v4166_v38 = vld [vmem:[%s6353_s8] ss:$0 sm:$0xff] }
 0x61b   : > { %v3556_v53 = vld [vmem:[#allocation3 + $0x82] ss:$8 sm:$0xf0]  ;;  %v3572_v30 = vld [vmem:[#allocation3 + $0x83] ss:$8 sm:$0xf0] }
 0x61c   : > { %3498 = vst.msk [vmem:[#allocation3 + $0xc0] sm:$0xff] %vm3473_vm6, %v3465_v39  ;;  %v3674_v42 = vmax.f32 %v3670_v20, 0.0  ;;  %v3557_v61 = vor.u32 %v3556_v53, %v3555_v47  ;;  %v3573_v15 = vor.u32 %v3572_v30, %v3571_v33  ;;  %v3518_v56 = vld [vmem:[#allocation3 + $0x80] ss:$8 sm:$0xf0] }
 0x61d   : > { %v3334_v29 = vpop.permute.xlu2 %3333  ;;  %v3519_v25 = vor.u32 %v3518_v56, %v3517_v51  ;;  %v3534_v32 = vld [vmem:[#allocation3 + $0x81] ss:$8 sm:$0xf0] }
 0x61e   : > { %4123 = vmatmul.msk.f32.vlgmr.msra.gmra.mxu2 %vm3686_vm7, %v3674_v42  ;;  %v3401_v49 = vmax.f32 %v6239_v35, %v3334_v29  ;;  %v3580_v3 = vmax.f32 %v3557_v61, %v3573_v15  ;;  %v3535_v0 = vor.u32 %v3534_v32, %v3533_v19 }
 0x620   : > { %v3437_v40 = vadd.f32 %v6091_v28, %v3401_v49  ;;  %4117 = vmatmul.msk.f32.gmra.mxu0 %vm3473_vm6, %v3580_v3  ;;  %v3542_v24 = vmax.f32 %v3519_v25, %v3535_v0 }
 0x622   : > { %v3469_v62 = vmax.f32 %v3437_v40, 0.0  ;;  %4121 = vmatmul.msk.f32.gmra.mxu1 %vm3473_vm6, %v3542_v24 }
 0x624   : > { %3502 = vst.msk [vmem:[#allocation3 + $0xe0] sm:$0xff] %vm3473_vm6, %v3469_v62 }
 0x625   : > { %v3330_v9 = vpop.permute.xlu0 %3329 }
 0x626   : > { %v3399_v54 = vmax.f32 %v6221_v18, %v3330_v9 }
 0x628   : > { %v3435_v57 = vadd.f32 %v6091_v28, %v3399_v54 }
 0x62a   : > { %v3467_v4 = vmax.f32 %v3435_v57, 0.0 }
 0x62c   : > { %3500 = vst.msk [vmem:[#allocation3 + $0xd0] sm:$0xff] %vm3473_vm6, %v3467_v4 }
 0x62d   : > { %v3332_v35 = vpop.permute.xlu1 %3331 }
 0x62e   : > { %v3400_v34 = vmax.f32 %v6230_v2, %v3332_v35 }
 0x630   : > { %v3436_v14 = vadd.f32 %v6091_v28, %v3400_v34 }
 0x632   : > { %v3468_v52 = vmax.f32 %v3436_v14, 0.0 }
 0x634   : > { %3501 = vst.msk [vmem:[#allocation3 + $0xd8] sm:$0xff] %vm3473_vm6, %v3468_v52 }
 0x635   : > { %v3340_v44 = vpop.permute.xlu2 %3339 }
 0x636   : > { %v3404_v36 = vmax.f32 %v6266_v6, %v3340_v44 }
 0x638   : > { %v3440_v22 = vadd.f32 %v6091_v28, %v3404_v36 }
 0x63a   : > { %v3472_v18 = vmax.f32 %v3440_v22, 0.0 }
 0x63b   : > { %v3559_v6 = vld [vmem:[#allocation3 + $0xc2] ss:$8 sm:$0xf]  ;;  %v3575_v46 = vld [vmem:[#allocation3 + $0xc3] ss:$8 sm:$0xf] }
 0x63c   : > { %3506 = vst.msk [vmem:[#allocation3 + $0xf8] sm:$0x3f] %vm3505_vm8, %v3472_v18  ;;  %v3521_v11 = vld [vmem:[#allocation3 + $0xc0] ss:$8 sm:$0xf] }
 0x63d   : > { %v3336_v59 = vpop.permute.xlu0 %3335  ;;  %v3537_v26 = vld [vmem:[#allocation3 + $0xc1] ss:$8 sm:$0xf] }
 0x63e   : > { %v3402_v13 = vmax.f32 %v6248_v37, %v3336_v59 }
 0x640   : > { %v3438_v8 = vadd.f32 %v6091_v28, %v3402_v13 }
 0x642   : > { %v3470_v43 = vmax.f32 %v3438_v8, 0.0 }
 0x644   : > { %3503 = vst.msk [vmem:[#allocation3 + $0xe8] sm:$0xff] %vm3473_vm6, %v3470_v43 }
 0x645   : > { %v3338_v2 = vpop.permute.xlu1 %3337 }
 0x646   : > { %v3403_v16 = vmax.f32 %v6257_v55, %v3338_v2 }
 0x648   : > { %v3439_v12 = vadd.f32 %v6091_v28, %v3403_v16 }
 0x64a   : > { %v3471_v1 = vmax.f32 %v3439_v12, 0.0 }
 0x64c   : > { %3504 = vst.msk [vmem:[#allocation3 + $0xf0] sm:$0xff] %vm3473_vm6, %v3471_v1 }
 0x653   : > { %v3560_v23 = vld [vmem:[#allocation3 + $0xc2] ss:$8 sm:$0xf0]  ;;  %v3576_v45 = vld [vmem:[#allocation3 + $0xc3] ss:$8 sm:$0xf0] }
 0x654   : > { %v3561_v37 = vor.u32 %v3560_v23, %v3559_v6  ;;  %v3577_v21 = vor.u32 %v3576_v45, %v3575_v46  ;;  %v3522_v31 = vld [vmem:[#allocation3 + $0xc0] ss:$8 sm:$0xf0]  ;;  %v3538_v7 = vld [vmem:[#allocation3 + $0xc1] ss:$8 sm:$0xf0] }
 0x655   : > { %v3523_v60 = vor.u32 %v3522_v31, %v3521_v11  ;;  %v3539_v50 = vor.u32 %v3538_v7, %v3537_v26 }
 0x656   : > { %v3581_v5 = vmax.f32 %v3561_v37, %v3577_v21 }
 0x657   : > { %v3543_v55 = vmax.f32 %v3523_v60, %v3539_v50 }
 0x658   : > { %4118 = vmatmul.msk.f32.gmra.mxu0 %vm3473_vm6, %v3581_v5 }
 0x659   : > { %4122 = vmatmul.msk.f32.gmra.mxu1 %vm3473_vm6, %v3543_v55 }
 0x65d   : > { %v3616_v28 = vpop.f32.mrf.mxu0 }
 0x65f   : > { %v3657_v48 = vpop.f32.mrf.mxu1 }
 0x660   : > { %v3658_v58 = vadd.f32 %v3657_v48, %v3616_v28 }
 0x662   : > { %v3671_v10 = vadd.f32 %v6301_v27, %v3658_v58 }
 0x664   : > { %v3675_v63 = vmax.f32 %v3671_v10, 0.0 }
 0x666   : > { %4124 = vmatmul.msk.f32.gmra.mxu2 %vm3686_vm7, %v3675_v63 }
 0x69d   : > { %v3619_v41 = vpop.f32.mrf.mxu0 }
 0x69f   : > { %v3660_v17 = vpop.f32.mrf.mxu1 }
 0x6a0   : > { %v3661_v47 = vadd.f32 %v3660_v17, %v3619_v41 }
 0x6a1   : > { %v3716_v33 = vpop.f32.mrf.mxu2 }
 0x6a2   : > { %v3672_v39 = vadd.f32 %v6301_v27, %v3661_v47  ;;  %v3717_v20 = vadd.f32 %v4166_v38, %v3716_v33 }
 0x6a4   : > { %v3676_v51 = vmax.f32 %v3672_v39, 0.0  ;;  %3728 = vst [vmem:[%s334_s26] sm:$0xff] %v3717_v20 }
 0x6a6   : > { %4125 = vmatmul.msk.f32.gmra.mxu2 %vm3686_vm7, %v3676_v51 }
 0x6d5   : > { %v3622_v53 = vpop.f32.mrf.mxu0 }
 0x6d6   : > { %v3663_v30 = vpop.f32.mrf.mxu1 }
 0x6d7   : > { %v3664_v42 = vadd.f32 %v3663_v30, %v3622_v53 }
 0x6d9   : > { %v3673_v61 = vadd.f32 %v6301_v27, %v3664_v42 }
 0x6db   : > { %v3677_v15 = vmax.f32 %v3673_v61, 0.0 }
 0x6dd   : > { %4126 = vmatmul.msk.f32.gmra.mxu2 %vm3686_vm7, %v3677_v15 }
 0x6e9   : > { %v3719_v56 = vpop.f32.mrf.mxu2 }
 0x6ea   : > { %v3720_v29 = vadd.f32 %v4166_v38, %v3719_v56 }
 0x6ec   : > { %3729 = vst [vmem:[%s334_s26 + $0x8] sm:$0xff] %v3720_v29 }
 0x729   : > { %v3722_v25 = vpop.f32.mrf.mxu2 }
 0x72a   : > { %v3723_v19 = vadd.f32 %v4166_v38, %v3722_v25 }
 0x72c   : > { %3730 = vst [vmem:[%s334_s26 + $0x10] sm:$0xff] %v3723_v19 }
 0x760   : > { %v3725_v32 = vpop.f32.mrf.mxu2 }
 0x761   : > { %v3726_v49 = vadd.f32 %v4166_v38, %v3725_v32 }
 0x763   : > { %3731 = vst [vmem:[%s334_s26 + $0x18] sm:$0xff] %v3726_v49 }
 0x764 PF: > { %s19_s30 = sadd.s32 1, %s4187_s30  }
 0x765   : > { %p16_p5 = scmp.ge.s32.totalorder %s19_s30, 4  }
 0x767   :  { %18 = sbr.rel (!%p16_p5) target bundleno = 1 (0x1), region = 168 }

</bundles_post_ra>
